<compile_context>
chip_gen: v7x
topology: tpu7x:2x2x1
jax: 0.10.0
libtpu: 0.0.40
codegen_flags: <defaults>
</compile_context>

<pallas_src>
import math

import jax
import jax.numpy as jnp
from jax import lax
from jax.experimental import pallas as pl
from jax.experimental.pallas import tpu as pltpu

# ---- small synthetic GPT-2 config (shapes implied by the module's forward) ----
VOCAB = 256
D_MODEL = 128
N_HEAD = 4
HEAD_DIM = D_MODEL // N_HEAD
N_LAYER = 2
D_FF = 4 * D_MODEL
MAX_POS = 64
LN_EPS = 1e-5
NEG_INF = -1e9
_ATTN_SCALE = 1.0 / math.sqrt(HEAD_DIM)


def _layer_norm(x, g, b):
    mu = jnp.mean(x, axis=-1, keepdims=True)
    var = jnp.mean((x - mu) ** 2, axis=-1, keepdims=True)
    return (x - mu) * lax.rsqrt(var + LN_EPS) * g + b


def _gelu_new(x):
    # GPT-2 "gelu_new" (tanh approximation)
    c = math.sqrt(2.0 / math.pi)
    return 0.5 * x * (1.0 + jnp.tanh(c * (x + 0.044715 * x * x * x)))


# -------------------- fused decoder kernel (wpe + all blocks + LM head) --------------------
def gpt2_fused_kernel(x_ref, mask_ref, wpe_ref,
                      ln1g_ref, ln1b_ref, wqkv_ref, bqkv_ref, wo_ref, bo_ref,
                      ln2g_ref, ln2b_ref, wfc_ref, bfc_ref, wproj_ref, bproj_ref,
                      lnf_g_ref, lnf_b_ref, wte_t_ref,
                      o_ref):
    S = x_ref.shape[1]
    x = x_ref[0] + wpe_ref[...]                 # (S, D) f32, learned positions
    mask = mask_ref[0]                          # (1, S) f32 key-validity mask

    # causal AND key-valid additive bias, built in-kernel (no HBM materialization)
    q_idx = lax.broadcasted_iota(jnp.int32, (S, S), 0)
    k_idx = lax.broadcasted_iota(jnp.int32, (S, S), 1)
    allowed = jnp.logical_and(q_idx >= k_idx, mask > 0.5)
    bias = jnp.where(allowed, 0.0, NEG_INF).astype(jnp.float32)   # (S, S)

    for l in range(N_LAYER):                    # static unroll, weights resident in VMEM
        # ---- attention ----
        h = _layer_norm(x, ln1g_ref[l], ln1b_ref[l]).astype(jnp.bfloat16)
        qkv = jnp.dot(h, wqkv_ref[l], preferred_element_type=jnp.float32) + bqkv_ref[l]
        q = qkv[:, :D_MODEL].reshape(S, N_HEAD, HEAD_DIM).transpose(1, 0, 2)
        k = qkv[:, D_MODEL:2 * D_MODEL].reshape(S, N_HEAD, HEAD_DIM).transpose(1, 0, 2)
        v = qkv[:, 2 * D_MODEL:].reshape(S, N_HEAD, HEAD_DIM).transpose(1, 0, 2)

        scores = jnp.einsum('hqd,hkd->hqk',
                            q.astype(jnp.bfloat16), k.astype(jnp.bfloat16),
                            preferred_element_type=jnp.float32) * _ATTN_SCALE
        scores = scores + bias[None, :, :]
        m = jnp.max(scores, axis=-1, keepdims=True)
        p = jnp.exp(scores - m)
        denom = jnp.sum(p, axis=-1, keepdims=True)
        p = p * pl.reciprocal(denom, approx=True)
        ctx = jnp.einsum('hqk,hkd->hqd',
                         p.astype(jnp.bfloat16), v.astype(jnp.bfloat16),
                         preferred_element_type=jnp.float32)
        ctx = ctx.transpose(1, 0, 2).reshape(S, D_MODEL)

        attn_out = jnp.dot(ctx.astype(jnp.bfloat16), wo_ref[l],
                           preferred_element_type=jnp.float32) + bo_ref[l]
        x = x + attn_out

        # ---- MLP ----
        h2 = _layer_norm(x, ln2g_ref[l], ln2b_ref[l]).astype(jnp.bfloat16)
        a = jnp.dot(h2, wfc_ref[l], preferred_element_type=jnp.float32) + bfc_ref[l]
        a = _gelu_new(a).astype(jnp.bfloat16)
        mlp = jnp.dot(a, wproj_ref[l], preferred_element_type=jnp.float32) + bproj_ref[l]
        x = x + mlp

    # ---- final LN + tied LM head (pre-transposed (D, V) weight) ----
    hf = _layer_norm(x, lnf_g_ref[...], lnf_b_ref[...]).astype(jnp.bfloat16)
    logits = jnp.dot(hf, wte_t_ref[...], preferred_element_type=jnp.float32)
    o_ref[0] = logits


# -------------------- parameter init (deterministic, synthetic) --------------------
def init_params(key):
    keys = jax.random.split(key, 6)
    wte = 0.02 * jax.random.normal(keys[0], (VOCAB, D_MODEL), jnp.float32)
    return {
        'wte': wte,                                             # f32, for embedding gather
        'wte_t': wte.T.astype(jnp.bfloat16),                    # (D, V) for the LM head matmul
        'wpe': 0.01 * jax.random.normal(keys[1], (MAX_POS, D_MODEL), jnp.float32),
        'ln_f_g': jnp.ones((1, D_MODEL), jnp.float32),
        'ln_f_b': jnp.zeros((1, D_MODEL), jnp.float32),
        # per-layer weights stacked along a leading layer axis
        'ln1_g': jnp.ones((N_LAYER, 1, D_MODEL), jnp.float32),
        'ln1_b': jnp.zeros((N_LAYER, 1, D_MODEL), jnp.float32),
        'w_qkv': (0.02 * jax.random.normal(keys[2], (N_LAYER, D_MODEL, 3 * D_MODEL),
                                           jnp.float32)).astype(jnp.bfloat16),
        'b_qkv': jnp.zeros((N_LAYER, 1, 3 * D_MODEL), jnp.float32),
        'w_o': (0.02 * jax.random.normal(keys[3], (N_LAYER, D_MODEL, D_MODEL),
                                         jnp.float32)).astype(jnp.bfloat16),
        'b_o': jnp.zeros((N_LAYER, 1, D_MODEL), jnp.float32),
        'ln2_g': jnp.ones((N_LAYER, 1, D_MODEL), jnp.float32),
        'ln2_b': jnp.zeros((N_LAYER, 1, D_MODEL), jnp.float32),
        'w_fc': (0.02 * jax.random.normal(keys[4], (N_LAYER, D_MODEL, D_FF),
                                          jnp.float32)).astype(jnp.bfloat16),
        'b_fc': jnp.zeros((N_LAYER, 1, D_FF), jnp.float32),
        'w_proj': (0.02 * jax.random.normal(keys[5], (N_LAYER, D_FF, D_MODEL),
                                            jnp.float32)).astype(jnp.bfloat16),
        'b_proj': jnp.zeros((N_LAYER, 1, D_MODEL), jnp.float32),
    }


# -------------------- full forward (mirrors Gpt2Decoder.forward) --------------------
def gpt2_decoder_forward(params, input_ids, image_embeddings, atten_mask):
    # input_ids: (B, T) int32; image_embeddings: (P, B, D); atten_mask: (B, T) int32
    B, T = input_ids.shape
    P = image_embeddings.shape[0]
    S = P + T
    S_pad = ((S + 7) // 8) * 8
    assert S_pad <= MAX_POS

    wte = params['wte']
    # wte(input_ids) (embedding gather = glue), permute, concat — same as the PyTorch module
    tok_embeds = jnp.take(wte, input_ids, axis=0)                 # (B, T, D)
    img_embeds = jnp.transpose(image_embeddings, (1, 0, 2))       # (B, P, D)
    x = jnp.concatenate([img_embeds, tok_embeds], axis=1)         # (B, S, D)
    full_mask = jnp.concatenate(
        [jnp.ones((B, P), dtype=atten_mask.dtype), atten_mask], axis=1)  # (B, S)

    # pad S -> S_pad (extra key positions masked out; extra query rows sliced off below)
    if S_pad > S:
        x = jnp.pad(x, ((0, 0), (0, S_pad - S), (0, 0)))
        full_mask = jnp.pad(full_mask, ((0, 0), (0, S_pad - S)))

    mask3 = full_mask.astype(jnp.float32)[:, None, :]             # (B, 1, S_pad)
    wpe_s = params['wpe'][:S_pad]                                 # (S_pad, D)

    layer_weights = [params[k] for k in (
        'ln1_g', 'ln1_b', 'w_qkv', 'b_qkv', 'w_o', 'b_o',
        'ln2_g', 'ln2_b', 'w_fc', 'b_fc', 'w_proj', 'b_proj')]
    tail = [params['ln_f_g'], params['ln_f_b'], params['wte_t']]

    def resident(arr):
        nd = arr.ndim
        return pl.BlockSpec(arr.shape, lambda b, _n=nd: (0,) * _n)

    in_specs = [pl.BlockSpec((1, S_pad, D_MODEL), lambda b: (b, 0, 0)),   # x
                pl.BlockSpec((1, 1, S_pad), lambda b: (b, 0, 0)),         # mask
                resident(wpe_s)]
    in_specs += [resident(w) for w in layer_weights + tail]

    logits = pl.pallas_call(
        gpt2_fused_kernel,
        out_shape=jax.ShapeDtypeStruct((B, S_pad, VOCAB), jnp.float32),
        grid=(B,),
        in_specs=in_specs,
        out_specs=pl.BlockSpec((1, S_pad, VOCAB), lambda b: (b, 0, 0)),
        compiler_params=pltpu.CompilerParams(dimension_semantics=("parallel",)),
    )(x, mask3, wpe_s, *layer_weights, *tail)

    return logits[:, :S, :]                                       # (B, S, V)


if __name__ == "__main__":
    key = jax.random.PRNGKey(0)
    pkey, ikey, ekey = jax.random.split(key, 3)

    params = init_params(pkey)

    B, T, P = 2, 8, 4
    input_ids = jax.random.randint(ikey, (B, T), 0, VOCAB, dtype=jnp.int32)
    image_embeddings = jax.random.normal(ekey, (P, B, D_MODEL), jnp.float32)
    atten_mask = jnp.ones((B, T), dtype=jnp.int32)

    logits = gpt2_decoder_forward(params, input_ids, image_embeddings, atten_mask)
    jax.block_until_ready(logits)
    assert logits.shape == (B, P + T, VOCAB), logits.shape
    assert bool(jnp.all(jnp.isfinite(logits)))
    print("KERNEL_OK")
</pallas_src>

<mosaic_0001>
module attributes {stable_mosaic.version = 11 : i64} {
  func.func @gpt2_fused_kernel(%arg0: i32, %arg1: memref<1x16x128xf32, #tpu.memory_space<vmem>>, %arg2: memref<1x1x16xf32, #tpu.memory_space<vmem>>, %arg3: memref<16x128xf32, #tpu.memory_space<vmem>>, %arg4: memref<2x1x128xf32, #tpu.memory_space<vmem>>, %arg5: memref<2x1x128xf32, #tpu.memory_space<vmem>>, %arg6: memref<2x128x384xbf16, #tpu.memory_space<vmem>>, %arg7: memref<2x1x384xf32, #tpu.memory_space<vmem>>, %arg8: memref<2x128x128xbf16, #tpu.memory_space<vmem>>, %arg9: memref<2x1x128xf32, #tpu.memory_space<vmem>>, %arg10: memref<2x1x128xf32, #tpu.memory_space<vmem>>, %arg11: memref<2x1x128xf32, #tpu.memory_space<vmem>>, %arg12: memref<2x128x512xbf16, #tpu.memory_space<vmem>>, %arg13: memref<2x1x512xf32, #tpu.memory_space<vmem>>, %arg14: memref<2x512x128xbf16, #tpu.memory_space<vmem>>, %arg15: memref<2x1x128xf32, #tpu.memory_space<vmem>>, %arg16: memref<1x128xf32, #tpu.memory_space<vmem>>, %arg17: memref<1x128xf32, #tpu.memory_space<vmem>>, %arg18: memref<128x256xbf16, #tpu.memory_space<vmem>>, %arg19: memref<1x16x256xf32, #tpu.memory_space<vmem>>) attributes {dimension_semantics = [#tpu.dimension_semantics<parallel>], iteration_bounds = array<i64: 2>, scalar_prefetch = 0 : i64, scratch_operands = 0 : i64, tpu.core_type = #tpu.core_type<tc>, window_params = [{transform_indices = @transform_0, window_bounds = array<i64: 1, 16, 128>}, {transform_indices = @transform_1, window_bounds = array<i64: 1, 1, 16>}, {pipeline_mode = #tpu.pipeline_mode<synchronous>, transform_indices = @transform_2, window_bounds = array<i64: 16, 128>}, {pipeline_mode = #tpu.pipeline_mode<synchronous>, transform_indices = @transform_3, window_bounds = array<i64: 2, 1, 128>}, {pipeline_mode = #tpu.pipeline_mode<synchronous>, transform_indices = @transform_4, window_bounds = array<i64: 2, 1, 128>}, {pipeline_mode = #tpu.pipeline_mode<synchronous>, transform_indices = @transform_5, window_bounds = array<i64: 2, 128, 384>}, {pipeline_mode = #tpu.pipeline_mode<synchronous>, transform_indices = @transform_6, window_bounds = array<i64: 2, 1, 384>}, {pipeline_mode = #tpu.pipeline_mode<synchronous>, transform_indices = @transform_7, window_bounds = array<i64: 2, 128, 128>}, {pipeline_mode = #tpu.pipeline_mode<synchronous>, transform_indices = @transform_8, window_bounds = array<i64: 2, 1, 128>}, {pipeline_mode = #tpu.pipeline_mode<synchronous>, transform_indices = @transform_9, window_bounds = array<i64: 2, 1, 128>}, {pipeline_mode = #tpu.pipeline_mode<synchronous>, transform_indices = @transform_10, window_bounds = array<i64: 2, 1, 128>}, {pipeline_mode = #tpu.pipeline_mode<synchronous>, transform_indices = @transform_11, window_bounds = array<i64: 2, 128, 512>}, {pipeline_mode = #tpu.pipeline_mode<synchronous>, transform_indices = @transform_12, window_bounds = array<i64: 2, 1, 512>}, {pipeline_mode = #tpu.pipeline_mode<synchronous>, transform_indices = @transform_13, window_bounds = array<i64: 2, 512, 128>}, {pipeline_mode = #tpu.pipeline_mode<synchronous>, transform_indices = @transform_14, window_bounds = array<i64: 2, 1, 128>}, {pipeline_mode = #tpu.pipeline_mode<synchronous>, transform_indices = @transform_15, window_bounds = array<i64: 1, 128>}, {pipeline_mode = #tpu.pipeline_mode<synchronous>, transform_indices = @transform_16, window_bounds = array<i64: 1, 128>}, {pipeline_mode = #tpu.pipeline_mode<synchronous>, transform_indices = @transform_17, window_bounds = array<i64: 128, 256>}, {transform_indices = @transform_18, window_bounds = array<i64: 1, 16, 256>}]} {
    %c0 = arith.constant 0 : index
    %c0_0 = arith.constant 0 : index
    %c0_1 = arith.constant 0 : index
    %0 = vector.load %arg1[%c0, %c0_0, %c0_1] : memref<1x16x128xf32, #tpu.memory_space<vmem>>, vector<1x16x128xf32>
    %1 = vector.shape_cast %0 : vector<1x16x128xf32> to vector<16x128xf32>
    %c0_2 = arith.constant 0 : index
    %c0_3 = arith.constant 0 : index
    %2 = vector.load %arg3[%c0_2, %c0_3] : memref<16x128xf32, #tpu.memory_space<vmem>>, vector<16x128xf32>
    %3 = arith.addf %1, %2 : vector<16x128xf32>
    %c0_4 = arith.constant 0 : index
    %c0_5 = arith.constant 0 : index
    %c0_6 = arith.constant 0 : index
    %4 = vector.load %arg2[%c0_4, %c0_5, %c0_6] : memref<1x1x16xf32, #tpu.memory_space<vmem>>, vector<1x1x16xf32>
    %5 = vector.shape_cast %4 : vector<1x1x16xf32> to vector<1x16xf32>
    %6 = tpu.iota {dimensions = array<i32: 0>} : vector<16x16xi32>
    %7 = tpu.iota {dimensions = array<i32: 1>} : vector<16x16xi32>
    %8 = arith.cmpi sge, %6, %7 : vector<16x16xi32>
    %cst = arith.constant 5.000000e-01 : f32
    %9 = vector.broadcast %cst : f32 to vector<1x16xf32>
    %10 = arith.cmpf ogt, %5, %9 : vector<1x16xf32>
    %11 = vector.broadcast %10 : vector<1x16xi1> to vector<16x16xi1>
    %12 = arith.andi %8, %11 : vector<16x16xi1>
    %cst_7 = arith.constant 0.000000e+00 : f32
    %cst_8 = arith.constant -1.000000e+09 : f32
    %13 = vector.broadcast %cst_7 : f32 to vector<16x16xf32>
    %14 = vector.broadcast %cst_8 : f32 to vector<16x16xf32>
    %15 = arith.select %12, %13, %14 : vector<16x16xi1>, vector<16x16xf32>
    %c0_9 = arith.constant 0 : index
    %c0_10 = arith.constant 0 : index
    %c0_11 = arith.constant 0 : index
    %16 = vector.load %arg4[%c0_9, %c0_10, %c0_11] : memref<2x1x128xf32, #tpu.memory_space<vmem>>, vector<1x1x128xf32>
    %17 = vector.shape_cast %16 : vector<1x1x128xf32> to vector<1x128xf32>
    %c0_12 = arith.constant 0 : index
    %c0_13 = arith.constant 0 : index
    %c0_14 = arith.constant 0 : index
    %18 = vector.load %arg5[%c0_12, %c0_13, %c0_14] : memref<2x1x128xf32, #tpu.memory_space<vmem>>, vector<1x1x128xf32>
    %19 = vector.shape_cast %18 : vector<1x1x128xf32> to vector<1x128xf32>
    %cst_15 = arith.constant dense<0.000000e+00> : vector<16xf32>
    %20 = vector.multi_reduction <add>, %3, %cst_15 [1] : vector<16x128xf32> to vector<16xf32>
    %21 = vector.shape_cast %20 : vector<16xf32> to vector<16x1xf32>
    %cst_16 = arith.constant 1.280000e+02 : f32
    %22 = vector.broadcast %cst_16 : f32 to vector<16x1xf32>
    %23 = arith.divf %21, %22 : vector<16x1xf32>
    %24 = vector.broadcast %23 : vector<16x1xf32> to vector<16x128xf32>
    %25 = arith.subf %3, %24 : vector<16x128xf32>
    %26 = arith.mulf %25, %25 : vector<16x128xf32>
    %cst_17 = arith.constant dense<0.000000e+00> : vector<16xf32>
    %27 = vector.multi_reduction <add>, %26, %cst_17 [1] : vector<16x128xf32> to vector<16xf32>
    %28 = vector.shape_cast %27 : vector<16xf32> to vector<16x1xf32>
    %cst_18 = arith.constant 1.280000e+02 : f32
    %29 = vector.broadcast %cst_18 : f32 to vector<16x1xf32>
    %30 = arith.divf %28, %29 : vector<16x1xf32>
    %31 = vector.broadcast %23 : vector<16x1xf32> to vector<16x128xf32>
    %32 = arith.subf %3, %31 : vector<16x128xf32>
    %cst_19 = arith.constant 9.99999974E-6 : f32
    %33 = vector.broadcast %cst_19 : f32 to vector<16x1xf32>
    %34 = arith.addf %30, %33 : vector<16x1xf32>
    %35 = math.rsqrt %34 : vector<16x1xf32>
    %36 = vector.broadcast %35 : vector<16x1xf32> to vector<16x128xf32>
    %37 = arith.mulf %32, %36 : vector<16x128xf32>
    %38 = vector.broadcast %17 : vector<1x128xf32> to vector<16x128xf32>
    %39 = arith.mulf %37, %38 : vector<16x128xf32>
    %40 = vector.broadcast %19 : vector<1x128xf32> to vector<16x128xf32>
    %41 = arith.addf %39, %40 : vector<16x128xf32>
    %42 = arith.truncf %41 : vector<16x128xf32> to vector<16x128xbf16>
    %c0_20 = arith.constant 0 : index
    %c0_21 = arith.constant 0 : index
    %c0_22 = arith.constant 0 : index
    %43 = vector.load %arg6[%c0_20, %c0_21, %c0_22] : memref<2x128x384xbf16, #tpu.memory_space<vmem>>, vector<1x128x384xbf16>
    %44 = vector.shape_cast %43 : vector<1x128x384xbf16> to vector<128x384xbf16>
    %cst_23 = arith.constant dense<0.000000e+00> : vector<16x384xf32>
    %45 = tpu.matmul %42, %44, %cst_23 {dimension_numbers = #tpu.dot_dimension_numbers<[1], [0], [0], [1], [0, 0, 1, 1], [], []>} : vector<16x128xbf16>, vector<128x384xbf16>, vector<16x384xf32> -> vector<16x384xf32>
    %c0_24 = arith.constant 0 : index
    %c0_25 = arith.constant 0 : index
    %c0_26 = arith.constant 0 : index
    %46 = vector.load %arg7[%c0_24, %c0_25, %c0_26] : memref<2x1x384xf32, #tpu.memory_space<vmem>>, vector<1x1x384xf32>
    %47 = vector.shape_cast %46 : vector<1x1x384xf32> to vector<1x384xf32>
    %48 = vector.broadcast %47 : vector<1x384xf32> to vector<16x384xf32>
    %49 = arith.addf %45, %48 : vector<16x384xf32>
    %50 = vector.extract_strided_slice %49 {offsets = [0, 0], sizes = [16, 128], strides = [1, 1]} : vector<16x384xf32> to vector<16x128xf32>
    %51 = vector.shape_cast %50 : vector<16x128xf32> to vector<16x4x32xf32>
    %52 = tpu.transpose %51, [1, 0, 2] : vector<16x4x32xf32> -> vector<4x16x32xf32>
    %53 = vector.extract_strided_slice %49 {offsets = [0, 128], sizes = [16, 128], strides = [1, 1]} : vector<16x384xf32> to vector<16x128xf32>
    %54 = vector.shape_cast %53 : vector<16x128xf32> to vector<16x4x32xf32>
    %55 = tpu.transpose %54, [1, 0, 2] : vector<16x4x32xf32> -> vector<4x16x32xf32>
    %56 = vector.extract_strided_slice %49 {offsets = [0, 256], sizes = [16, 128], strides = [1, 1]} : vector<16x384xf32> to vector<16x128xf32>
    %57 = vector.shape_cast %56 : vector<16x128xf32> to vector<16x4x32xf32>
    %58 = tpu.transpose %57, [1, 0, 2] : vector<16x4x32xf32> -> vector<4x16x32xf32>
    %59 = arith.truncf %52 : vector<4x16x32xf32> to vector<4x16x32xbf16>
    %60 = arith.truncf %55 : vector<4x16x32xf32> to vector<4x16x32xbf16>
    "tpu.trace_start"() <{level = 10 : i32, message = "hqd,hkd->hqk"}> : () -> ()
    %cst_27 = arith.constant dense<0.000000e+00> : vector<4x16x16xf32>
    %61 = tpu.matmul %59, %60, %cst_27 {dimension_numbers = #tpu.dot_dimension_numbers<[2], [2], [1], [1], [0, 0, 0, 1, 1, 1], [0], [0]>} : vector<4x16x32xbf16>, vector<4x16x32xbf16>, vector<4x16x16xf32> -> vector<4x16x16xf32>
    "tpu.trace_stop"() : () -> ()
    %cst_28 = arith.constant 0.176776692 : f32
    %62 = vector.broadcast %cst_28 : f32 to vector<4x16x16xf32>
    %63 = arith.mulf %61, %62 : vector<4x16x16xf32>
    %64 = vector.shape_cast %15 : vector<16x16xf32> to vector<1x16x16xf32>
    %65 = vector.broadcast %64 : vector<1x16x16xf32> to vector<4x16x16xf32>
    %66 = arith.addf %63, %65 : vector<4x16x16xf32>
    %cst_29 = arith.constant dense<0xFF800000> : vector<4x16xf32>
    %67 = vector.multi_reduction <maximumf>, %66, %cst_29 [2] : vector<4x16x16xf32> to vector<4x16xf32>
    %68 = vector.shape_cast %67 : vector<4x16xf32> to vector<4x16x1xf32>
    %69 = vector.broadcast %68 : vector<4x16x1xf32> to vector<4x16x16xf32>
    %70 = arith.subf %66, %69 : vector<4x16x16xf32>
    %71 = math.exp %70 : vector<4x16x16xf32>
    %cst_30 = arith.constant dense<0.000000e+00> : vector<4x16xf32>
    %72 = vector.multi_reduction <add>, %71, %cst_30 [2] : vector<4x16x16xf32> to vector<4x16xf32>
    %73 = vector.shape_cast %72 : vector<4x16xf32> to vector<4x16x1xf32>
    %74 = tpu.reciprocal %73 {approx = true} : vector<4x16x1xf32> -> vector<4x16x1xf32>
    %75 = vector.broadcast %74 : vector<4x16x1xf32> to vector<4x16x16xf32>
    %76 = arith.mulf %71, %75 : vector<4x16x16xf32>
    %77 = arith.truncf %76 : vector<4x16x16xf32> to vector<4x16x16xbf16>
    %78 = arith.truncf %58 : vector<4x16x32xf32> to vector<4x16x32xbf16>
    "tpu.trace_start"() <{level = 10 : i32, message = "hqk,hkd->hqd"}> : () -> ()
    %cst_31 = arith.constant dense<0.000000e+00> : vector<4x16x32xf32>
    %79 = tpu.matmul %77, %78, %cst_31 {dimension_numbers = #tpu.dot_dimension_numbers<[2], [1], [1], [2], [0, 0, 0, 1, 1, 2], [0], [0]>} : vector<4x16x16xbf16>, vector<4x16x32xbf16>, vector<4x16x32xf32> -> vector<4x16x32xf32>
    "tpu.trace_stop"() : () -> ()
    %80 = tpu.transpose %79, [1, 0, 2] : vector<4x16x32xf32> -> vector<16x4x32xf32>
    %81 = vector.shape_cast %80 : vector<16x4x32xf32> to vector<16x128xf32>
    %82 = arith.truncf %81 : vector<16x128xf32> to vector<16x128xbf16>
    %c0_32 = arith.constant 0 : index
    %c0_33 = arith.constant 0 : index
    %c0_34 = arith.constant 0 : index
    %83 = vector.load %arg8[%c0_32, %c0_33, %c0_34] : memref<2x128x128xbf16, #tpu.memory_space<vmem>>, vector<1x128x128xbf16>
    %84 = vector.shape_cast %83 : vector<1x128x128xbf16> to vector<128x128xbf16>
    %cst_35 = arith.constant dense<0.000000e+00> : vector<16x128xf32>
    %85 = tpu.matmul %82, %84, %cst_35 {dimension_numbers = #tpu.dot_dimension_numbers<[1], [0], [0], [1], [0, 0, 1, 1], [], []>} : vector<16x128xbf16>, vector<128x128xbf16>, vector<16x128xf32> -> vector<16x128xf32>
    %c0_36 = arith.constant 0 : index
    %c0_37 = arith.constant 0 : index
    %c0_38 = arith.constant 0 : index
    %86 = vector.load %arg9[%c0_36, %c0_37, %c0_38] : memref<2x1x128xf32, #tpu.memory_space<vmem>>, vector<1x1x128xf32>
    %87 = vector.shape_cast %86 : vector<1x1x128xf32> to vector<1x128xf32>
    %88 = vector.broadcast %87 : vector<1x128xf32> to vector<16x128xf32>
    %89 = arith.addf %85, %88 : vector<16x128xf32>
    %90 = arith.addf %3, %89 : vector<16x128xf32>
    %c0_39 = arith.constant 0 : index
    %c0_40 = arith.constant 0 : index
    %c0_41 = arith.constant 0 : index
    %91 = vector.load %arg10[%c0_39, %c0_40, %c0_41] : memref<2x1x128xf32, #tpu.memory_space<vmem>>, vector<1x1x128xf32>
    %92 = vector.shape_cast %91 : vector<1x1x128xf32> to vector<1x128xf32>
    %c0_42 = arith.constant 0 : index
    %c0_43 = arith.constant 0 : index
    %c0_44 = arith.constant 0 : index
    %93 = vector.load %arg11[%c0_42, %c0_43, %c0_44] : memref<2x1x128xf32, #tpu.memory_space<vmem>>, vector<1x1x128xf32>
    %94 = vector.shape_cast %93 : vector<1x1x128xf32> to vector<1x128xf32>
    %cst_45 = arith.constant dense<0.000000e+00> : vector<16xf32>
    %95 = vector.multi_reduction <add>, %90, %cst_45 [1] : vector<16x128xf32> to vector<16xf32>
    %96 = vector.shape_cast %95 : vector<16xf32> to vector<16x1xf32>
    %cst_46 = arith.constant 1.280000e+02 : f32
    %97 = vector.broadcast %cst_46 : f32 to vector<16x1xf32>
    %98 = arith.divf %96, %97 : vector<16x1xf32>
    %99 = vector.broadcast %98 : vector<16x1xf32> to vector<16x128xf32>
    %100 = arith.subf %90, %99 : vector<16x128xf32>
    %101 = arith.mulf %100, %100 : vector<16x128xf32>
    %cst_47 = arith.constant dense<0.000000e+00> : vector<16xf32>
    %102 = vector.multi_reduction <add>, %101, %cst_47 [1] : vector<16x128xf32> to vector<16xf32>
    %103 = vector.shape_cast %102 : vector<16xf32> to vector<16x1xf32>
    %cst_48 = arith.constant 1.280000e+02 : f32
    %104 = vector.broadcast %cst_48 : f32 to vector<16x1xf32>
    %105 = arith.divf %103, %104 : vector<16x1xf32>
    %106 = vector.broadcast %98 : vector<16x1xf32> to vector<16x128xf32>
    %107 = arith.subf %90, %106 : vector<16x128xf32>
    %cst_49 = arith.constant 9.99999974E-6 : f32
    %108 = vector.broadcast %cst_49 : f32 to vector<16x1xf32>
    %109 = arith.addf %105, %108 : vector<16x1xf32>
    %110 = math.rsqrt %109 : vector<16x1xf32>
    %111 = vector.broadcast %110 : vector<16x1xf32> to vector<16x128xf32>
    %112 = arith.mulf %107, %111 : vector<16x128xf32>
    %113 = vector.broadcast %92 : vector<1x128xf32> to vector<16x128xf32>
    %114 = arith.mulf %112, %113 : vector<16x128xf32>
    %115 = vector.broadcast %94 : vector<1x128xf32> to vector<16x128xf32>
    %116 = arith.addf %114, %115 : vector<16x128xf32>
    %117 = arith.truncf %116 : vector<16x128xf32> to vector<16x128xbf16>
    %c0_50 = arith.constant 0 : index
    %c0_51 = arith.constant 0 : index
    %c0_52 = arith.constant 0 : index
    %118 = vector.load %arg12[%c0_50, %c0_51, %c0_52] : memref<2x128x512xbf16, #tpu.memory_space<vmem>>, vector<1x128x512xbf16>
    %119 = vector.shape_cast %118 : vector<1x128x512xbf16> to vector<128x512xbf16>
    %cst_53 = arith.constant dense<0.000000e+00> : vector<16x512xf32>
    %120 = tpu.matmul %117, %119, %cst_53 {dimension_numbers = #tpu.dot_dimension_numbers<[1], [0], [0], [1], [0, 0, 1, 1], [], []>} : vector<16x128xbf16>, vector<128x512xbf16>, vector<16x512xf32> -> vector<16x512xf32>
    %c0_54 = arith.constant 0 : index
    %c0_55 = arith.constant 0 : index
    %c0_56 = arith.constant 0 : index
    %121 = vector.load %arg13[%c0_54, %c0_55, %c0_56] : memref<2x1x512xf32, #tpu.memory_space<vmem>>, vector<1x1x512xf32>
    %122 = vector.shape_cast %121 : vector<1x1x512xf32> to vector<1x512xf32>
    %123 = vector.broadcast %122 : vector<1x512xf32> to vector<16x512xf32>
    %124 = arith.addf %120, %123 : vector<16x512xf32>
    %cst_57 = arith.constant 5.000000e-01 : f32
    %125 = vector.broadcast %cst_57 : f32 to vector<16x512xf32>
    %126 = arith.mulf %125, %124 : vector<16x512xf32>
    %cst_58 = arith.constant 4.471500e-02 : f32
    %127 = vector.broadcast %cst_58 : f32 to vector<16x512xf32>
    %128 = arith.mulf %127, %124 : vector<16x512xf32>
    %129 = arith.mulf %128, %124 : vector<16x512xf32>
    %130 = arith.mulf %129, %124 : vector<16x512xf32>
    %131 = arith.addf %124, %130 : vector<16x512xf32>
    %cst_59 = arith.constant 0.797884583 : f32
    %132 = vector.broadcast %cst_59 : f32 to vector<16x512xf32>
    %133 = arith.mulf %132, %131 : vector<16x512xf32>
    %134 = math.tanh %133 : vector<16x512xf32>
    %cst_60 = arith.constant 1.000000e+00 : f32
    %135 = vector.broadcast %cst_60 : f32 to vector<16x512xf32>
    %136 = arith.addf %135, %134 : vector<16x512xf32>
    %137 = arith.mulf %126, %136 : vector<16x512xf32>
    %138 = arith.truncf %137 : vector<16x512xf32> to vector<16x512xbf16>
    %c0_61 = arith.constant 0 : index
    %c0_62 = arith.constant 0 : index
    %c0_63 = arith.constant 0 : index
    %139 = vector.load %arg14[%c0_61, %c0_62, %c0_63] : memref<2x512x128xbf16, #tpu.memory_space<vmem>>, vector<1x512x128xbf16>
    %140 = vector.shape_cast %139 : vector<1x512x128xbf16> to vector<512x128xbf16>
    %cst_64 = arith.constant dense<0.000000e+00> : vector<16x128xf32>
    %141 = tpu.matmul %138, %140, %cst_64 {dimension_numbers = #tpu.dot_dimension_numbers<[1], [0], [0], [1], [0, 0, 1, 1], [], []>} : vector<16x512xbf16>, vector<512x128xbf16>, vector<16x128xf32> -> vector<16x128xf32>
    %c0_65 = arith.constant 0 : index
    %c0_66 = arith.constant 0 : index
    %c0_67 = arith.constant 0 : index
    %142 = vector.load %arg15[%c0_65, %c0_66, %c0_67] : memref<2x1x128xf32, #tpu.memory_space<vmem>>, vector<1x1x128xf32>
    %143 = vector.shape_cast %142 : vector<1x1x128xf32> to vector<1x128xf32>
    %144 = vector.broadcast %143 : vector<1x128xf32> to vector<16x128xf32>
    %145 = arith.addf %141, %144 : vector<16x128xf32>
    %146 = arith.addf %90, %145 : vector<16x128xf32>
    %c1 = arith.constant 1 : index
    %c0_68 = arith.constant 0 : index
    %c0_69 = arith.constant 0 : index
    %147 = vector.load %arg4[%c1, %c0_68, %c0_69] : memref<2x1x128xf32, #tpu.memory_space<vmem>>, vector<1x1x128xf32>
    %148 = vector.shape_cast %147 : vector<1x1x128xf32> to vector<1x128xf32>
    %c1_70 = arith.constant 1 : index
    %c0_71 = arith.constant 0 : index
    %c0_72 = arith.constant 0 : index
    %149 = vector.load %arg5[%c1_70, %c0_71, %c0_72] : memref<2x1x128xf32, #tpu.memory_space<vmem>>, vector<1x1x128xf32>
    %150 = vector.shape_cast %149 : vector<1x1x128xf32> to vector<1x128xf32>
    %cst_73 = arith.constant dense<0.000000e+00> : vector<16xf32>
    %151 = vector.multi_reduction <add>, %146, %cst_73 [1] : vector<16x128xf32> to vector<16xf32>
    %152 = vector.shape_cast %151 : vector<16xf32> to vector<16x1xf32>
    %cst_74 = arith.constant 1.280000e+02 : f32
    %153 = vector.broadcast %cst_74 : f32 to vector<16x1xf32>
    %154 = arith.divf %152, %153 : vector<16x1xf32>
    %155 = vector.broadcast %154 : vector<16x1xf32> to vector<16x128xf32>
    %156 = arith.subf %146, %155 : vector<16x128xf32>
    %157 = arith.mulf %156, %156 : vector<16x128xf32>
    %cst_75 = arith.constant dense<0.000000e+00> : vector<16xf32>
    %158 = vector.multi_reduction <add>, %157, %cst_75 [1] : vector<16x128xf32> to vector<16xf32>
    %159 = vector.shape_cast %158 : vector<16xf32> to vector<16x1xf32>
    %cst_76 = arith.constant 1.280000e+02 : f32
    %160 = vector.broadcast %cst_76 : f32 to vector<16x1xf32>
    %161 = arith.divf %159, %160 : vector<16x1xf32>
    %162 = vector.broadcast %154 : vector<16x1xf32> to vector<16x128xf32>
    %163 = arith.subf %146, %162 : vector<16x128xf32>
    %cst_77 = arith.constant 9.99999974E-6 : f32
    %164 = vector.broadcast %cst_77 : f32 to vector<16x1xf32>
    %165 = arith.addf %161, %164 : vector<16x1xf32>
    %166 = math.rsqrt %165 : vector<16x1xf32>
    %167 = vector.broadcast %166 : vector<16x1xf32> to vector<16x128xf32>
    %168 = arith.mulf %163, %167 : vector<16x128xf32>
    %169 = vector.broadcast %148 : vector<1x128xf32> to vector<16x128xf32>
    %170 = arith.mulf %168, %169 : vector<16x128xf32>
    %171 = vector.broadcast %150 : vector<1x128xf32> to vector<16x128xf32>
    %172 = arith.addf %170, %171 : vector<16x128xf32>
    %173 = arith.truncf %172 : vector<16x128xf32> to vector<16x128xbf16>
    %c1_78 = arith.constant 1 : index
    %c0_79 = arith.constant 0 : index
    %c0_80 = arith.constant 0 : index
    %174 = vector.load %arg6[%c1_78, %c0_79, %c0_80] : memref<2x128x384xbf16, #tpu.memory_space<vmem>>, vector<1x128x384xbf16>
    %175 = vector.shape_cast %174 : vector<1x128x384xbf16> to vector<128x384xbf16>
    %cst_81 = arith.constant dense<0.000000e+00> : vector<16x384xf32>
    %176 = tpu.matmul %173, %175, %cst_81 {dimension_numbers = #tpu.dot_dimension_numbers<[1], [0], [0], [1], [0, 0, 1, 1], [], []>} : vector<16x128xbf16>, vector<128x384xbf16>, vector<16x384xf32> -> vector<16x384xf32>
    %c1_82 = arith.constant 1 : index
    %c0_83 = arith.constant 0 : index
    %c0_84 = arith.constant 0 : index
    %177 = vector.load %arg7[%c1_82, %c0_83, %c0_84] : memref<2x1x384xf32, #tpu.memory_space<vmem>>, vector<1x1x384xf32>
    %178 = vector.shape_cast %177 : vector<1x1x384xf32> to vector<1x384xf32>
    %179 = vector.broadcast %178 : vector<1x384xf32> to vector<16x384xf32>
    %180 = arith.addf %176, %179 : vector<16x384xf32>
    %181 = vector.extract_strided_slice %180 {offsets = [0, 0], sizes = [16, 128], strides = [1, 1]} : vector<16x384xf32> to vector<16x128xf32>
    %182 = vector.shape_cast %181 : vector<16x128xf32> to vector<16x4x32xf32>
    %183 = tpu.transpose %182, [1, 0, 2] : vector<16x4x32xf32> -> vector<4x16x32xf32>
    %184 = vector.extract_strided_slice %180 {offsets = [0, 128], sizes = [16, 128], strides = [1, 1]} : vector<16x384xf32> to vector<16x128xf32>
    %185 = vector.shape_cast %184 : vector<16x128xf32> to vector<16x4x32xf32>
    %186 = tpu.transpose %185, [1, 0, 2] : vector<16x4x32xf32> -> vector<4x16x32xf32>
    %187 = vector.extract_strided_slice %180 {offsets = [0, 256], sizes = [16, 128], strides = [1, 1]} : vector<16x384xf32> to vector<16x128xf32>
    %188 = vector.shape_cast %187 : vector<16x128xf32> to vector<16x4x32xf32>
    %189 = tpu.transpose %188, [1, 0, 2] : vector<16x4x32xf32> -> vector<4x16x32xf32>
    %190 = arith.truncf %183 : vector<4x16x32xf32> to vector<4x16x32xbf16>
    %191 = arith.truncf %186 : vector<4x16x32xf32> to vector<4x16x32xbf16>
    "tpu.trace_start"() <{level = 10 : i32, message = "hqd,hkd->hqk"}> : () -> ()
    %cst_85 = arith.constant dense<0.000000e+00> : vector<4x16x16xf32>
    %192 = tpu.matmul %190, %191, %cst_85 {dimension_numbers = #tpu.dot_dimension_numbers<[2], [2], [1], [1], [0, 0, 0, 1, 1, 1], [0], [0]>} : vector<4x16x32xbf16>, vector<4x16x32xbf16>, vector<4x16x16xf32> -> vector<4x16x16xf32>
    "tpu.trace_stop"() : () -> ()
    %cst_86 = arith.constant 0.176776692 : f32
    %193 = vector.broadcast %cst_86 : f32 to vector<4x16x16xf32>
    %194 = arith.mulf %192, %193 : vector<4x16x16xf32>
    %195 = vector.shape_cast %15 : vector<16x16xf32> to vector<1x16x16xf32>
    %196 = vector.broadcast %195 : vector<1x16x16xf32> to vector<4x16x16xf32>
    %197 = arith.addf %194, %196 : vector<4x16x16xf32>
    %cst_87 = arith.constant dense<0xFF800000> : vector<4x16xf32>
    %198 = vector.multi_reduction <maximumf>, %197, %cst_87 [2] : vector<4x16x16xf32> to vector<4x16xf32>
    %199 = vector.shape_cast %198 : vector<4x16xf32> to vector<4x16x1xf32>
    %200 = vector.broadcast %199 : vector<4x16x1xf32> to vector<4x16x16xf32>
    %201 = arith.subf %197, %200 : vector<4x16x16xf32>
    %202 = math.exp %201 : vector<4x16x16xf32>
    %cst_88 = arith.constant dense<0.000000e+00> : vector<4x16xf32>
    %203 = vector.multi_reduction <add>, %202, %cst_88 [2] : vector<4x16x16xf32> to vector<4x16xf32>
    %204 = vector.shape_cast %203 : vector<4x16xf32> to vector<4x16x1xf32>
    %205 = tpu.reciprocal %204 {approx = true} : vector<4x16x1xf32> -> vector<4x16x1xf32>
    %206 = vector.broadcast %205 : vector<4x16x1xf32> to vector<4x16x16xf32>
    %207 = arith.mulf %202, %206 : vector<4x16x16xf32>
    %208 = arith.truncf %207 : vector<4x16x16xf32> to vector<4x16x16xbf16>
    %209 = arith.truncf %189 : vector<4x16x32xf32> to vector<4x16x32xbf16>
    "tpu.trace_start"() <{level = 10 : i32, message = "hqk,hkd->hqd"}> : () -> ()
    %cst_89 = arith.constant dense<0.000000e+00> : vector<4x16x32xf32>
    %210 = tpu.matmul %208, %209, %cst_89 {dimension_numbers = #tpu.dot_dimension_numbers<[2], [1], [1], [2], [0, 0, 0, 1, 1, 2], [0], [0]>} : vector<4x16x16xbf16>, vector<4x16x32xbf16>, vector<4x16x32xf32> -> vector<4x16x32xf32>
    "tpu.trace_stop"() : () -> ()
    %211 = tpu.transpose %210, [1, 0, 2] : vector<4x16x32xf32> -> vector<16x4x32xf32>
    %212 = vector.shape_cast %211 : vector<16x4x32xf32> to vector<16x128xf32>
    %213 = arith.truncf %212 : vector<16x128xf32> to vector<16x128xbf16>
    %c1_90 = arith.constant 1 : index
    %c0_91 = arith.constant 0 : index
    %c0_92 = arith.constant 0 : index
    %214 = vector.load %arg8[%c1_90, %c0_91, %c0_92] : memref<2x128x128xbf16, #tpu.memory_space<vmem>>, vector<1x128x128xbf16>
    %215 = vector.shape_cast %214 : vector<1x128x128xbf16> to vector<128x128xbf16>
    %cst_93 = arith.constant dense<0.000000e+00> : vector<16x128xf32>
    %216 = tpu.matmul %213, %215, %cst_93 {dimension_numbers = #tpu.dot_dimension_numbers<[1], [0], [0], [1], [0, 0, 1, 1], [], []>} : vector<16x128xbf16>, vector<128x128xbf16>, vector<16x128xf32> -> vector<16x128xf32>
    %c1_94 = arith.constant 1 : index
    %c0_95 = arith.constant 0 : index
    %c0_96 = arith.constant 0 : index
    %217 = vector.load %arg9[%c1_94, %c0_95, %c0_96] : memref<2x1x128xf32, #tpu.memory_space<vmem>>, vector<1x1x128xf32>
    %218 = vector.shape_cast %217 : vector<1x1x128xf32> to vector<1x128xf32>
    %219 = vector.broadcast %218 : vector<1x128xf32> to vector<16x128xf32>
    %220 = arith.addf %216, %219 : vector<16x128xf32>
    %221 = arith.addf %146, %220 : vector<16x128xf32>
    %c1_97 = arith.constant 1 : index
    %c0_98 = arith.constant 0 : index
    %c0_99 = arith.constant 0 : index
    %222 = vector.load %arg10[%c1_97, %c0_98, %c0_99] : memref<2x1x128xf32, #tpu.memory_space<vmem>>, vector<1x1x128xf32>
    %223 = vector.shape_cast %222 : vector<1x1x128xf32> to vector<1x128xf32>
    %c1_100 = arith.constant 1 : index
    %c0_101 = arith.constant 0 : index
    %c0_102 = arith.constant 0 : index
    %224 = vector.load %arg11[%c1_100, %c0_101, %c0_102] : memref<2x1x128xf32, #tpu.memory_space<vmem>>, vector<1x1x128xf32>
    %225 = vector.shape_cast %224 : vector<1x1x128xf32> to vector<1x128xf32>
    %cst_103 = arith.constant dense<0.000000e+00> : vector<16xf32>
    %226 = vector.multi_reduction <add>, %221, %cst_103 [1] : vector<16x128xf32> to vector<16xf32>
    %227 = vector.shape_cast %226 : vector<16xf32> to vector<16x1xf32>
    %cst_104 = arith.constant 1.280000e+02 : f32
    %228 = vector.broadcast %cst_104 : f32 to vector<16x1xf32>
    %229 = arith.divf %227, %228 : vector<16x1xf32>
    %230 = vector.broadcast %229 : vector<16x1xf32> to vector<16x128xf32>
    %231 = arith.subf %221, %230 : vector<16x128xf32>
    %232 = arith.mulf %231, %231 : vector<16x128xf32>
    %cst_105 = arith.constant dense<0.000000e+00> : vector<16xf32>
    %233 = vector.multi_reduction <add>, %232, %cst_105 [1] : vector<16x128xf32> to vector<16xf32>
    %234 = vector.shape_cast %233 : vector<16xf32> to vector<16x1xf32>
    %cst_106 = arith.constant 1.280000e+02 : f32
    %235 = vector.broadcast %cst_106 : f32 to vector<16x1xf32>
    %236 = arith.divf %234, %235 : vector<16x1xf32>
    %237 = vector.broadcast %229 : vector<16x1xf32> to vector<16x128xf32>
    %238 = arith.subf %221, %237 : vector<16x128xf32>
    %cst_107 = arith.constant 9.99999974E-6 : f32
    %239 = vector.broadcast %cst_107 : f32 to vector<16x1xf32>
    %240 = arith.addf %236, %239 : vector<16x1xf32>
    %241 = math.rsqrt %240 : vector<16x1xf32>
    %242 = vector.broadcast %241 : vector<16x1xf32> to vector<16x128xf32>
    %243 = arith.mulf %238, %242 : vector<16x128xf32>
    %244 = vector.broadcast %223 : vector<1x128xf32> to vector<16x128xf32>
    %245 = arith.mulf %243, %244 : vector<16x128xf32>
    %246 = vector.broadcast %225 : vector<1x128xf32> to vector<16x128xf32>
    %247 = arith.addf %245, %246 : vector<16x128xf32>
    %248 = arith.truncf %247 : vector<16x128xf32> to vector<16x128xbf16>
    %c1_108 = arith.constant 1 : index
    %c0_109 = arith.constant 0 : index
    %c0_110 = arith.constant 0 : index
    %249 = vector.load %arg12[%c1_108, %c0_109, %c0_110] : memref<2x128x512xbf16, #tpu.memory_space<vmem>>, vector<1x128x512xbf16>
    %250 = vector.shape_cast %249 : vector<1x128x512xbf16> to vector<128x512xbf16>
    %cst_111 = arith.constant dense<0.000000e+00> : vector<16x512xf32>
    %251 = tpu.matmul %248, %250, %cst_111 {dimension_numbers = #tpu.dot_dimension_numbers<[1], [0], [0], [1], [0, 0, 1, 1], [], []>} : vector<16x128xbf16>, vector<128x512xbf16>, vector<16x512xf32> -> vector<16x512xf32>
    %c1_112 = arith.constant 1 : index
    %c0_113 = arith.constant 0 : index
    %c0_114 = arith.constant 0 : index
    %252 = vector.load %arg13[%c1_112, %c0_113, %c0_114] : memref<2x1x512xf32, #tpu.memory_space<vmem>>, vector<1x1x512xf32>
    %253 = vector.shape_cast %252 : vector<1x1x512xf32> to vector<1x512xf32>
    %254 = vector.broadcast %253 : vector<1x512xf32> to vector<16x512xf32>
    %255 = arith.addf %251, %254 : vector<16x512xf32>
    %cst_115 = arith.constant 5.000000e-01 : f32
    %256 = vector.broadcast %cst_115 : f32 to vector<16x512xf32>
    %257 = arith.mulf %256, %255 : vector<16x512xf32>
    %cst_116 = arith.constant 4.471500e-02 : f32
    %258 = vector.broadcast %cst_116 : f32 to vector<16x512xf32>
    %259 = arith.mulf %258, %255 : vector<16x512xf32>
    %260 = arith.mulf %259, %255 : vector<16x512xf32>
    %261 = arith.mulf %260, %255 : vector<16x512xf32>
    %262 = arith.addf %255, %261 : vector<16x512xf32>
    %cst_117 = arith.constant 0.797884583 : f32
    %263 = vector.broadcast %cst_117 : f32 to vector<16x512xf32>
    %264 = arith.mulf %263, %262 : vector<16x512xf32>
    %265 = math.tanh %264 : vector<16x512xf32>
    %cst_118 = arith.constant 1.000000e+00 : f32
    %266 = vector.broadcast %cst_118 : f32 to vector<16x512xf32>
    %267 = arith.addf %266, %265 : vector<16x512xf32>
    %268 = arith.mulf %257, %267 : vector<16x512xf32>
    %269 = arith.truncf %268 : vector<16x512xf32> to vector<16x512xbf16>
    %c1_119 = arith.constant 1 : index
    %c0_120 = arith.constant 0 : index
    %c0_121 = arith.constant 0 : index
    %270 = vector.load %arg14[%c1_119, %c0_120, %c0_121] : memref<2x512x128xbf16, #tpu.memory_space<vmem>>, vector<1x512x128xbf16>
    %271 = vector.shape_cast %270 : vector<1x512x128xbf16> to vector<512x128xbf16>
    %cst_122 = arith.constant dense<0.000000e+00> : vector<16x128xf32>
    %272 = tpu.matmul %269, %271, %cst_122 {dimension_numbers = #tpu.dot_dimension_numbers<[1], [0], [0], [1], [0, 0, 1, 1], [], []>} : vector<16x512xbf16>, vector<512x128xbf16>, vector<16x128xf32> -> vector<16x128xf32>
    %c1_123 = arith.constant 1 : index
    %c0_124 = arith.constant 0 : index
    %c0_125 = arith.constant 0 : index
    %273 = vector.load %arg15[%c1_123, %c0_124, %c0_125] : memref<2x1x128xf32, #tpu.memory_space<vmem>>, vector<1x1x128xf32>
    %274 = vector.shape_cast %273 : vector<1x1x128xf32> to vector<1x128xf32>
    %275 = vector.broadcast %274 : vector<1x128xf32> to vector<16x128xf32>
    %276 = arith.addf %272, %275 : vector<16x128xf32>
    %277 = arith.addf %221, %276 : vector<16x128xf32>
    %c0_126 = arith.constant 0 : index
    %c0_127 = arith.constant 0 : index
    %278 = vector.load %arg16[%c0_126, %c0_127] : memref<1x128xf32, #tpu.memory_space<vmem>>, vector<1x128xf32>
    %c0_128 = arith.constant 0 : index
    %c0_129 = arith.constant 0 : index
    %279 = vector.load %arg17[%c0_128, %c0_129] : memref<1x128xf32, #tpu.memory_space<vmem>>, vector<1x128xf32>
    %cst_130 = arith.constant dense<0.000000e+00> : vector<16xf32>
    %280 = vector.multi_reduction <add>, %277, %cst_130 [1] : vector<16x128xf32> to vector<16xf32>
    %281 = vector.shape_cast %280 : vector<16xf32> to vector<16x1xf32>
    %cst_131 = arith.constant 1.280000e+02 : f32
    %282 = vector.broadcast %cst_131 : f32 to vector<16x1xf32>
    %283 = arith.divf %281, %282 : vector<16x1xf32>
    %284 = vector.broadcast %283 : vector<16x1xf32> to vector<16x128xf32>
    %285 = arith.subf %277, %284 : vector<16x128xf32>
    %286 = arith.mulf %285, %285 : vector<16x128xf32>
    %cst_132 = arith.constant dense<0.000000e+00> : vector<16xf32>
    %287 = vector.multi_reduction <add>, %286, %cst_132 [1] : vector<16x128xf32> to vector<16xf32>
    %288 = vector.shape_cast %287 : vector<16xf32> to vector<16x1xf32>
    %cst_133 = arith.constant 1.280000e+02 : f32
    %289 = vector.broadcast %cst_133 : f32 to vector<16x1xf32>
    %290 = arith.divf %288, %289 : vector<16x1xf32>
    %291 = vector.broadcast %283 : vector<16x1xf32> to vector<16x128xf32>
    %292 = arith.subf %277, %291 : vector<16x128xf32>
    %cst_134 = arith.constant 9.99999974E-6 : f32
    %293 = vector.broadcast %cst_134 : f32 to vector<16x1xf32>
    %294 = arith.addf %290, %293 : vector<16x1xf32>
    %295 = math.rsqrt %294 : vector<16x1xf32>
    %296 = vector.broadcast %295 : vector<16x1xf32> to vector<16x128xf32>
    %297 = arith.mulf %292, %296 : vector<16x128xf32>
    %298 = vector.broadcast %278 : vector<1x128xf32> to vector<16x128xf32>
    %299 = arith.mulf %297, %298 : vector<16x128xf32>
    %300 = vector.broadcast %279 : vector<1x128xf32> to vector<16x128xf32>
    %301 = arith.addf %299, %300 : vector<16x128xf32>
    %302 = arith.truncf %301 : vector<16x128xf32> to vector<16x128xbf16>
    %c0_135 = arith.constant 0 : index
    %c0_136 = arith.constant 0 : index
    %303 = vector.load %arg18[%c0_135, %c0_136] : memref<128x256xbf16, #tpu.memory_space<vmem>>, vector<128x256xbf16>
    %cst_137 = arith.constant dense<0.000000e+00> : vector<16x256xf32>
    %304 = tpu.matmul %302, %303, %cst_137 {dimension_numbers = #tpu.dot_dimension_numbers<[1], [0], [0], [1], [0, 0, 1, 1], [], []>} : vector<16x128xbf16>, vector<128x256xbf16>, vector<16x256xf32> -> vector<16x256xf32>
    %c0_138 = arith.constant 0 : index
    %c0_139 = arith.constant 0 : index
    %c0_140 = arith.constant 0 : index
    %305 = vector.load %arg19[%c0_138, %c0_139, %c0_140] : memref<1x16x256xf32, #tpu.memory_space<vmem>>, vector<1x16x256xf32>
    %306 = vector.shape_cast %305 : vector<1x16x256xf32> to vector<16x256xf32>
    %307 = vector.shape_cast %304 : vector<16x256xf32> to vector<1x16x256xf32>
    tpu.vector_store %arg19[%c0_138, %c0_139, %c0_140], %307 {strides = array<i32>} : memref<1x16x256xf32, #tpu.memory_space<vmem>>, vector<1x16x256xf32>,
    return
  }
  func.func @transform_0(%arg0: i32) -> (i32, i32, i32) {
    %c0_i32 = arith.constant 0 : i32
    %c0_i32_0 = arith.constant 0 : i32
    %c0_i32_1 = arith.constant 0 : i32
    return %arg0, %c0_i32, %c0_i32_0 : i32, i32, i32
  }
  func.func @transform_1(%arg0: i32) -> (i32, i32, i32) {
    %c0_i32 = arith.constant 0 : i32
    %c0_i32_0 = arith.constant 0 : i32
    %c0_i32_1 = arith.constant 0 : i32
    return %arg0, %c0_i32, %c0_i32_0 : i32, i32, i32
  }
  func.func @transform_2(%arg0: i32) -> (i32, i32) {
    %c0_i32 = arith.constant 0 : i32
    %c0_i32_0 = arith.constant 0 : i32
    %c0_i32_1 = arith.constant 0 : i32
    return %c0_i32, %c0_i32_0 : i32, i32
  }
  func.func @transform_3(%arg0: i32) -> (i32, i32, i32) {
    %c0_i32 = arith.constant 0 : i32
    %c0_i32_0 = arith.constant 0 : i32
    %c0_i32_1 = arith.constant 0 : i32
    %c0_i32_2 = arith.constant 0 : i32
    return %c0_i32, %c0_i32_0, %c0_i32_1 : i32, i32, i32
  }
  func.func @transform_4(%arg0: i32) -> (i32, i32, i32) {
    %c0_i32 = arith.constant 0 : i32
    %c0_i32_0 = arith.constant 0 : i32
    %c0_i32_1 = arith.constant 0 : i32
    %c0_i32_2 = arith.constant 0 : i32
    return %c0_i32, %c0_i32_0, %c0_i32_1 : i32, i32, i32
  }
  func.func @transform_5(%arg0: i32) -> (i32, i32, i32) {
    %c0_i32 = arith.constant 0 : i32
    %c0_i32_0 = arith.constant 0 : i32
    %c0_i32_1 = arith.constant 0 : i32
    %c0_i32_2 = arith.constant 0 : i32
    return %c0_i32, %c0_i32_0, %c0_i32_1 : i32, i32, i32
  }
  func.func @transform_6(%arg0: i32) -> (i32, i32, i32) {
    %c0_i32 = arith.constant 0 : i32
    %c0_i32_0 = arith.constant 0 : i32
    %c0_i32_1 = arith.constant 0 : i32
    %c0_i32_2 = arith.constant 0 : i32
    return %c0_i32, %c0_i32_0, %c0_i32_1 : i32, i32, i32
  }
  func.func @transform_7(%arg0: i32) -> (i32, i32, i32) {
    %c0_i32 = arith.constant 0 : i32
    %c0_i32_0 = arith.constant 0 : i32
    %c0_i32_1 = arith.constant 0 : i32
    %c0_i32_2 = arith.constant 0 : i32
    return %c0_i32, %c0_i32_0, %c0_i32_1 : i32, i32, i32
  }
  func.func @transform_8(%arg0: i32) -> (i32, i32, i32) {
    %c0_i32 = arith.constant 0 : i32
    %c0_i32_0 = arith.constant 0 : i32
    %c0_i32_1 = arith.constant 0 : i32
    %c0_i32_2 = arith.constant 0 : i32
    return %c0_i32, %c0_i32_0, %c0_i32_1 : i32, i32, i32
  }
  func.func @transform_9(%arg0: i32) -> (i32, i32, i32) {
    %c0_i32 = arith.constant 0 : i32
    %c0_i32_0 = arith.constant 0 : i32
    %c0_i32_1 = arith.constant 0 : i32
    %c0_i32_2 = arith.constant 0 : i32
    return %c0_i32, %c0_i32_0, %c0_i32_1 : i32, i32, i32
  }
  func.func @transform_10(%arg0: i32) -> (i32, i32, i32) {
    %c0_i32 = arith.constant 0 : i32
    %c0_i32_0 = arith.constant 0 : i32
    %c0_i32_1 = arith.constant 0 : i32
    %c0_i32_2 = arith.constant 0 : i32
    return %c0_i32, %c0_i32_0, %c0_i32_1 : i32, i32, i32
  }
  func.func @transform_11(%arg0: i32) -> (i32, i32, i32) {
    %c0_i32 = arith.constant 0 : i32
    %c0_i32_0 = arith.constant 0 : i32
    %c0_i32_1 = arith.constant 0 : i32
    %c0_i32_2 = arith.constant 0 : i32
    return %c0_i32, %c0_i32_0, %c0_i32_1 : i32, i32, i32
  }
  func.func @transform_12(%arg0: i32) -> (i32, i32, i32) {
    %c0_i32 = arith.constant 0 : i32
    %c0_i32_0 = arith.constant 0 : i32
    %c0_i32_1 = arith.constant 0 : i32
    %c0_i32_2 = arith.constant 0 : i32
    return %c0_i32, %c0_i32_0, %c0_i32_1 : i32, i32, i32
  }
  func.func @transform_13(%arg0: i32) -> (i32, i32, i32) {
    %c0_i32 = arith.constant 0 : i32
    %c0_i32_0 = arith.constant 0 : i32
    %c0_i32_1 = arith.constant 0 : i32
    %c0_i32_2 = arith.constant 0 : i32
    return %c0_i32, %c0_i32_0, %c0_i32_1 : i32, i32, i32
  }
  func.func @transform_14(%arg0: i32) -> (i32, i32, i32) {
    %c0_i32 = arith.constant 0 : i32
    %c0_i32_0 = arith.constant 0 : i32
    %c0_i32_1 = arith.constant 0 : i32
    %c0_i32_2 = arith.constant 0 : i32
    return %c0_i32, %c0_i32_0, %c0_i32_1 : i32, i32, i32
  }
  func.func @transform_15(%arg0: i32) -> (i32, i32) {
    %c0_i32 = arith.constant 0 : i32
    %c0_i32_0 = arith.constant 0 : i32
    %c0_i32_1 = arith.constant 0 : i32
    return %c0_i32, %c0_i32_0 : i32, i32
  }
  func.func @transform_16(%arg0: i32) -> (i32, i32) {
    %c0_i32 = arith.constant 0 : i32
    %c0_i32_0 = arith.constant 0 : i32
    %c0_i32_1 = arith.constant 0 : i32
    return %c0_i32, %c0_i32_0 : i32, i32
  }
  func.func @transform_17(%arg0: i32) -> (i32, i32) {
    %c0_i32 = arith.constant 0 : i32
    %c0_i32_0 = arith.constant 0 : i32
    %c0_i32_1 = arith.constant 0 : i32
    return %c0_i32, %c0_i32_0 : i32, i32
  }
  func.func @transform_18(%arg0: i32) -> (i32, i32, i32) {
    %c0_i32 = arith.constant 0 : i32
    %c0_i32_0 = arith.constant 0 : i32
    %c0_i32_1 = arith.constant 0 : i32
    return %arg0, %c0_i32, %c0_i32_0 : i32, i32, i32
  }
}

</mosaic_0001>

<bundles_post_ra>
// kernel: tpu_custom_call.1
= control target key start
LH: loop header
LB: loop body
LE: loop exit
PB: predicated region body
PF: predicated region fallthrough
CT: control target
= control target key end

     0   :  { %s9900_s0 = inlined_call_operand.hbm [shape: f32[2,16,128], index: 0, kind: input, shape index: {}]   ;;  %s9901_s1 = inlined_call_operand.hbm [shape: f32[2,1,16], index: 1, kind: input, shape index: {}]   ;;  %s9902_s2 = inlined_call_operand.hbm [shape: f32[16,128], index: 2, kind: input, shape index: {}]   ;;  %s9903_s3 = inlined_call_operand.hbm [shape: f32[2,1,128], index: 3, kind: input, shape index: {}]   ;;  %s9904_s4 = inlined_call_operand.hbm [shape: f32[2,1,128], index: 4, kind: input, shape index: {}]   ;;  %s9905_s5 = inlined_call_operand.hbm [shape: bf16[2,128,384], index: 5, kind: input, shape index: {}]   ;;  %s9906_s6 = inlined_call_operand.vmem [shape: f32[2,1,384], index: 6, kind: input, shape index: {}]   ;;  %s9907_s7 = inlined_call_operand.hbm [shape: bf16[2,128,128], index: 7, kind: input, shape index: {}]   ;;  %s9908_s8 = inlined_call_operand.vmem [shape: f32[2,1,128], index: 8, kind: input, shape index: {}]   ;;  %s9909_s9 = inlined_call_operand.vmem [shape: f32[2,1,128], index: 9, kind: input, shape index: {}]   ;;  %s9910_s10 = inlined_call_operand.vmem [shape: f32[2,1,128], index: 10, kind: input, shape index: {}]   ;;  %s9911_s11 = inlined_call_operand.hbm [shape: bf16[2,128,512], index: 11, kind: input, shape index: {}]   ;;  %s9912_s12 = inlined_call_operand.vmem [shape: f32[2,1,512], index: 12, kind: input, shape index: {}]   ;;  %s9913_s13 = inlined_call_operand.hbm [shape: bf16[2,512,128], index: 13, kind: input, shape index: {}]   ;;  %s9914_s14 = inlined_call_operand.vmem [shape: f32[2,1,128], index: 14, kind: input, shape index: {}]   ;;  %s9915_s15 = inlined_call_operand.vmem [shape: f32[1,128], index: 15, kind: input, shape index: {}]   ;;  %s9916_s16 = inlined_call_operand.vmem [shape: f32[1,128], index: 16, kind: input, shape index: {}]   ;;  %s9917_s17 = inlined_call_operand.hbm [shape: bf16[128,256], index: 17, kind: input, shape index: {}]   ;;  %s9918_s18 = inlined_call_operand.hbm [shape: f32[2,16,256], index: 18, kind: output, shape index: {}]  }
   0x1   :  { %9940 = sst [smem:[#allocation28_spill]] %s9900_s0 }
   0x2   :  { %9941 = sst [smem:[#allocation29_spill]] %s9901_s1 }
   0x3   :  { %9942 = sst [smem:[#allocation30_spill]] %s9902_s2 }
   0x4   :  { %9943 = sst [smem:[#allocation31_spill]] %s9903_s3 }
   0x5   :  { %9944 = sst [smem:[#allocation32_spill]] %s9904_s4 }
   0x6   :  { %9945 = sst [smem:[#allocation33_spill]] %s9905_s5 }
   0x7   :  { %9946 = sst [smem:[#allocation34_spill]] %s9907_s7 }
   0x8   :  { %9947 = sst [smem:[#allocation35_spill]] %s9908_s8 }
   0x9   :  { %9948 = sst [smem:[#allocation36_spill]] %s9909_s9 }
   0xa   :  { %9949 = sst [smem:[#allocation37_spill]] %s9910_s10 }
   0xb   :  { %9950 = sst [smem:[#allocation38_spill]] %s9911_s11 }
   0xc   :  { %9951 = sst [smem:[#allocation39_spill]] %s9912_s12 }
   0xd   :  { %9952 = sst [smem:[#allocation40_spill]] %s9913_s13 }
   0xe   :  { %9953 = sst [smem:[#allocation41_spill]] %s9914_s14 }
   0xf   :  { %9954 = sst [smem:[#allocation42_spill]] %s9915_s15 }
  0x10   :  { %9955 = sst [smem:[#allocation43_spill]] %s9916_s16 }
  0x11   :  { %9956 = sst [smem:[#allocation44_spill]] %s9918_s18 }
  0x12   :  { %23 = vsyncpa [#allocation3], 0 }
  0x13   :  { %25 = vsyncpa [#allocation3 + $0x1], 0 }
  0x14   :  { %26 = vsyncpa [#allocation6], 0 }
  0x15   :  { %28 = vsyncpa [#allocation6 + $0x1], 0 }
  0x16   :  { %29 = vsyncpa [#allocation9], 0 }
  0x17   :  { %30 = vsyncpa [#allocation12], 0 }
  0x18   :  { %31 = vsyncpa [#allocation15], 0 }
  0x19   :  { %32 = vsyncpa [#allocation18], 0 }
  0x1a   :  { %33 = vsyncpa [#allocation4], 0 }
  0x1b   :  { %35 = vsyncpa [#allocation4 + $0x1], 0  ;;  %s8545_s27 = smov 0   ;;  %s8547_s28 = smov 0  }
  0x1c   :  { %s8549_s29 = smov 0   ;;  %s8551_s30 = smov 0  }
  0x1d LB: > { %s8419_s0 = smov [#allocation7]   ;;  %s8566_s1 = sadd.s32 4294967295, %s8417_s30   ;;  %s8417_s30 = sphi %s8551_s30, %s10005_s30   ;;  %s8413_s29 = sphi %s8549_s29, %s10004_s29   ;;  %s8409_s28 = sphi %s8547_s28, %s10003_s28   ;;  %s8405_s27 = sphi %s8545_s27, %s10002_s27  }
  0x1e   : > { %s472_s19 = sshll.u32 %s8419_s0, 4  ;;  %p6841_p0 = scmp.ge.s32.totalorder %s8417_s30, 1  ;;  %s8571_s19 = int_to_ptr.vmem [resolvable:$true] %s472_s19 }
  0x1f   : > { %p9930_p1 = scmp.eq.s32.totalorder %s8566_s1, 0  ;;  %p460_p2 = scmp.lt.s32.totalorder %s8417_s30, 3 }
  0x20   : > { %s8420_s21 = smov [#allocation8]   ;;  %s8421_s23 = smov [#allocation11]  }
  0x21   : > { %p8573_p3 = pnand %p6841_p0, %p460_p2  ;;  %s485_s22 = sshll.u32 %s8420_s21, 4  ;;  %s8586_s22 = int_to_ptr.vmem [resolvable:$true] %s485_s22 }
  0x22   : > { %s8588_s24 = sshll.u32 %s8421_s23, 4  ;;  %s9959_s0 = sld [smem:[#allocation30_spill]]  ;;  %s512_s24 = int_to_ptr.vmem [resolvable:$true] %s8588_s24 }
  0x23   : > { %s9957_s20 = scalar_select %p8573_p3, 1, 0 }
  0x24   : > { %p7519_p5 = pneg %p8573_p3 }
  0x26   : > { %p8582_p6 = pnand %p7519_p5, %p9930_p1 }
  0x28   : > { %s8043_s18 = scalar_lea.hbm %s9959_s0, 256  ;;  %p8598_p8 = pneg %p8582_p6 }
  0x29   : > { %p8044_p7 = scmp.ne.s32.totalorder %s9959_s0, %s8043_s18  ;;  %p8050_p11 = scmp.lt.u32.totalorder %s8043_s18, %s9959_s0 }
  0x2b   : > { %p8046_p9 = pnand %p8598_p8, %p8044_p7 }
  0x2d   : > { %p8047_p10 = pneg %p8046_p9 }
  0x2f   : > { %p8052_p12 = pnand %p8050_p11, %p8047_p10 }
  0x31   : > { %8055 = shalt.err (!%p8052_p12)
}
  0x32   : > { %s8056_s15 = scalar_lea.vmem %s8571_s19, 256  ;;  %p8064_p5 = scmp.lt.s32.totalorder %s8571_s19, %s8571_s19 }
  0x33   : > { %p8057_p13 = scmp.ne.s32.totalorder %s8571_s19, %s8056_s15  ;;  %p8065_p4 = scmp.lt.s32.totalorder %s8056_s15, %s8056_s15 }
  0x35   : > { %p8059_p0 = pnand %p8057_p13, %p8598_p8  ;;  %p8066_p7 = por %p8065_p4, %p8064_p5 }
  0x37   : > { %p8060_p2 = pneg %p8059_p0 }
  0x39   : > { %p8067_p9 = pnand %p8066_p7, %p8060_p2 }
  0x3b   : > { %8070 = shalt.err (!%p8067_p9)
}
  0x3c   : > { %s9928_s16 = smov 128   ;;  %s9932_s14 = smov 8  }
  0x3d   : > { %7522 = dma.hbm_to_vmem [thread:$0]  (!%p8582_p6), %s9959_s0, 256, %s8571_s19, [#allocation6], %s9928_s16, %s9928_s16, %s9932_s14  }
  0x3e   : > { %s9961_s3 = sld [smem:[#allocation31_spill]] }
  0x44   : > { %s8071_s15 = scalar_lea.hbm %s9961_s3, 32 }
  0x45   : > { %p8072_p4 = scmp.ne.s32.totalorder %s9961_s3, %s8071_s15  ;;  %p8078_p12 = scmp.lt.u32.totalorder %s8071_s15, %s9961_s3 }
  0x47   : > { %p8074_p10 = pnand %p8072_p4, %p8598_p8 }
  0x49   : > { %p8075_p11 = pneg %p8074_p10 }
  0x4b   : > { %p8080_p13 = pnand %p8078_p12, %p8075_p11 }
  0x4d   : > { %8083 = shalt.err (!%p8080_p13)
}
  0x4e   : > { %s8084_s19 = scalar_lea.vmem %s8586_s22, 32  ;;  %p8092_p7 = scmp.lt.s32.totalorder %s8586_s22, %s8586_s22 }
  0x4f   : > { %p8085_p0 = scmp.ne.s32.totalorder %s8586_s22, %s8084_s19  ;;  %p8093_p9 = scmp.lt.s32.totalorder %s8084_s19, %s8084_s19 }
  0x51   : > { %p8087_p2 = pnand %p8085_p0, %p8598_p8  ;;  %p8094_p4 = por %p8093_p9, %p8092_p7 }
  0x53   : > { %p8088_p5 = pneg %p8087_p2 }
  0x55   : > { %p8095_p10 = pnand %p8094_p4, %p8088_p5 }
  0x57   : > { %8098 = shalt.err (!%p8095_p10)
}
  0x58   : > { %s9935_s10 = smov 16   ;;  %s9934_s8 = smov 1  }
  0x59   : > { %7525 = dma.hbm_to_vmem [thread:$0]  (!%p8582_p6), %s9961_s3, 32, %s8586_s22, [#allocation9], %s9935_s10, %s9935_s10, %s9934_s8  }
  0x5a   : > { %s9962_s5 = sld [smem:[#allocation33_spill]] }
  0x60   : > { %s8099_s26 = scalar_lea.hbm %s9962_s5, 6144 }
  0x61   : > { %p8100_p11 = scmp.ne.s32.totalorder %s9962_s5, %s8099_s26  ;;  %p8106_p0 = scmp.lt.u32.totalorder %s8099_s26, %s9962_s5 }
  0x63   : > { %p8102_p12 = pnand %p8100_p11, %p8598_p8 }
  0x65   : > { %p8103_p13 = pneg %p8102_p12 }
  0x67   : > { %p8108_p2 = pnand %p8106_p0, %p8103_p13 }
  0x69   : > { %8111 = shalt.err (!%p8108_p2)
}
  0x6a   : > { %s8112_s9 = scalar_lea.vmem %s512_s24, 6144  ;;  %p8120_p4 = scmp.lt.s32.totalorder %s512_s24, %s512_s24 }
  0x6b   : > { %p8113_p5 = scmp.ne.s32.totalorder %s512_s24, %s8112_s9  ;;  %p8121_p10 = scmp.lt.s32.totalorder %s8112_s9, %s8112_s9 }
  0x6d   : > { %p8115_p7 = pnand %p8113_p5, %p8598_p8  ;;  %p8122_p1 = por %p8121_p10, %p8120_p4 }
  0x6f   : > { %p8116_p9 = pneg %p8115_p7 }
  0x71   : > { %p8123_p3 = pnand %p8122_p1, %p8116_p9 }
  0x73   : > { %8126 = shalt.err (!%p8123_p3)
}
  0x74   : > { %s8426_s22 = smov 192   ;;  %s8427_s12 = smov 12  }
  0x75   : > { %7531 = dma.hbm_to_vmem [thread:$0]  (!%p8582_p6), %s9962_s5, 6144, %s512_s24, [#allocation12], %s8426_s22, %s8426_s22, %s8427_s12  }
  0x76   : > { %s8428_s25 = smov [#allocation14]   ;;  %s9963_s11 = sld [smem:[#allocation38_spill]] }
  0x77   : > { %s549_s26 = sshll.u32 %s8428_s25, 4  ;;  %s550_s26 = int_to_ptr.vmem [resolvable:$true] %s549_s26 }
  0x7c   : > { %s8127_s19 = scalar_lea.hbm %s9963_s11, 8192 }
  0x7d   : > { %p8128_p1 = scmp.ne.s32.totalorder %s9963_s11, %s8127_s19  ;;  %p8134_p12 = scmp.lt.u32.totalorder %s8127_s19, %s9963_s11 }
  0x7f   : > { %p8130_p3 = pnand %p8128_p1, %p8598_p8 }
  0x81   : > { %p8131_p11 = pneg %p8130_p3 }
  0x83   : > { %p8136_p13 = pnand %p8134_p12, %p8131_p11 }
  0x85   : > { %8139 = shalt.err (!%p8136_p13)
}
  0x86   : > { %s8140_s24 = scalar_lea.vmem %s550_s26, 8192  ;;  %p8148_p7 = scmp.lt.s32.totalorder %s550_s26, %s550_s26 }
  0x87   : > { %p8141_p0 = scmp.ne.s32.totalorder %s550_s26, %s8140_s24  ;;  %p8149_p9 = scmp.lt.s32.totalorder %s8140_s24, %s8140_s24 }
  0x89   : > { %p8143_p2 = pnand %p8141_p0, %p8598_p8  ;;  %p8150_p4 = por %p8149_p9, %p8148_p7 }
  0x8b   : > { %p8144_p5 = pneg %p8143_p2 }
  0x8d   : > { %p8151_p10 = pnand %p8150_p4, %p8144_p5 }
  0x8f   : > { %8154 = shalt.err (!%p8151_p10)
}
  0x90   : > { %s8429_s14 = smov 256   ;;  %s9964_s22 = smov 16  }
  0x91   : > { %7537 = dma.hbm_to_vmem [thread:$0]  (!%p8582_p6), %s9963_s11, 8192, %s550_s26, [#allocation15], %s8429_s14, %s8429_s14, %s9964_s22  }
  0x92   : > { %s8430_s8 = smov [#allocation10]   ;;  %s8431_s18 = smov [#allocation13]  }
  0x93   : > { %s498_s16 = sshll.u32 %s8430_s8, 4  ;;  %s527_s25 = sshll.u32 %s8431_s18, 4  ;;  %s499_s16 = int_to_ptr.vmem [resolvable:$true] %s498_s16  ;;  %s528_s25 = int_to_ptr.vmem [resolvable:$true] %s527_s25 }
  0x94   : > { %s9965_s4 = sld [smem:[#allocation32_spill]] }
  0x9a   : > { %s8155_s19 = scalar_lea.hbm %s9965_s4, 32 }
  0x9b   : > { %p8156_p1 = scmp.ne.s32.totalorder %s9965_s4, %s8155_s19  ;;  %p8162_p12 = scmp.lt.u32.totalorder %s8155_s19, %s9965_s4 }
  0x9d   : > { %p8158_p3 = pnand %p8156_p1, %p8598_p8 }
  0x9f   : > { %p8159_p11 = pneg %p8158_p3 }
  0xa1   : > { %p8164_p13 = pnand %p8162_p12, %p8159_p11 }
  0xa3   : > { %8167 = shalt.err (!%p8164_p13)
}
  0xa4   : > { %s8168_s26 = scalar_lea.vmem %s499_s16, 32  ;;  %p8176_p7 = scmp.lt.s32.totalorder %s499_s16, %s499_s16 }
  0xa5   : > { %p8169_p0 = scmp.ne.s32.totalorder %s499_s16, %s8168_s26  ;;  %p8177_p9 = scmp.lt.s32.totalorder %s8168_s26, %s8168_s26 }
  0xa7   : > { %p8171_p2 = pnand %p8169_p0, %p8598_p8  ;;  %p8178_p4 = por %p8177_p9, %p8176_p7 }
  0xa9   : > { %p8172_p5 = pneg %p8171_p2 }
  0xab   : > { %p8179_p10 = pnand %p8178_p4, %p8172_p5 }
  0xad   : > { %8182 = shalt.err (!%p8179_p10)
}
  0xae   : > { %s9966_s14 = smov 1   ;;  %s9967_s7 = sld [smem:[#allocation34_spill]] }
  0xaf   : > { %7528 = dma.hbm_to_vmem [thread:$0]  (!%p8582_p6), %s9965_s4, 32, %s499_s16, [#allocation9], %s9964_s22, %s9964_s22, %s9966_s14  }
  0xb4   : > { %s8183_s23 = scalar_lea.hbm %s9967_s7, 2048 }
  0xb5   : > { %p8184_p1 = scmp.ne.s32.totalorder %s9967_s7, %s8183_s23  ;;  %p8190_p12 = scmp.lt.u32.totalorder %s8183_s23, %s9967_s7 }
  0xb7   : > { %p8186_p3 = pnand %p8184_p1, %p8598_p8 }
  0xb9   : > { %p8187_p11 = pneg %p8186_p3 }
  0xbb   : > { %p8192_p13 = pnand %p8190_p12, %p8187_p11 }
  0xbd   : > { %8195 = shalt.err (!%p8192_p13)
}
  0xbe   : > { %s8196_s12 = scalar_lea.vmem %s528_s25, 2048  ;;  %p8204_p7 = scmp.lt.s32.totalorder %s528_s25, %s528_s25 }
  0xbf   : > { %p8197_p0 = scmp.ne.s32.totalorder %s528_s25, %s8196_s12  ;;  %p8205_p9 = scmp.lt.s32.totalorder %s8196_s12, %s8196_s12 }
  0xc1   : > { %p8199_p2 = pnand %p8197_p0, %p8598_p8  ;;  %p8206_p4 = por %p8205_p9, %p8204_p7 }
  0xc3   : > { %p8200_p5 = pneg %p8199_p2 }
  0xc5   : > { %p8207_p10 = pnand %p8206_p4, %p8200_p5 }
  0xc7   : > { %8210 = shalt.err (!%p8207_p10)
}
  0xc8   : > { %s8432_s22 = smov 64   ;;  %s8433_s16 = smov 4  }
  0xc9   : > { %7534 = dma.hbm_to_vmem [thread:$0]  (!%p8582_p6), %s9967_s7, 2048, %s528_s25, [#allocation12], %s8432_s22, %s8432_s22, %s8433_s16  }
  0xca   : > { %s8434_s0 = smov [#allocation16]   ;;  %s8435_s8 = smov [#allocation17]  }
  0xcb   : > { %s565_s10 = sshll.u32 %s8434_s0, 4  ;;  %s587_s18 = sshll.u32 %s8435_s8, 4  ;;  %s566_s10 = int_to_ptr.vmem [resolvable:$true] %s565_s10  ;;  %s588_s18 = int_to_ptr.vmem [resolvable:$true] %s587_s18 }
  0xcc   : > { %s9968_s13 = sld [smem:[#allocation40_spill]] }
  0xd2   : > { %s8211_s19 = scalar_lea.hbm %s9968_s13, 8192 }
  0xd3   : > { %p8212_p1 = scmp.ne.s32.totalorder %s9968_s13, %s8211_s19  ;;  %p8218_p12 = scmp.lt.u32.totalorder %s8211_s19, %s9968_s13 }
  0xd5   : > { %p8214_p3 = pnand %p8212_p1, %p8598_p8 }
  0xd7   : > { %p8215_p11 = pneg %p8214_p3 }
  0xd9   : > { %p8220_p13 = pnand %p8218_p12, %p8215_p11 }
  0xdb   : > { %8223 = shalt.err (!%p8220_p13)
}
  0xdc   : > { %s8224_s25 = scalar_lea.vmem %s566_s10, 8192  ;;  %p8232_p7 = scmp.lt.s32.totalorder %s566_s10, %s566_s10 }
  0xdd   : > { %p8225_p0 = scmp.ne.s32.totalorder %s566_s10, %s8224_s25  ;;  %p8233_p9 = scmp.lt.s32.totalorder %s8224_s25, %s8224_s25 }
  0xdf   : > { %p8227_p2 = pnand %p8225_p0, %p8598_p8  ;;  %p8234_p4 = por %p8233_p9, %p8232_p7 }
  0xe1   : > { %p8228_p5 = pneg %p8227_p2 }
  0xe3   : > { %p8235_p10 = pnand %p8234_p4, %p8228_p5 }
  0xe5   : > { %8238 = shalt.err (!%p8235_p10)
}
  0xe6   : > { %7540 = dma.hbm_to_vmem [thread:$0]  (!%p8582_p6), %s9968_s13, 8192, %s566_s10, [#allocation15], %s8432_s22, %s8432_s22, %s8433_s16  }
  0xe7   : > { %s8239_s8 = scalar_lea.hbm %s9917_s17, 2048 }
  0xe8   : > { %p8240_p1 = scmp.ne.s32.totalorder %s9917_s17, %s8239_s8  ;;  %p8246_p12 = scmp.lt.u32.totalorder %s8239_s8, %s9917_s17 }
  0xea   : > { %p8242_p3 = pnand %p8240_p1, %p8598_p8 }
  0xec   : > { %p8243_p11 = pneg %p8242_p3 }
  0xee   : > { %p8248_p13 = pnand %p8246_p12, %p8243_p11 }
  0xf0   : > { %8251 = shalt.err (!%p8248_p13)
}
  0xf1   : > { %s8252_s24 = scalar_lea.vmem %s588_s18, 2048  ;;  %p8260_p7 = scmp.lt.s32.totalorder %s588_s18, %s588_s18 }
  0xf2   : > { %p8253_p0 = scmp.ne.s32.totalorder %s588_s18, %s8252_s24  ;;  %p8261_p9 = scmp.lt.s32.totalorder %s8252_s24, %s8252_s24 }
  0xf4   : > { %p8255_p2 = pnand %p8253_p0, %p8598_p8  ;;  %p8262_p4 = por %p8261_p9, %p8260_p7 }
  0xf6   : > { %p8256_p5 = pneg %p8255_p2 }
  0xf8   : > { %p8263_p10 = pnand %p8262_p4, %p8256_p5 }
  0xfa   : > { %8266 = shalt.err (!%p8263_p10)
}
  0xfb   : > { %s9969_s22 = smov 8   ;;  %s9970_s16 = smov 128  }
  0xfc   : > { %7543 = dma.hbm_to_vmem [thread:$0]  (!%p8582_p6), %s9917_s17, 2048, %s588_s18, [#allocation18], %s9970_s16, %s9970_s16, %s9969_s22  }
  0xfd   : > { %s6840_s2 = sadd.s32 4294967294, %s8417_s30   ;;  %s8766_s21 = sadd.s32 1, %s8417_s30  }
  0xfe   : > { %s48_s25 = sadd.s32 1, %s8413_s29  ;;  %s45_s26 = ssub.s32 %s8417_s30, %s8766_s21 }
  0xff   : > { %p55_p8 = scmp.ne.s32.totalorder %s8413_s29, %s8409_s28  ;;  %p46_p1 = scmp.eq.s32.totalorder %s45_s26, 0 }
 0x100   : > { %p56_p3 = scmp.eq.s32.totalorder %s8417_s30, 0  ;;  %p61_p11 = scmp.ne.s32.totalorder %s8409_s28, %s8405_s27 }
 0x101   : > { %p447_p12 = scmp.eq.s32.totalorder %s8566_s1, 1  ;;  %p9971_p0 = scmp.eq.s32.totalorder %s8566_s1, 0 }
 0x102   : > { %s8778_s14 = scalar_select %p46_p1, %s8413_s29, %s48_s25  }
 0x103   : > { %p57_p13 = por %p56_p3, %p55_p8  ;;  %p8782_p2 = por %p9971_p0, %p61_p11 }
 0x104   : > { %p8786_p6 = por %p447_p12, %p55_p8  ;;  %p453_p5 = scmp.eq.s32.totalorder %s6840_s2, 1 }
 0x105   : > { %s9972_s18 = scalar_select %p8782_p2, 1, 0 }
 0x106   : > { %s9973_s3 = scalar_select %p8786_p6, 1, 0 }
 0x107   : > { %p7563_p7 = scmp.lt.s32.totalorder %s8417_s30, 2  ;;  %s8792_s0 = sand.u32 1, %s8413_s29  }
 0x108   : > { %p8794_p9 = por %p453_p5, %p61_p11  ;;  %s6851_s23 = sshll.u32 %s8792_s0, 4 }
 0x109   : > { %s7147_s15 = sshll.u32 %s8417_s30, 8  ;;  %s9975_s24 = sld [smem:[#allocation28_spill]] }
 0x10a   : > { %s9974_s8 = scalar_select %p8794_p9, 1, 0 }
 0x10b   : > { %s605_s12 = scalar_lea.vmem [#allocation2], %s6851_s23  ;;  %p8805_p4 = pnand %p7563_p7, %p57_p13 }
 0x10c   : > { %s612_s2 = sshll.u32 %s605_s12, 4  ;;  %s602_s4 = scalar_lea.sflag [#allocation3], %s8792_s0  ;;  %s8809_s2 = int_to_ptr.vmem [resolvable:$true] %s612_s2 }
 0x10d   : > { %p8269_p8 = pneg %p8805_p4 }
 0x10f   : > { %s8803_s10 = scalar_lea.hbm %s9975_s24, %s7147_s15  ;;  %s8272_s19 = scalar_lea.hbm %s9975_s24, 512 }
 0x110   : > { %s8267_s5 = scalar_lea.hbm %s8803_s10, 256  ;;  %p8273_p11 = scmp.lt.u32.totalorder %s8803_s10, %s9975_s24 }
 0x111   : > { %p8268_p10 = scmp.ne.s32.totalorder %s8803_s10, %s8267_s5  ;;  %p8274_p12 = scmp.lt.u32.totalorder %s8272_s19, %s8267_s5 }
 0x112   : > { %p8276_p0 = scmp.lt.u32.totalorder %s8267_s5, %s8803_s10 }
 0x113   : > { %p8270_p1 = pnand %p8269_p8, %p8268_p10  ;;  %p8275_p13 = por %p8274_p12, %p8273_p11 }
 0x115   : > { %p8271_p3 = pneg %p8270_p1  ;;  %p8277_p5 = por %p8276_p0, %p8275_p13 }
 0x117   : > { %p8278_p7 = pnand %p8277_p5, %p8271_p3 }
 0x119   : > { %8281 = shalt.err (!%p8278_p7)
}
 0x11a   : > { %s8282_s26 = scalar_lea.vmem %s8809_s2, 256  ;;  %s8436_s23 = smov [#allocation2]  }
 0x11b   : > { %p8283_p10 = scmp.ne.s32.totalorder %s8809_s2, %s8282_s26  ;;  %s8287_s15 = sshll.u32 %s8436_s23, 4  ;;  %s8288_s15 = int_to_ptr.vmem [resolvable:$false] %s8287_s15 }
 0x11c   : > { %s8289_s9 = scalar_lea.vmem %s8288_s15, 512  ;;  %p8290_p6 = scmp.lt.s32.totalorder %s8809_s2, %s8288_s15 }
 0x11d   : > { %p8285_p1 = pnand %p8283_p10, %p8269_p8  ;;  %p8291_p11 = scmp.lt.s32.totalorder %s8289_s9, %s8282_s26 }
 0x11f   : > { %p8286_p9 = pneg %p8285_p1  ;;  %p8292_p12 = por %p8291_p11, %p8290_p6 }
 0x121   : > { %p8293_p13 = pnand %p8292_p12, %p8286_p9 }
 0x123   : > { %8296 = shalt.err (!%p8293_p13)
}
 0x124   : > { %7547 = dma.hbm_to_vmem [thread:$0]  (!%p8805_p4), %s8803_s10, 256, %s8809_s2, %s602_s4, %s9970_s16, %s9970_s16, %s9969_s22  }
 0x125   : > { %s6854_s5 = sshll.u32 %s8417_s30, 4  ;;  %s9977_s12 = sld [smem:[#allocation29_spill]] }
 0x126   : > { %s625_s15 = scalar_lea.vmem [#allocation5], %s8792_s0  ;;  %s9978_s7 = sand.u32 1, %s8417_s30  }
 0x127   : > { %s632_s9 = sshll.u32 %s625_s15, 4  ;;  %s623_s11 = scalar_lea.sflag [#allocation6], %s9978_s7  ;;  %s633_s9 = int_to_ptr.vmem [resolvable:$true] %s632_s9 }
 0x12b   : > { %s8847_s23 = scalar_lea.hbm %s9977_s12, %s6854_s5  ;;  %s8302_s16 = scalar_lea.hbm %s9977_s12, 32 }
 0x12c   : > { %s8297_s13 = scalar_lea.hbm %s8847_s23, 16  ;;  %p8303_p0 = scmp.lt.u32.totalorder %s8847_s23, %s9977_s12 }
 0x12d   : > { %p8298_p6 = scmp.ne.s32.totalorder %s8847_s23, %s8297_s13  ;;  %p8304_p5 = scmp.lt.u32.totalorder %s8302_s16, %s8297_s13 }
 0x12e   : > { %p8306_p10 = scmp.lt.u32.totalorder %s8297_s13, %s8847_s23 }
 0x12f   : > { %p8300_p9 = pnand %p8298_p6, %p8269_p8  ;;  %p8305_p7 = por %p8304_p5, %p8303_p0 }
 0x131   : > { %p8301_p3 = pneg %p8300_p9  ;;  %p8307_p1 = por %p8306_p10, %p8305_p7 }
 0x133   : > { %p8308_p11 = pnand %p8307_p1, %p8301_p3 }
 0x135   : > { %8311 = shalt.err (!%p8308_p11)
}
 0x136   : > { %s8312_s7 = scalar_lea.vmem %s633_s9, 16  ;;  %s8437_s0 = smov [#allocation5]  }
 0x137   : > { %p8313_p12 = scmp.ne.s32.totalorder %s633_s9, %s8312_s7  ;;  %s8317_s5 = sshll.u32 %s8437_s0, 4  ;;  %s8318_s5 = int_to_ptr.vmem [resolvable:$false] %s8317_s5 }
 0x138   : > { %s8319_s19 = scalar_lea.vmem %s8318_s5, 32  ;;  %p8320_p9 = scmp.lt.s32.totalorder %s633_s9, %s8318_s5 }
 0x139   : > { %p8315_p13 = pnand %p8313_p12, %p8269_p8  ;;  %p8321_p2 = scmp.lt.s32.totalorder %s8319_s19, %s8312_s7 }
 0x13b   : > { %p8316_p6 = pneg %p8315_p13  ;;  %p8322_p0 = por %p8321_p2, %p8320_p9 }
 0x13d   : > { %p8323_p5 = pnand %p8322_p0, %p8316_p6 }
 0x13f   : > { %8326 = shalt.err (!%p8323_p5)
}
 0x140   : > { %7550 = dma.hbm_to_vmem [thread:$0]  (!%p8805_p4), %s8847_s23, 16, %s633_s9, %s623_s11  }
 0x141   : > { %p9979_p3 = scmp.ne.s32.totalorder %s9957_s20, 0 }
 0x142   : > { %s8874_s13 = sand.u32 (!%p9979_p3), 1, %s8409_s28   ;;  %p9980_p8 = scmp.ne.s32.totalorder (!%p9979_p3), %s9972_s18, 0 }
 0x143   : > { %641 = sbr.rel (%p9979_p3) target bundleno = 6199 (0x1837), region = 92  ;;  %s6856_s26 = sshll.u32 (!%p9979_p3), %s8874_s13, 4 }
 0x144   : > { %s644_s15 = scalar_lea.sflag (!%p9979_p3), [#allocation3], %s8874_s13  ;;  %s647_s4 = scalar_lea.vmem (!%p9979_p3), [#allocation2], %s6856_s26 }
 0x14a   : > { %8372 = dma.done.wait (%p9980_p8), %s644_s15, 256  }
 0x14b   : > { %8374 = vsyncadd (%p9980_p8), %s644_s15, 4294967040  ;;  %s652_s11 = sand.u32 1, %s8566_s1   ;;  %s655_s25 = scalar_lea.vmem [#allocation5], %s8874_s13 }
 0x14c   : > { %s653_s20 = scalar_lea.sflag [#allocation6], %s652_s11 }
 0x14d   : > { %8376 = dma.done.wait (%p9980_p8), %s653_s20, 16  }
 0x14e   : > { %8378 = vsyncadd (%p9980_p8), %s653_s20, 4294967280  ;;  %p9981_p2 = scmp.eq.s32.totalorder %s8566_s1, 0 }
 0x150   : > { %8380 = dma.done.wait (%p9981_p2), [#allocation6], 256   ;;  %p9982_p4 = pmov %p9981_p2 }
 0x151   : > { %p9983_p7 = pmov %p9981_p2 }
 0x152   : > { %8382 = vsyncadd (%p9982_p4), [#allocation6], 4294967040 }
 0x153   : > { %8384 = dma.done.wait (%p9983_p7), [#allocation9], 64   ;;  %p9984_p10 = pmov %p9981_p2 }
 0x154   : > { %p9985_p1 = pmov %p9981_p2 }
 0x155   : > { %8386 = vsyncadd (%p9984_p10), [#allocation9], 4294967232 }
 0x156   : > { %8388 = dma.done.wait (%p9985_p1), [#allocation12], 8192   ;;  %p9986_p11 = pmov %p9985_p1 }
 0x157   : > { %p9987_p12 = pmov %p9985_p1 }
 0x158   : > { %8390 = vsyncadd (%p9986_p11), [#allocation12], 4294959104 }
 0x159   : > { %8392 = dma.done.wait (%p9987_p12), [#allocation15], 16384   ;;  %p9988_p13 = pmov %p9985_p1 }
 0x15a   : > { %p9989_p6 = pmov %p9985_p1 }
 0x15b   : > { %8394 = vsyncadd (%p9988_p13), [#allocation15], 4294950912 }
 0x15c   : > { %8396 = dma.done.wait (%p9989_p6), [#allocation18], 2048   ;;  %p9990_p9 = pmov %p9985_p1 }
 0x15d   : > { %v745_v0 = vld [vmem:[%s647_s4] sm:$0xff]  ;;  %v746_v2 = vld [vmem:[%s647_s4 + $0x8] sm:$0xff]  ;;  %v8438_v8 = vmov 0.0   ;;  %v8439_v34 = vmov 0   ;;  %vm8440_vm0 = vmmov 0   ;;  %v752_v57 = vlaneseq  ;;  %s8441_s9 = smov 96  }
 0x15e   : > { %8398 = vsyncadd (%p9990_p9), [#allocation18], 4294965248  ;;  %v747_v1 = vld [vmem:[#allocation7] sm:$0xff]  ;;  %v748_v4 = vld [vmem:[#allocation7 + $0x8] sm:$0xff]  ;;  %7305 = vmatprep.subr.bf16.mxu1 %v8438_v8  ;;  %1021 = vmatprep.mubr.bf16.mxu0 %v8439_v34  ;;  %s8442_s22 = smov 64   ;;  %s8443_s16 = smov 32  }
 0x15f   : > { %v8908_v3 = vadd.f32 %v747_v1, %v745_v0  ;;  %v8911_v5 = vadd.f32 %v748_v4, %v746_v2  ;;  %v7663_v6 = vld [vmem:[#allocation11 + $0x4] ss:$12 sps:$4 sm:$0xff]   ;;  %v7665_v7 = vld [vmem:[#allocation11] ss:$12 sps:$4 sm:$0xff]   ;;  %v7666_v9 = vld [vmem:[#allocation11 + $0x8] ss:$12 sps:$4 sm:$0xff]   ;;  %7321 = vmatprep.mubr.msk.bf16.mxu1 %vm8440_vm0, %v8438_v8 }
 0x160   : > { %v7667_v10 = vld [vmem:[#allocation11 + $0x1c] ss:$12 sps:$4 sm:$0xff]   ;;  %989 = vmatprep.subr.bf16.mxu0 %v7663_v6  ;;  %7306 = vmatpush3.bf16.msra.mxu1 %v7666_v9  ;;  %v7669_v19 = vld [vmem:[#allocation11 + $0x18] ss:$12 sps:$4 sm:$0xff]   ;;  %v7670_v20 = vld [vmem:[#allocation11 + $0x20] ss:$12 sps:$4 sm:$0xff]  }
 0x161   : > { %772 = vadd.xlane.f32.xlu0 %v8908_v3  ;;  %990 = vmatpush1.bf16.msra.mxu0 %v7665_v7  ;;  %v7671_v21 = vld [vmem:[#allocation11 + $0x34] ss:$12 sps:$4 sm:$0xff]   ;;  %v7673_v22 = vld [vmem:[#allocation11 + $0x30] ss:$12 sps:$4 sm:$0xff]   ;;  %v7674_v23 = vld [vmem:[#allocation11 + $0x38] ss:$12 sps:$4 sm:$0xff]  }
 0x162   : > { %991 = vmatprep.subr.bf16.mxu0 %v7667_v10  ;;  %7307 = vmatprep.subr.bf16.mxu1 %v8438_v8  ;;  %v7675_v24 = vld [vmem:[#allocation11 + $0x4c] ss:$12 sps:$4 sm:$0xff]   ;;  %v7677_v25 = vld [vmem:[#allocation11 + $0x48] ss:$12 sps:$4 sm:$0xff]   ;;  %v7678_v26 = vld [vmem:[#allocation11 + $0x50] ss:$12 sps:$4 sm:$0xff]  }
 0x163   : > { %v7679_v27 = vld [vmem:[#allocation11 + $0x64] ss:$12 sps:$4 sm:$0xff]   ;;  %v7681_v28 = vld [vmem:[#allocation11 + $0x60] ss:$12 sps:$4 sm:$0xff]   ;;  %v7682_v29 = vld [vmem:[#allocation11 + $0x68] ss:$12 sps:$4 sm:$0xff]  }
 0x164   : > { %7308 = vmatpush3.bf16.msra.mxu1 %v7670_v20  ;;  %v7683_v30 = vld [vmem:[#allocation11 + $0x7c] ss:$12 sps:$4 sm:$0xff]   ;;  %v7685_v31 = vld [vmem:[#allocation11 + $0x78] ss:$12 sps:$4 sm:$0xff]   ;;  %v7686_v32 = vld [vmem:[#allocation11 + $0x80] ss:$12 sps:$4 sm:$0xff]  }
 0x165   : > { %774 = vadd.xlane.f32.xlu0 %v8911_v5  ;;  %992 = vmatpush1.bf16.msra.mxu0 %v7669_v19  ;;  %v7687_v33 = vld [vmem:[#allocation11 + $0x94] ss:$12 sps:$4 sm:$0xff]   ;;  %v7689_v35 = vld [vmem:[#allocation11 + $0x90] ss:$12 sps:$4 sm:$0xff]   ;;  %v7690_v36 = vld [vmem:[#allocation11 + $0x98] ss:$12 sps:$4 sm:$0xff]  }
 0x166   : > { %7309 = vmatprep.subr.bf16.mxu1 %v8438_v8  ;;  %993 = vmatprep.subr.bf16.mxu0 %v7671_v21  ;;  %v7691_v37 = vld [vmem:[#allocation11 + $0xac] ss:$12 sps:$4 sm:$0xff]   ;;  %v7693_v38 = vld [vmem:[#allocation11 + $0xa8] ss:$12 sps:$4 sm:$0xff]   ;;  %v7694_v39 = vld [vmem:[#allocation11 + $0xb0] ss:$12 sps:$4 sm:$0xff]  }
 0x167   : > { %v6866_v48 = vld [vmem:[#allocation8] ss:$0 sm:$0xff]  ;;  %v6867_v52 = vld [vmem:[#allocation10] ss:$0 sm:$0xff]  ;;  %v8944_v58 = vshrl.u32 %v752_v57, 7  ;;  %vm1957_vm1 = vcmask 261120  }
 0x168   : > { %7310 = vmatpush3.bf16.msra.mxu1 %v7674_v23  ;;  %v8952_v60 = vld [vmem:[%s9906_s6] sm:$0x7]  ;;  %v8445_v19 = vmov 1934713408   ;;  %vm2162_vm8 = vcmask 130048   ;;  %vm2733_vm9 = vcmask 523264  }
 0x169   : > { %994 = vmatpush1.bf16.msra.mxu0 %v7673_v22  ;;  %7311 = vmatprep.subr.bf16.mxu1 %v8438_v8  ;;  %v8947_v59 = vsub.s32 0, %v8944_v58  ;;  %v8955_v61 = vsub.s32 1, %v8944_v58  ;;  %v1128_v20 = vunpack.c.l.s4 %v8445_v19  ;;  %vm2736_vm10 = vcmask 785408   ;;  %s9991_s7 = sld [smem:[#allocation35_spill]]  ;;  %s9992_s19 = sld [smem:[#allocation36_spill]] }
 0x16a   : > { %995 = vmatprep.subr.bf16.mxu0 %v7675_v24  ;;  %s9993_s4 = sld [smem:[#allocation37_spill]]  ;;  %s9995_s10 = sld [smem:[#allocation41_spill]] }
 0x16b   : > { %v849_v62 = vrot.slane %v8952_v60, %v8947_v59  ;;  %v853_v63 = vrot.slane %v8952_v60, %v8955_v61  ;;  %v1129_v24 = vunpack.c.0.s8 %v1128_v20  ;;  %s9997_s5 = sld [smem:[#allocation43_spill]]  ;;  %s6865_s26 = sshll.u32 %s8874_s13, 5 }
 0x16c   : > { %7312 = vmatpush3.bf16.msra.mxu1 %v7678_v26  ;;  %s743_s15 = scalar_lea.vmem [#allocation19], %s6865_s26  ;;  %s7148_s20 = sshll.u32 %s8566_s1, 9 }
 0x16d   : > { %996 = vmatpush1.bf16.msra.mxu0 %v7677_v25  ;;  %7313 = vmatprep.subr.bf16.mxu1 %v8438_v8  ;;  %s6671_s11 = sshll.u32 %s743_s15, 4  ;;  %s9998_s2 = sld [smem:[#allocation44_spill]]  ;;  %s9851_s11 = int_to_ptr.vmem [resolvable:$true] %s6671_s11 }
 0x16e   : > { %997 = vmatprep.subr.bf16.mxu0 %v7679_v27  ;;  %s8327_s1 = scalar_lea.vmem %s9851_s11, 512  ;;  %p9999_p5 = scmp.ne.s32.totalorder %s9973_s3, 0 }
 0x16f   : > { %p8328_p0 = scmp.ne.s32.totalorder %s9851_s11, %s8327_s1 }
 0x170   : > { %7314 = vmatpush3.bf16.msra.mxu1 %v7682_v29 }
 0x171   : > { %998 = vmatpush1.bf16.msra.mxu0 %v7681_v28  ;;  %7315 = vmatprep.subr.bf16.mxu1 %v8438_v8  ;;  %p8329_p3 = pnand %p8328_p0, %p9999_p5 }
 0x172   : > { %999 = vmatprep.subr.bf16.mxu0 %v7683_v30 }
 0x173   : > { %s9856_s0 = scalar_lea.hbm %s9998_s2, %s7148_s20  ;;  %p8330_p8 = pneg %p8329_p3 }
 0x174   : > { %7316 = vmatpush3.bf16.msra.mxu1 %v7686_v32  ;;  %v8993_v32 = vsub.s32 %v1129_v24, %v8944_v58 }
 0x175   : > { %1000 = vmatpush1.bf16.msra.mxu0 %v7685_v31  ;;  %7317 = vmatprep.subr.bf16.mxu1 %v8438_v8 }
 0x176   : > { %1001 = vmatprep.subr.bf16.mxu0 %v7687_v33 }
 0x178   : > { %7318 = vmatpush3.bf16.msra.mxu1 %v7690_v36 }
 0x179   : > { %1002 = vmatpush1.bf16.msra.mxu0 %v7689_v35  ;;  %7319 = vmatprep.subr.bf16.mxu1 %v8438_v8 }
 0x17a   : > { %1003 = vmatprep.subr.bf16.mxu0 %v7691_v37 }
 0x17c   : > { %7320 = vmatpush3.bf16.msra.mxu1 %v7694_v39 }
 0x17d   : > { %1004 = vmatpush1.bf16.msra.mxu0 %v7693_v38  ;;  %7331 = vmatprep.subr.bf16.mxu1 %v8438_v8 }
 0x17e   : > { %7325 = vmatprep.subr.bf16.mxu0 %v8438_v8 }
 0x1ee   : > { %v773_v11 = vpop.xlane.xlu0 %772 }
 0x1ef   : > { %v777_v12 = vmul.f32 0.0078125, %v773_v11 }
 0x1f1   : > { %v8917_v13 = vsub.f32 %v8908_v3, %v777_v12 }
 0x1f2   : > { %v775_v14 = vpop.xlane.xlu0 %774 }
 0x1f3   : > { %v778_v15 = vmul.f32 0.0078125, %v775_v14  ;;  %v781_v16 = vmul.f32 %v8917_v13, %v8917_v13 }
 0x1f5   : > { %v8922_v17 = vsub.f32 %v8911_v5, %v778_v15  ;;  %783 = vadd.xlane.f32.xlu1 %v781_v16  ;;  %v8444_v15 = vmov 1983009808  }
 0x1f6   : > { %v1096_v16 = vunpack.c.l.s4 %v8444_v15 }
 0x1f7   : > { %v782_v18 = vmul.f32 %v8922_v17, %v8922_v17 }
 0x1f8   : > { %v1097_v21 = vunpack.c.0.s8 %v1096_v16 }
 0x1f9   : > { %785 = vadd.xlane.f32.xlu1 %v782_v18 }
 0x1fa   : > { %v8990_v25 = vsub.s32 %v1097_v21, %v8944_v58 }
 0x282   : > { %v784_v40 = vpop.xlane.xlu1 %783 }
 0x283   : > { %v787_v41 = vmul.f32 0.0078125, %v784_v40 }
 0x285   : > { %v789_v42 = vadd.f32 1e-05, %v787_v41 }
 0x286   : > { %v786_v43 = vpop.xlane.xlu1 %785 }
 0x287   : > { %7927 = vrsqrt.f32 %v789_v42  ;;  %v788_v44 = vmul.f32 0.0078125, %v786_v43 }
 0x289   : > { %v790_v45 = vadd.f32 1e-05, %v788_v44 }
 0x28b   : > { %7929 = vrsqrt.f32 %v790_v45 }
 0x291   : > { %v7928_v46 = vpop.eup %7927 }
 0x292   : > { %v793_v47 = vmul.f32 %v7928_v46, %v8917_v13 }
 0x294   : > { %v801_v51 = vmul.f32 %v6866_v48, %v793_v47 }
 0x295   : > { %v7930_v49 = vpop.eup %7929 }
 0x296   : > { %v794_v50 = vmul.f32 %v7930_v49, %v8922_v17  ;;  %v809_v54 = vadd.f32 %v6867_v52, %v801_v51 }
 0x298   : > { %v802_v53 = vmul.f32 %v6866_v48, %v794_v50 }
 0x29a   : > { %v810_v55 = vadd.f32 %v6867_v52, %v802_v53 }
 0x29c   : > { %v811_v56 = vpack.c.bf16 %v810_v55, %v809_v54 }
 0x29e   : > { %1022 = vmatmul.mubr.bf16.vlgmr.msra.gmra.mrb[0].mxu0 %v811_v56  ;;  %7322 = vmatmul.mubr.bf16.vlgmr.msra.gmra.mrb[0].mxu1 %v811_v56 }
 0x29f   : > { %7327 = vmatprep.mubr.msk.bf16.mxu0 %vm8440_vm0, %v8438_v8  ;;  %7333 = vmatprep.mubr.msk.bf16.mxu1 %vm8440_vm0, %v8438_v8 }
 0x371   : > { %v1023_v0 = vpop.f32.mrb[0].mxu0  ;;  %v8961_v1 = vpop.f32.mrb[0].mxu1 }
 0x372   : > { %v8963_v2 = vadd.f32 %v1023_v0, %v849_v62  ;;  %v1025_v4 = vpop.f32.mrb[1].mxu0  ;;  %v7323_v6 = vpop.f32.mrb[1].mxu1 }
 0x373   : > { %v1026_v7 = vadd.f32 %v1025_v4, %v853_v63  ;;  %v1027_v9 = vpop.f32.mrb[2].mxu0  ;;  %v8965_v10 = vpop.f32.mrb[2].mxu1 }
 0x374   : > { %v1029_v11 = vpop.f32.mrb[3].mxu0  ;;  %v7324_v12 = vpop.f32.mrb[3].mxu1  ;;  %1075 = vrot.lane.b32.xlu0 %v8963_v2, %s8441_s9  ;;  %v8970_v13 = vadd.f32 %v1027_v9, %v849_v62 }
 0x375   : > { %1373 = vrot.lane.b32.xlu1 %v1026_v7, %s8442_s22  ;;  %v1030_v14 = vadd.f32 %v1029_v11, %v853_v63 }
 0x378   : > { %1367 = vrot.lane.b32.xlu0 %v1026_v7, %s8441_s9 }
 0x379   : > { %1077 = vrot.lane.b32.xlu1 %v8970_v13, %s8441_s9 }
 0x37c   : > { %1379 = vrot.lane.b32.xlu0 %v1026_v7, %s8443_s16 }
 0x37d   : > { %1369 = vrot.lane.b32.xlu1 %v1030_v14, %s8441_s9 }
 0x380   : > { %1081 = vrot.lane.b32.xlu0 %v8963_v2, %s8442_s22 }
 0x381   : > { %1375 = vrot.lane.b32.xlu1 %v1030_v14, %s8442_s22 }
 0x384   : > { %1087 = vrot.lane.b32.xlu0 %v8963_v2, %s8443_s16 }
 0x385   : > { %1381 = vrot.lane.b32.xlu1 %v1030_v14, %s8443_s16 }
 0x389   : > { %1083 = vrot.lane.b32.xlu1 %v8970_v13, %s8442_s22 }
 0x38d   : > { %1089 = vrot.lane.b32.xlu1 %v8970_v13, %s8443_s16 }
 0x3e6   : > { %v1076_v17 = vpop.permute.xlu0 %1075 }
 0x3e7   : > { %v1374_v18 = vpop.permute.xlu1 %1373 }
 0x3e8   : > { %v1385_v26 = vcombine.low %v1026_v7, %v1374_v18  ;;  %v1386_v27 = vcombine.high %v1026_v7, %v1374_v18 }
 0x3ea   : > { %v1368_v22 = vpop.permute.xlu0 %1367  ;;  %v1393_v33 = vrot.slane %v1385_v26, %v8990_v25  ;;  %v1400_v35 = vrot.slane %v1386_v27, %v8990_v25 }
 0x3eb   : > { %v8987_v23 = vpop.permute.xlu1 %1077 }
 0x3ee   : > { %v1380_v28 = vpop.permute.xlu0 %1379 }
 0x3ef   : > { %v1401_v29 = vcombine.low %v1368_v22, %v1380_v28  ;;  %v1402_v30 = vcombine.high %v1368_v22, %v1380_v28  ;;  %v1370_v31 = vpop.permute.xlu1 %1369 }
 0x3f1   : > { %v1409_v36 = vrot.slane %v1401_v29, %v8990_v25  ;;  %v1416_v37 = vrot.slane %v1402_v30, %v8990_v25 }
 0x3f2   : > { %v1082_v38 = vpop.permute.xlu0 %1081 }
 0x3f3   : > { %v1417_v39 = vcombine.low %v1393_v33, %v1409_v36  ;;  %v1418_v40 = vcombine.high %v1393_v33, %v1409_v36  ;;  %v1433_v41 = vcombine.low %v1400_v35, %v1416_v37  ;;  %v1434_v42 = vcombine.high %v1400_v35, %v1416_v37  ;;  %v1376_v43 = vpop.permute.xlu1 %1375 }
 0x3f4   : > { %v1093_v44 = vcombine.low %v8963_v2, %v1082_v38  ;;  %v1094_v45 = vcombine.high %v8963_v2, %v1082_v38  ;;  %v1453_v46 = vcombine.low %v1030_v14, %v1376_v43  ;;  %v1454_v47 = vcombine.high %v1030_v14, %v1376_v43 }
 0x3f5   : > { %v1425_v48 = vrot.slane %v1417_v39, %v8993_v32  ;;  %v1432_v49 = vrot.slane %v1418_v40, %v8993_v32  ;;  %v1441_v50 = vrot.slane %v1433_v41, %v8993_v32  ;;  %v1448_v51 = vrot.slane %v1434_v42, %v8993_v32 }
 0x3f6   : > { %v1088_v52 = vpop.permute.xlu0 %1087  ;;  %v1101_v6 = vrot.slane %v1093_v44, %v8990_v25  ;;  %v1108_v7 = vrot.slane %v1094_v45, %v8990_v25  ;;  %v1461_v9 = vrot.slane %v1453_v46, %v8990_v25  ;;  %v1468_v11 = vrot.slane %v1454_v47, %v8990_v25 }
 0x3f7   : > { %v1521_v53 = vcombine.low %v1425_v48, %v1432_v49  ;;  %v6896_v54 = vcombine.high %v1425_v48, %v1432_v49  ;;  %v1537_v55 = vcombine.low %v1441_v50, %v1448_v51  ;;  %v6897_v56 = vcombine.high %v1441_v50, %v1448_v51  ;;  %v1382_v62 = vpop.permute.xlu1 %1381 }
 0x3f8   : > { %v1109_v63 = vcombine.low %v1076_v17, %v1088_v52  ;;  %v1110_v0 = vcombine.high %v1076_v17, %v1088_v52  ;;  %v1469_v4 = vcombine.low %v1370_v31, %v1382_v62  ;;  %v1470_v2 = vcombine.high %v1370_v31, %v1382_v62 }
 0x3f9   : > { %v9014_v17 = vrot.slane %v1521_v53, %v8990_v25  ;;  %v9017_v18 = vrot.slane %v6896_v54, %v8990_v25  ;;  %v9020_v19 = vrot.slane %v1537_v55, %v8990_v25  ;;  %v9023_v20 = vrot.slane %v6897_v56, %v8990_v25 }
 0x3fa   : > { %v1117_v12 = vrot.slane %v1109_v63, %v8990_v25  ;;  %v1124_v14 = vrot.slane %v1110_v0, %v8990_v25  ;;  %v1477_v15 = vrot.slane %v1469_v4, %v8990_v25  ;;  %v1484_v16 = vrot.slane %v1470_v2, %v8990_v25 }
 0x3fb   : > { %v1084_v27 = vpop.permute.xlu1 %1083  ;;  %v1553_v51 = vcombine.low %v9014_v17, %v9017_v18  ;;  %v1569_v52 = vcombine.low %v9020_v19, %v9023_v20  ;;  %v1554_v53 = vcombine.high %v9014_v17, %v9017_v18 }
 0x3fc   : > { %v1125_v21 = vcombine.low %v1101_v6, %v1117_v12  ;;  %v1126_v22 = vcombine.high %v1101_v6, %v1117_v12  ;;  %v1141_v24 = vcombine.low %v1108_v7, %v1124_v14  ;;  %v1142_v26 = vcombine.high %v1108_v7, %v1124_v14 }
 0x3fd   : > { %v1485_v28 = vcombine.low %v1461_v9, %v1477_v15  ;;  %v1486_v29 = vcombine.high %v1461_v9, %v1477_v15  ;;  %v1501_v30 = vcombine.low %v1468_v11, %v1484_v16  ;;  %v1502_v31 = vcombine.high %v1468_v11, %v1484_v16 }
 0x3fe   : > { %v1133_v33 = vrot.slane %v1125_v21, %v8993_v32  ;;  %v1140_v35 = vrot.slane %v1126_v22, %v8993_v32  ;;  %v1149_v36 = vrot.slane %v1141_v24, %v8993_v32  ;;  %v1156_v37 = vrot.slane %v1142_v26, %v8993_v32 }
 0x3ff   : > { %v1493_v38 = vrot.slane %v1485_v28, %v8993_v32  ;;  %v1500_v39 = vrot.slane %v1486_v29, %v8993_v32  ;;  %v1509_v40 = vrot.slane %v1501_v30, %v8993_v32  ;;  %v1516_v41 = vrot.slane %v1502_v31, %v8993_v32  ;;  %v1090_v50 = vpop.permute.xlu1 %1089 }
 0x400   : > { %v1229_v46 = vcombine.low %v1133_v33, %v1140_v35  ;;  %v6892_v47 = vcombine.high %v1133_v33, %v1140_v35  ;;  %v1245_v48 = vcombine.low %v1149_v36, %v1156_v37  ;;  %v6893_v49 = vcombine.high %v1149_v36, %v1156_v37 }
 0x401   : > { %v1589_v42 = vcombine.low %v1493_v38, %v1500_v39  ;;  %v6898_v43 = vcombine.high %v1493_v38, %v1500_v39  ;;  %v1605_v44 = vcombine.low %v1509_v40, %v1516_v41  ;;  %v6899_v45 = vcombine.high %v1509_v40, %v1516_v41 }
 0x402   : > { %v1161_v63 = vcombine.low %v8970_v13, %v1084_v27  ;;  %v1162_v0 = vcombine.high %v8970_v13, %v1084_v27  ;;  %v1177_v4 = vcombine.low %v8987_v23, %v1090_v50  ;;  %v1178_v2 = vcombine.high %v8987_v23, %v1090_v50 }
 0x403   : > { %v1596_v54 = vrot.slane %v1589_v42, %v8990_v25  ;;  %v1604_v55 = vrot.slane %v6898_v43, %v8990_v25  ;;  %v9042_v56 = vrot.slane %v1605_v44, %v8990_v25  ;;  %v9045_v62 = vrot.slane %v6899_v45, %v8990_v25 }
 0x404   : > { %v9052_v6 = vrot.slane %v1229_v46, %v8990_v25  ;;  %v9055_v7 = vrot.slane %v6892_v47, %v8990_v25  ;;  %v9058_v9 = vrot.slane %v1245_v48, %v8990_v25  ;;  %v9061_v11 = vrot.slane %v6893_v49, %v8990_v25 }
 0x405   : > { %v1169_v12 = vrot.slane %v1161_v63, %v8990_v25  ;;  %v1176_v13 = vrot.slane %v1162_v0, %v8990_v25  ;;  %v1185_v14 = vrot.slane %v1177_v4, %v8990_v25  ;;  %v1192_v23 = vrot.slane %v1178_v2, %v8990_v25 }
 0x406   : > { %v1561_v15 = vrot.slane %v1553_v51, %v8993_v32  ;;  %v1577_v16 = vrot.slane %v1569_v52, %v8993_v32  ;;  %v1621_v17 = vcombine.low %v1596_v54, %v1604_v55  ;;  %v1637_v18 = vcombine.low %v9042_v56, %v9045_v62 }
 0x407   : > { %v1193_v21 = vcombine.low %v1169_v12, %v1185_v14  ;;  %v1194_v22 = vcombine.high %v1169_v12, %v1185_v14  ;;  %v1209_v24 = vcombine.low %v1176_v13, %v1192_v23  ;;  %v1210_v26 = vcombine.high %v1176_v13, %v1192_v23 }
 0x408   : > { %v1261_v27 = vcombine.low %v9052_v6, %v9055_v7  ;;  %v1277_v28 = vcombine.low %v9058_v9, %v9061_v11  ;;  %v1629_v29 = vrot.slane %v1621_v17, %v8993_v32  ;;  %v1645_v30 = vrot.slane %v1637_v18, %v8993_v32 }
 0x409   : > { %v1201_v31 = vrot.slane %v1193_v21, %v8993_v32  ;;  %v1208_v33 = vrot.slane %v1194_v22, %v8993_v32  ;;  %v1217_v35 = vrot.slane %v1209_v24, %v8993_v32  ;;  %v1224_v36 = vrot.slane %v1210_v26, %v8993_v32 }
 0x40a   : > { %v1585_v37 = vcombine.low %v1561_v15, %v1577_v16  ;;  %v1653_v38 = vcombine.low %v1629_v29, %v1645_v30  ;;  %v1586_v39 = vcombine.high %v1561_v15, %v1577_v16  ;;  %v1654_v40 = vcombine.high %v1629_v29, %v1645_v30 }
 0x40b   : > { %v1297_v41 = vcombine.low %v1201_v31, %v1208_v33  ;;  %v6894_v42 = vcombine.high %v1201_v31, %v1208_v33  ;;  %v1313_v43 = vcombine.low %v1217_v35, %v1224_v36  ;;  %v6895_v44 = vcombine.high %v1217_v35, %v1224_v36 }
 0x40c   : > { %v1953_v45 = vpack.c.bf16 %v1653_v38, %v1585_v37  ;;  %v1954_v46 = vpack.c.bf16 %v1654_v40, %v1586_v39  ;;  %v1570_v47 = vcombine.high %v9020_v19, %v9023_v20  ;;  %v1269_v52 = vrot.slane %v1261_v27, %v8993_v32 }
 0x40d   : > { %v1304_v48 = vrot.slane %v1297_v41, %v8990_v25  ;;  %v1312_v49 = vrot.slane %v6894_v42, %v8990_v25  ;;  %v1320_v50 = vrot.slane %v1313_v43, %v8990_v25  ;;  %v1328_v51 = vrot.slane %v6895_v44, %v8990_v25  ;;  %v751_v43 = vld [vmem:[%s655_s25] sm:$0x1]  ;;  %s9994_s25 = sld [smem:[#allocation39_spill]] }
 0x40e   : > { %v1962_v63 = vsel %vm1957_vm1, %v1953_v45, 0  ;;  %v2009_v0 = vsel %vm1957_vm1, %v1954_v46, 0  ;;  %v1622_v4 = vcombine.high %v1596_v54, %v1604_v55  ;;  %v1285_v2 = vrot.slane %v1277_v28, %v8993_v32 }
 0x40f   : > { %v1329_v12 = vcombine.low %v1304_v48, %v1312_v49  ;;  %v1345_v13 = vcombine.low %v1320_v50, %v1328_v51  ;;  %7326 = vmatpush3.bf16.xpose.msra.mxu0 %v1962_v63  ;;  %v1568_v19 = vrot.slane %v1554_v53, %v8993_v32  ;;  %7332 = vmatpush3.bf16.xpose.msra.mxu1 %v2009_v0  ;;  %vm759_vm2 = vcmp.gt.f32.partialorder %v751_v43, 0.5 }
 0x410   : > { %7337 = vmatprep.subr.bf16.mxu0 %v8438_v8  ;;  %v1584_v20 = vrot.slane %v1570_v47, %v8993_v32  ;;  %v1636_v14 = vrot.slane %v1622_v4, %v8993_v32  ;;  %v1638_v23 = vcombine.high %v9042_v56, %v9045_v62  ;;  %v1262_v54 = vcombine.high %v9052_v6, %v9055_v7 }
 0x411   : > { %v1337_v55 = vrot.slane %v1329_v12, %v8993_v32  ;;  %v1353_v15 = vrot.slane %v1345_v13, %v8993_v32  ;;  %7343 = vmatprep.subr.bf16.mxu1 %v8438_v8  ;;  %v1278_v53 = vcombine.high %v9058_v9, %v9061_v11  ;;  %v1330_v16 = vcombine.high %v1304_v48, %v1312_v49 }
 0x412   : > { %v1346_v17 = vcombine.high %v1320_v50, %v1328_v51  ;;  %v1652_v18 = vrot.slane %v1638_v23, %v8993_v32  ;;  %v1293_v21 = vcombine.low %v1269_v52, %v1285_v2  ;;  %v1294_v24 = vcombine.high %v1269_v52, %v1285_v2 }
 0x413   : > { %v1361_v22 = vcombine.low %v1337_v55, %v1353_v15  ;;  %v1362_v56 = vcombine.high %v1337_v55, %v1353_v15  ;;  %v1587_v62 = vcombine.low %v1568_v19, %v1584_v20  ;;  %v1588_v6 = vcombine.high %v1568_v19, %v1584_v20 }
 0x414   : > { %v1655_v26 = vcombine.low %v1636_v14, %v1652_v18  ;;  %v1656_v7 = vcombine.high %v1636_v14, %v1652_v18  ;;  %v1344_v29 = vrot.slane %v1330_v16, %v8993_v32  ;;  %v1360_v30 = vrot.slane %v1346_v17, %v8993_v32 }
 0x415   : > { %v1949_v27 = vpack.c.bf16 %v1361_v22, %v1293_v21  ;;  %v1950_v28 = vpack.c.bf16 %v1362_v56, %v1294_v24  ;;  %v1276_v11 = vrot.slane %v1262_v54, %v8993_v32  ;;  %v1292_v33 = vrot.slane %v1278_v53, %v8993_v32 }
 0x416   : > { %v1955_v31 = vpack.c.bf16 %v1655_v26, %v1587_v62  ;;  %v1956_v9 = vpack.c.bf16 %v1656_v7, %v1588_v6  ;;  %v1363_v37 = vcombine.low %v1344_v29, %v1360_v30  ;;  %v1364_v38 = vcombine.high %v1344_v29, %v1360_v30 }
 0x417   : > { %7328 = vmatmul.mubr.msk.bf16.vlgmr.msra.gmra.mrb[4].mxu0 %vm1957_vm1, %v1949_v27  ;;  %7334 = vmatmul.mubr.msk.bf16.vlgmr.msra.gmra.mrb[4].mxu1 %vm1957_vm1, %v1950_v28  ;;  %v1295_v39 = vcombine.low %v1276_v11, %v1292_v33  ;;  %v1296_v40 = vcombine.high %v1276_v11, %v1292_v33  ;;  %v760_v44 = vsel %vm759_vm2, 1, %v8439_v34  ;;  %v756_v45 = vand.u32 127, %v752_v57 }
 0x418   : > { %v2056_v35 = vsel %vm1957_vm1, %v1955_v31, 0  ;;  %v2103_v36 = vsel %vm1957_vm1, %v1956_v9, 0  ;;  %7339 = vmatprep.mubr.msk.bf16.mxu0 %vm8440_vm0, %v8438_v8  ;;  %7345 = vmatprep.mubr.msk.bf16.mxu1 %vm8440_vm0, %v8438_v8  ;;  %v764_v46 = vrot.slane %v760_v44, %v8947_v59  ;;  %v754_v47 = vadd.s32 8, %v8944_v58 }
 0x419   : > { %7338 = vmatpush3.bf16.xpose.msra.mxu0 %v2056_v35  ;;  %7344 = vmatpush3.bf16.xpose.msra.mxu1 %v2103_v36  ;;  %v1951_v41 = vpack.c.bf16 %v1363_v37, %v1295_v39  ;;  %v1952_v42 = vpack.c.bf16 %v1364_v38, %v1296_v40  ;;  %vm757_vm3 = vcmp.ge.s32.totalorder %v8944_v58, %v756_v45  ;;  %v8446_v50 = vmov -1e+09  }
 0x41a   : > { %7349 = vmatprep.subr.bf16.mxu0 %v8438_v8  ;;  %7355 = vmatprep.subr.bf16.mxu1 %v8438_v8  ;;  %vm765_vm4 = vcmp.eq.s32.totalorder %v764_v46, 1  ;;  %vm758_vm5 = vcmp.ge.s32.totalorder %v754_v47, %v756_v45  ;;  %v9146_v30 = vsub.s32 2, %v8944_v58 }
 0x41b   : > { %vm766_vm6 = vmand %vm757_vm3, %vm765_vm4 }
 0x41c   : > { %vm767_vm7 = vmand %vm758_vm5, %vm765_vm4  ;;  %v9132_v51 = vsel %vm766_vm6, 0.0, %v8446_v50  ;;  %v857_v11 = vrot.slane %v8952_v60, %v9146_v30 }
 0x41d   : > { %v9134_v12 = vsel %vm767_vm7, 0.0, %v8446_v50 }
 0x41e   : > { %v9154_v35 = vadd.f32 %v8965_v10, %v857_v11  ;;  %v9159_v36 = vadd.f32 %v8961_v1, %v857_v11 }
 0x420   : > { %7340 = vmatmul.mubr.msk.bf16.vlgmr.msra.gmra.mrb[8].mxu0 %vm1957_vm1, %v1951_v41  ;;  %7346 = vmatmul.mubr.msk.bf16.vlgmr.msra.gmra.mrb[8].mxu1 %vm1957_vm1, %v1952_v42 }
 0x421   : > { %7351 = vmatprep.mubr.msk.bf16.mxu0 %vm8440_vm0, %v8438_v8  ;;  %7357 = vmatprep.mubr.msk.bf16.mxu1 %vm8440_vm0, %v8438_v8 }
 0x4ea   : > { %v1998_v48 = vpop.f32.mrb[4].mxu0  ;;  %v2045_v49 = vpop.f32.mrb[4].mxu1 }
 0x4eb   : > { %v2146_v52 = vmul.f32 0.17677669, %v1998_v48  ;;  %v2148_v63 = vmul.f32 0.17677669, %v2045_v49  ;;  %v7329_v0 = vpop.f32.mrb[5].mxu0  ;;  %v7335_v4 = vpop.f32.mrb[5].mxu1 }
 0x4ec   : > { %v2001_v57 = vpop.f32.mrb[6].mxu0  ;;  %v2048_v2 = vpop.f32.mrb[6].mxu1 }
 0x4ed   : > { %v2147_v13 = vmul.f32 0.17677669, %v2001_v57  ;;  %v7330_v19 = vpop.f32.mrb[7].mxu0  ;;  %v7336_v20 = vpop.f32.mrb[7].mxu1  ;;  %v2154_v14 = vadd.f32 %v2146_v52, %v9132_v51  ;;  %v2149_v23 = vmul.f32 0.17677669, %v2048_v2  ;;  %v2156_v15 = vadd.f32 %v2148_v63, %v9132_v51 }
 0x4ef   : > { %v2163_v54 = vsel %vm2162_vm8, %v2154_v14, -inf  ;;  %v2155_v55 = vadd.f32 %v2147_v13, %v9134_v12  ;;  %v2169_v18 = vsel %vm2162_vm8, %v2156_v15, -inf  ;;  %v2157_v21 = vadd.f32 %v2149_v23, %v9134_v12 }
 0x4f0   : > { %2164 = vmax.xlane.f32.xlu0 %v2163_v54 }
 0x4f1   : > { %v2166_v53 = vsel %vm2162_vm8, %v2155_v55, -inf  ;;  %v2172_v28 = vsel %vm2162_vm8, %v2157_v21, -inf }
 0x4f2   : > { %2167 = vmax.xlane.f32.xlu1 %v2166_v53 }
 0x4f3   : > { %v2139_v16 = vpop.f32.mrb[8].mxu1  ;;  %v2092_v17 = vpop.f32.mrb[8].mxu0 }
 0x4f4   : > { %v2150_v22 = vmul.f32 0.17677669, %v2092_v17  ;;  %v7341_v24 = vpop.f32.mrb[9].mxu0  ;;  %v7347_v56 = vpop.f32.mrb[9].mxu1  ;;  %2170 = vmax.xlane.f32.xlu0 %v2169_v18  ;;  %v2152_v27 = vmul.f32 0.17677669, %v2139_v16 }
 0x4f5   : > { %v2142_v62 = vpop.f32.mrb[10].mxu1  ;;  %v2095_v26 = vpop.f32.mrb[10].mxu0 }
 0x4f6   : > { %v7342_v6 = vpop.f32.mrb[11].mxu0  ;;  %v7348_v7 = vpop.f32.mrb[11].mxu1  ;;  %v2158_v29 = vadd.f32 %v2150_v22, %v9132_v51  ;;  %v2160_v9 = vadd.f32 %v2152_v27, %v9132_v51  ;;  %v2151_v60 = vmul.f32 0.17677669, %v2095_v26  ;;  %v2153_v37 = vmul.f32 0.17677669, %v2142_v62 }
 0x4f8   : > { %2173 = vmax.xlane.f32.xlu0 %v2172_v28  ;;  %v2175_v31 = vsel %vm2162_vm8, %v2158_v29, -inf  ;;  %v2181_v33 = vsel %vm2162_vm8, %v2160_v9, -inf  ;;  %v2159_v10 = vadd.f32 %v2151_v60, %v9134_v12  ;;  %v2161_v39 = vadd.f32 %v2153_v37, %v9134_v12 }
 0x4fa   : > { %v2178_v38 = vsel %vm2162_vm8, %v2159_v10, -inf  ;;  %v2184_v1 = vsel %vm2162_vm8, %v2161_v39, -inf }
 0x4fc   : > { %2176 = vmax.xlane.f32.xlu0 %v2175_v31 }
 0x500   : > { %2182 = vmax.xlane.f32.xlu0 %v2181_v33 }
 0x503   : > { %1661 = vrot.lane.b32.xlu1 %v9154_v35, %s8441_s9 }
 0x507   : > { %1665 = vrot.lane.b32.xlu1 %v9159_v36, %s8442_s22 }
 0x516   : > { %1659 = vrot.lane.b32.xlu0 %v9159_v36, %s8441_s9 }
 0x51a   : > { %1671 = vrot.lane.b32.xlu0 %v9159_v36, %s8443_s16 }
 0x52b   : > { %2179 = vmax.xlane.f32.xlu1 %v2178_v38 }
 0x52f   : > { %2185 = vmax.xlane.f32.xlu1 %v2184_v1 }
 0x540   : > { %1667 = vrot.lane.b32.xlu1 %v9154_v35, %s8442_s22 }
 0x57d   : > { %v2165_v40 = vpop.xlane.xlu0 %2164 }
 0x57e   : > { %v2187_v41 = vsub.f32 %v2154_v14, %v2165_v40 }
 0x57f   : > { %v2168_v42 = vpop.xlane.xlu1 %2167 }
 0x580   : > { %v2195_v43 = vmul.f32 1.442695, %v2187_v41  ;;  %v2188_v44 = vsub.f32 %v2155_v55, %v2168_v42 }
 0x581   : > { %v2171_v45 = vpop.xlane.xlu0 %2170 }
 0x582   : > { %7931 = vpow2.f32 %v2195_v43  ;;  %v2197_v46 = vmul.f32 1.442695, %v2188_v44  ;;  %v2189_v47 = vsub.f32 %v2156_v15, %v2171_v45 }
 0x583   : > { %v1662_v22 = vpop.permute.xlu1 %1661 }
 0x584   : > { %7933 = vpow2.f32 %v2197_v46  ;;  %v2199_v48 = vmul.f32 1.442695, %v2189_v47 }
 0x585   : > { %v2174_v49 = vpop.xlane.xlu0 %2173 }
 0x586   : > { %7935 = vpow2.f32 %v2199_v48  ;;  %v2190_v50 = vsub.f32 %v2157_v21, %v2174_v49 }
 0x587   : > { %v1666_v24 = vpop.permute.xlu1 %1665 }
 0x588   : > { %v2201_v52 = vmul.f32 1.442695, %v2190_v50  ;;  %v1677_v37 = vcombine.low %v9159_v36, %v1666_v24  ;;  %v1678_v38 = vcombine.high %v9159_v36, %v1666_v24 }
 0x589   : > { %v2177_v63 = vpop.xlane.xlu0 %2176 }
 0x58a   : > { %7937 = vpow2.f32 %v2201_v52  ;;  %v2191_v0 = vsub.f32 %v2158_v29, %v2177_v63  ;;  %v1685_v1 = vrot.slane %v1677_v37, %v8990_v25  ;;  %v1692_v42 = vrot.slane %v1678_v38, %v8990_v25 }
 0x58c   : > { %v9173_v4 = vpop.eup %7931  ;;  %v2203_v57 = vmul.f32 1.442695, %v2191_v0 }
 0x58d   : > { %v2183_v2 = vpop.xlane.xlu0 %2182  ;;  %v2211_v13 = vsel %vm2162_vm8, %v9173_v4, 0.0 }
 0x58e   : > { %v9177_v19 = vpop.eup %7933  ;;  %7939 = vpow2.f32 %v2203_v57  ;;  %v2193_v20 = vsub.f32 %v2160_v9, %v2183_v2  ;;  %2212 = vadd.xlane.f32.xlu0 %v2211_v13 }
 0x58f   : > { %v2214_v14 = vsel %vm2162_vm8, %v9177_v19, 0.0 }
 0x590   : > { %v9181_v23 = vpop.eup %7935  ;;  %v2207_v54 = vmul.f32 1.442695, %v2193_v20  ;;  %2215 = vadd.xlane.f32.xlu1 %v2214_v14 }
 0x591   : > { %v2217_v55 = vsel %vm2162_vm8, %v9181_v23, 0.0  ;;  %v1660_v11 = vpop.permute.xlu0 %1659 }
 0x592   : > { %7941 = vpow2.f32 %v2207_v54  ;;  %2218 = vadd.xlane.f32.xlu0 %v2217_v55 }
 0x594   : > { %v9185_v15 = vpop.eup %7937 }
 0x595   : > { %v2220_v53 = vsel %vm2162_vm8, %v9185_v15, 0.0  ;;  %v1672_v33 = vpop.permute.xlu0 %1671 }
 0x596   : > { %2221 = vadd.xlane.f32.xlu1 %v2220_v53  ;;  %v1693_v60 = vcombine.low %v1660_v11, %v1672_v33 }
 0x598   : > { %v9189_v16 = vpop.eup %7939 }
 0x599   : > { %v2223_v17 = vsel %vm2162_vm8, %v9189_v16, 0.0 }
 0x59a   : > { %2224 = vadd.xlane.f32.xlu0 %v2223_v17 }
 0x59c   : > { %v9193_v18 = vpop.eup %7941 }
 0x59d   : > { %v2229_v21 = vsel %vm2162_vm8, %v9193_v18, 0.0 }
 0x59e   : > { %2230 = vadd.xlane.f32.xlu0 %v2229_v21 }
 0x5a7   : > { %1673 = vrot.lane.b32.xlu1 %v9154_v35, %s8443_s16 }
 0x5b8   : > { %v2180_v56 = vpop.xlane.xlu1 %2179 }
 0x5b9   : > { %v2192_v62 = vsub.f32 %v2159_v10, %v2180_v56  ;;  %v1694_v10 = vcombine.high %v1660_v11, %v1672_v33 }
 0x5bb   : > { %v2205_v26 = vmul.f32 1.442695, %v2192_v62  ;;  %v1708_v40 = vrot.slane %v1694_v10, %v8990_v25 }
 0x5bc   : > { %v2186_v6 = vpop.xlane.xlu1 %2185 }
 0x5bd   : > { %7943 = vpow2.f32 %v2205_v26  ;;  %v2194_v7 = vsub.f32 %v2161_v39, %v2186_v6  ;;  %v1701_v39 = vrot.slane %v1693_v60, %v8990_v25  ;;  %v1725_v45 = vcombine.low %v1692_v42, %v1708_v40 }
 0x5be   : > { %v1726_v46 = vcombine.high %v1692_v42, %v1708_v40 }
 0x5bf   : > { %v2209_v27 = vmul.f32 1.442695, %v2194_v7  ;;  %v1709_v43 = vcombine.low %v1685_v1, %v1701_v39  ;;  %v1710_v44 = vcombine.high %v1685_v1, %v1701_v39  ;;  %v1733_v36 = vrot.slane %v1725_v45, %v8993_v32 }
 0x5c0   : > { %v1668_v41 = vpop.permute.xlu1 %1667  ;;  %v1740_v50 = vrot.slane %v1726_v46, %v8993_v32 }
 0x5c1   : > { %7945 = vpow2.f32 %v2209_v27  ;;  %v1717_v48 = vrot.slane %v1709_v43, %v8993_v32  ;;  %v1724_v49 = vrot.slane %v1710_v44, %v8993_v32  ;;  %v1745_v57 = vcombine.low %v9154_v35, %v1668_v41 }
 0x5c2   : > { %v1746_v2 = vcombine.high %v9154_v35, %v1668_v41  ;;  %v1829_v20 = vcombine.low %v1733_v36, %v1740_v50  ;;  %v6901_v14 = vcombine.high %v1733_v36, %v1740_v50 }
 0x5c3   : > { %v1813_v0 = vcombine.low %v1717_v48, %v1724_v49  ;;  %v6900_v13 = vcombine.high %v1717_v48, %v1724_v49  ;;  %v1753_v21 = vrot.slane %v1745_v57, %v8990_v25 }
 0x5c4   : > { %v1760_v24 = vrot.slane %v1746_v2, %v8990_v25  ;;  %v1836_v6 = vrot.slane %v1829_v20, %v8990_v25  ;;  %v1844_v7 = vrot.slane %v6901_v14, %v8990_v25 }
 0x5c5   : > { %v1820_v17 = vrot.slane %v1813_v0, %v8990_v25  ;;  %v1828_v35 = vrot.slane %v6900_v13, %v8990_v25 }
 0x5c6   : > { %v1861_v38 = vcombine.low %v1836_v6, %v1844_v7  ;;  %v1862_v36 = vcombine.high %v1836_v6, %v1844_v7 }
 0x5c7   : > { %v9199_v28 = vpop.eup %7943  ;;  %v1845_v10 = vcombine.low %v1820_v17, %v1828_v35  ;;  %v1846_v49 = vcombine.high %v1820_v17, %v1828_v35 }
 0x5c8   : > { %v2226_v29 = vsel %vm2162_vm8, %v9199_v28, 0.0  ;;  %v1869_v48 = vrot.slane %v1861_v38, %v8993_v32  ;;  %v1876_v17 = vrot.slane %v1862_v36, %v8993_v32 }
 0x5cb   : > { %v9203_v31 = vpop.eup %7945  ;;  %2227 = vadd.xlane.f32.xlu1 %v2226_v29 }
 0x5cc   : > { %v2232_v9 = vsel %vm2162_vm8, %v9203_v31, 0.0 }
 0x5cd   : > { %2233 = vadd.xlane.f32.xlu0 %v2232_v9 }
 0x61b   : > { %v2213_v63 = vpop.xlane.xlu0 %2212 }
 0x61c   : > { %7947 = vrcp.f32 %v2213_v63 }
 0x61d   : > { %v2216_v47 = vpop.xlane.xlu1 %2215 }
 0x61e   : > { %7949 = vrcp.f32 %v2216_v47  ;;  %v1853_v47 = vrot.slane %v1845_v10, %v8993_v32 }
 0x61f   : > { %v2219_v56 = vpop.xlane.xlu0 %2218 }
 0x623   : > { %v2222_v52 = vpop.xlane.xlu1 %2221 }
 0x624   : > { %7951 = vrcp.f32 %v2222_v52 }
 0x625   : > { %7953 = vrcp.f32 %v2219_v56  ;;  %v1878_v56 = vcombine.high %v1853_v47, %v1869_v48 }
 0x626   : > { %v7948_v46 = vpop.eup %7947 }
 0x627   : > { %v1674_v54 = vpop.permute.xlu1 %1673 }
 0x628   : > { %v1761_v55 = vcombine.low %v1662_v22, %v1674_v54  ;;  %v1762_v53 = vcombine.high %v1662_v22, %v1674_v54  ;;  %v7950_v50 = vpop.eup %7949 }
 0x62a   : > { %v1769_v62 = vrot.slane %v1761_v55, %v8990_v25  ;;  %v1776_v26 = vrot.slane %v1762_v53, %v8990_v25  ;;  %v1860_v53 = vrot.slane %v1846_v49, %v8993_v32  ;;  %v7700_v49 = vld [vmem:[#allocation13 + $0x28] sm:$0xff]  }
 0x62c   : > { %v1777_v22 = vcombine.low %v1753_v21, %v1769_v62  ;;  %v1778_v27 = vcombine.high %v1753_v21, %v1769_v62  ;;  %v1793_v29 = vcombine.low %v1760_v24, %v1776_v26  ;;  %v1794_v9 = vcombine.high %v1760_v24, %v1776_v26 }
 0x62d   : > { %v1877_v21 = vcombine.low %v1853_v47, %v1869_v48  ;;  %v2244_v26 = vmul.f32 %v7950_v50, %v9177_v19  ;;  %v7695_v48 = vld [vmem:[#allocation13] sm:$0xff]  }
 0x62e   : > { %v1785_v11 = vrot.slane %v1777_v22, %v8993_v32  ;;  %v1792_v33 = vrot.slane %v1778_v27, %v8993_v32  ;;  %v1801_v60 = vrot.slane %v1793_v29, %v8993_v32  ;;  %v1808_v37 = vrot.slane %v1794_v9, %v8993_v32  ;;  %v7952_v2 = vpop.eup %7951 }
 0x62f   : > { %v7954_v55 = vpop.eup %7953  ;;  %v2246_v35 = vmul.f32 %v7952_v2, %v9185_v15  ;;  %v2243_v29 = vmul.f32 %v7948_v46, %v9173_v4  ;;  %v2225_v4 = vpop.xlane.xlu0 %2224 }
 0x630   : > { %v1881_v39 = vcombine.low %v1785_v11, %v1792_v33  ;;  %v6902_v1 = vcombine.high %v1785_v11, %v1792_v33  ;;  %v1897_v40 = vcombine.low %v1801_v60, %v1808_v37  ;;  %v6903_v41 = vcombine.high %v1801_v60, %v1808_v37 }
 0x631   : > { %v2245_v9 = vmul.f32 %v7954_v55, %v9181_v23  ;;  %v1879_v11 = vcombine.low %v1860_v53, %v1876_v17  ;;  %v1880_v33 = vcombine.high %v1860_v53, %v1876_v17  ;;  %v2251_v60 = vpack.c.bf16 %v2244_v26, %v2243_v29 }
 0x632   : > { %v1888_v42 = vrot.slane %v1881_v39, %v8990_v25  ;;  %v1896_v43 = vrot.slane %v6902_v1, %v8990_v25  ;;  %v1904_v44 = vrot.slane %v1897_v40, %v8990_v25  ;;  %v1912_v45 = vrot.slane %v6903_v41, %v8990_v25 }
 0x633   : > { %v2252_v37 = vpack.c.bf16 %v2246_v35, %v2245_v9  ;;  %v2231_v23 = vpop.xlane.xlu0 %2230  ;;  %7955 = vrcp.f32 %v2225_v4 }
 0x634   : > { %v1913_v52 = vcombine.low %v1888_v42, %v1896_v43  ;;  %v1929_v63 = vcombine.low %v1904_v44, %v1912_v45  ;;  %v1914_v0 = vcombine.high %v1888_v42, %v1896_v43  ;;  %v1930_v57 = vcombine.high %v1904_v44, %v1912_v45 }
 0x635   : > { %7957 = vrcp.f32 %v2231_v23 }
 0x636   : > { %v1921_v13 = vrot.slane %v1913_v52, %v8993_v32  ;;  %v1937_v20 = vrot.slane %v1929_v63, %v8993_v32  ;;  %v1928_v14 = vrot.slane %v1914_v0, %v8993_v32  ;;  %v1944_v54 = vrot.slane %v1930_v57, %v8993_v32 }
 0x638   : > { %v1945_v24 = vcombine.low %v1921_v13, %v1937_v20  ;;  %v1946_v62 = vcombine.high %v1921_v13, %v1937_v20  ;;  %v1947_v22 = vcombine.low %v1928_v14, %v1944_v54  ;;  %v1948_v27 = vcombine.high %v1928_v14, %v1944_v54 }
 0x63a   : > { %v2255_v6 = vpack.c.bf16 %v1945_v24, %v1877_v21  ;;  %v2256_v7 = vpack.c.bf16 %v1946_v62, %v1878_v56  ;;  %v2257_v19 = vpack.c.bf16 %v1947_v22, %v1879_v11  ;;  %v2258_v15 = vpack.c.bf16 %v1948_v27, %v1880_v33 }
 0x63c   : > { %7350 = vmatpush3.bf16.msra.mxu0 %v2255_v6  ;;  %7356 = vmatpush3.bf16.msra.mxu1 %v2256_v7 }
 0x63d   : > { %7361 = vmatprep.subr.bf16.mxu0 %v8438_v8  ;;  %7367 = vmatprep.subr.bf16.mxu1 %v8438_v8  ;;  %v7956_v39 = vpop.eup %7955 }
 0x63e   : > { %v2247_v41 = vmul.f32 %v7956_v39, %v9189_v16  ;;  %v7696_v16 = vld [vmem:[#allocation13 + $0x8] sm:$0xff]  }
 0x63f   : > { %7352 = vmatmul.mubr.msk.bf16.vlgmr.msra.gmra.mrb[12].mxu0 %vm2162_vm8, %v2251_v60  ;;  %7358 = vmatmul.mubr.msk.bf16.vlgmr.msra.gmra.mrb[12].mxu1 %vm2162_vm8, %v2252_v37  ;;  %v7958_v1 = vpop.eup %7957 }
 0x640   : > { %7362 = vmatpush3.bf16.msra.mxu0 %v2257_v19  ;;  %7368 = vmatpush3.bf16.msra.mxu1 %v2258_v15  ;;  %v2249_v44 = vmul.f32 %v7958_v1, %v9193_v18  ;;  %v7697_v18 = vld [vmem:[#allocation13 + $0x10] sm:$0xff]  }
 0x641   : > { %7363 = vmatprep.mubr.msk.bf16.mxu0 %vm8440_vm0, %v8438_v8  ;;  %7369 = vmatprep.mubr.msk.bf16.mxu1 %vm8440_vm0, %v8438_v8 }
 0x642   : > { %7373 = vmatprep.subr.bf16.mxu0 %v8438_v8 }
 0x658   : > { %v2228_v10 = vpop.xlane.xlu1 %2227 }
 0x659   : > { %7959 = vrcp.f32 %v2228_v10 }
 0x65a   : > { %v2234_v38 = vpop.xlane.xlu0 %2233 }
 0x65b   : > { %7961 = vrcp.f32 %v2234_v38 }
 0x663   : > { %v7960_v40 = vpop.eup %7959 }
 0x664   : > { %v2248_v42 = vmul.f32 %v7960_v40, %v9199_v28  ;;  %v7698_v28 = vld [vmem:[#allocation13 + $0x18] sm:$0xff]  }
 0x665   : > { %v7962_v43 = vpop.eup %7961 }
 0x666   : > { %v2250_v45 = vmul.f32 %v7962_v43, %v9203_v31  ;;  %v2253_v46 = vpack.c.bf16 %v2248_v42, %v2247_v41  ;;  %v7699_v31 = vld [vmem:[#allocation13 + $0x20] sm:$0xff]  }
 0x668   : > { %7364 = vmatmul.mubr.msk.bf16.vlgmr.msra.gmra.mrb[16].mxu0 %vm2162_vm8, %v2253_v46  ;;  %v2254_v47 = vpack.c.bf16 %v2250_v45, %v2249_v44 }
 0x669   : > { %7389 = vmatprep.mubr.msk.bf16.mxu0 %vm8440_vm0, %v8438_v8  ;;  %7374 = vmatpush3.bf16.msra.mxu0 %v7695_v48 }
 0x66a   : > { %7370 = vmatmul.mubr.msk.bf16.vlgmr.msra.gmra.mrb[16].mxu1 %vm2162_vm8, %v2254_v47  ;;  %7375 = vmatprep.subr.bf16.mxu0 %v8438_v8 }
 0x66b   : > { %3141 = vmatprep.mubr.bf16.mxu1 %v8439_v34 }
 0x66d   : > { %7376 = vmatpush3.bf16.msra.mxu0 %v7696_v16 }
 0x66e   : > { %7377 = vmatprep.subr.bf16.mxu0 %v8438_v8 }
 0x671   : > { %7378 = vmatpush3.bf16.msra.mxu0 %v7697_v18 }
 0x672   : > { %7379 = vmatprep.subr.bf16.mxu0 %v8438_v8 }
 0x675   : > { %7380 = vmatpush3.bf16.msra.mxu0 %v7698_v28 }
 0x676   : > { %7381 = vmatprep.subr.bf16.mxu0 %v8438_v8 }
 0x679   : > { %7382 = vmatpush3.bf16.msra.mxu0 %v7699_v31 }
 0x67a   : > { %7383 = vmatprep.subr.bf16.mxu0 %v8438_v8 }
 0x67d   : > { %7384 = vmatpush3.bf16.msra.mxu0 %v7700_v49 }
 0x67e   : > { %7385 = vmatprep.subr.bf16.mxu0 %v8438_v8 }
 0x712   : > { %v2296_v36 = vpop.f32.mrb[12].mxu0  ;;  %v2340_v50 = vpop.f32.mrb[12].mxu1 }
 0x713   : > { %v7353_v52 = vpop.f32.mrb[13].mxu0  ;;  %v7359_v63 = vpop.f32.mrb[13].mxu1 }
 0x714   : > { %v2299_v0 = vpop.f32.mrb[14].mxu0  ;;  %v2343_v57 = vpop.f32.mrb[14].mxu1 }
 0x715   : > { %v7354_v2 = vpop.f32.mrb[15].mxu0  ;;  %v7360_v13 = vpop.f32.mrb[15].mxu1 }
 0x73b   : > { %v2384_v20 = vpop.f32.mrb[16].mxu0 }
 0x73c   : > { %v2435_v14 = vcombine.low %v2296_v36, %v2384_v20  ;;  %v2436_v54 = vcombine.high %v2296_v36, %v2384_v20  ;;  %v7365_v55 = vpop.f32.mrb[17].mxu0  ;;  %v7701_v20 = vld [vmem:[#allocation13 + $0x30] sm:$0xff]  }
 0x73d   : > { %v2387_v53 = vpop.f32.mrb[18].mxu0  ;;  %v2428_v17 = vpop.f32.mrb[16].mxu1  ;;  %7386 = vmatpush3.bf16.msra.mxu0 %v7701_v20 }
 0x73e   : > { %v2503_v21 = vcombine.low %v2299_v0, %v2387_v53  ;;  %v2504_v24 = vcombine.high %v2299_v0, %v2387_v53  ;;  %v7366_v56 = vpop.f32.mrb[19].mxu0  ;;  %v7371_v62 = vpop.f32.mrb[17].mxu1  ;;  %v2451_v26 = vcombine.low %v2340_v50, %v2428_v17  ;;  %v2452_v35 = vcombine.high %v2340_v50, %v2428_v17  ;;  %7387 = vmatprep.subr.bf16.mxu0 %v8438_v8 }
 0x73f   : > { %v2431_v6 = vpop.f32.mrb[18].mxu1  ;;  %v2443_v29 = vrot.slane %v2435_v14, %v8990_v25  ;;  %v2450_v9 = vrot.slane %v2436_v54, %v8990_v25 }
 0x740   : > { %v2519_v7 = vcombine.low %v2343_v57, %v2431_v6  ;;  %v2520_v22 = vcombine.high %v2343_v57, %v2431_v6  ;;  %v7372_v27 = vpop.f32.mrb[19].mxu1  ;;  %v2459_v11 = vrot.slane %v2451_v26, %v8990_v25  ;;  %v2466_v33 = vrot.slane %v2452_v35, %v8990_v25 }
 0x741   : > { %v2511_v60 = vrot.slane %v2503_v21, %v8990_v25  ;;  %v2518_v37 = vrot.slane %v2504_v24, %v8990_v25 }
 0x742   : > { %v2527_v19 = vrot.slane %v2519_v7, %v8990_v25  ;;  %v2534_v15 = vrot.slane %v2520_v22, %v8990_v25  ;;  %v2467_v4 = vcombine.low %v2443_v29, %v2459_v11  ;;  %v2468_v23 = vcombine.high %v2443_v29, %v2459_v11 }
 0x743   : > { %v2483_v10 = vcombine.low %v2450_v9, %v2466_v33  ;;  %v2484_v38 = vcombine.high %v2450_v9, %v2466_v33 }
 0x744   : > { %v2535_v39 = vcombine.low %v2511_v60, %v2527_v19  ;;  %v2536_v1 = vcombine.high %v2511_v60, %v2527_v19  ;;  %v2551_v40 = vcombine.low %v2518_v37, %v2534_v15  ;;  %v2552_v41 = vcombine.high %v2518_v37, %v2534_v15  ;;  %v7702_v37 = vld [vmem:[#allocation13 + $0x38] sm:$0xff]  }
 0x745   : > { %v2475_v42 = vrot.slane %v2467_v4, %v8993_v32  ;;  %v2482_v43 = vrot.slane %v2468_v23, %v8993_v32  ;;  %v2491_v44 = vrot.slane %v2483_v10, %v8993_v32  ;;  %v2498_v45 = vrot.slane %v2484_v38, %v8993_v32  ;;  %7388 = vmatpush3.bf16.msra.mxu0 %v7702_v37  ;;  %v7717_v37 = vld [vmem:[#allocation14 + $0x44] ss:$16 sps:$4 sm:$0xff]  }
 0x746   : > { %v2543_v46 = vrot.slane %v2535_v39, %v8993_v32  ;;  %v2550_v47 = vrot.slane %v2536_v1, %v8993_v32  ;;  %v2559_v48 = vrot.slane %v2551_v40, %v8993_v32  ;;  %v2566_v16 = vrot.slane %v2552_v41, %v8993_v32 }
 0x747   : > { %v2571_v18 = vcombine.low %v2475_v42, %v2482_v43  ;;  %v6912_v28 = vcombine.high %v2475_v42, %v2482_v43  ;;  %v2587_v31 = vcombine.low %v2491_v44, %v2498_v45  ;;  %v6913_v49 = vcombine.high %v2491_v44, %v2498_v45 }
 0x748   : > { %v2639_v36 = vcombine.low %v2543_v46, %v2550_v47  ;;  %v6914_v50 = vcombine.high %v2543_v46, %v2550_v47  ;;  %v2655_v52 = vcombine.low %v2559_v48, %v2566_v16  ;;  %v6915_v63 = vcombine.high %v2559_v48, %v2566_v16 }
 0x749   : > { %v2578_v0 = vrot.slane %v2571_v18, %v8990_v25  ;;  %v2586_v57 = vrot.slane %v6912_v28, %v8990_v25  ;;  %v2594_v2 = vrot.slane %v2587_v31, %v8990_v25  ;;  %v2602_v13 = vrot.slane %v6913_v49, %v8990_v25 }
 0x74a   : > { %v2646_v14 = vrot.slane %v2639_v36, %v8990_v25  ;;  %v2654_v54 = vrot.slane %v6914_v50, %v8990_v25  ;;  %v2662_v55 = vrot.slane %v2655_v52, %v8990_v25  ;;  %v2670_v53 = vrot.slane %v6915_v63, %v8990_v25 }
 0x74b   : > { %v2604_v17 = vcombine.high %v2578_v0, %v2586_v57  ;;  %v2620_v21 = vcombine.high %v2594_v2, %v2602_v13  ;;  %v2603_v24 = vcombine.low %v2578_v0, %v2586_v57  ;;  %v2619_v56 = vcombine.low %v2594_v2, %v2602_v13  ;;  %v6916_v57 = vld [vmem:[%s9991_s7] ss:$0 sm:$0xff] }
 0x74c   : > { %v2672_v62 = vcombine.high %v2646_v14, %v2654_v54  ;;  %v2688_v26 = vcombine.high %v2662_v55, %v2670_v53  ;;  %v2671_v35 = vcombine.low %v2646_v14, %v2654_v54  ;;  %v2687_v6 = vcombine.low %v2662_v55, %v2670_v53 }
 0x74d   : > { %v2618_v7 = vrot.slane %v2604_v17, %v8993_v32  ;;  %v2634_v22 = vrot.slane %v2620_v21, %v8993_v32  ;;  %v2611_v27 = vrot.slane %v2603_v24, %v8993_v32  ;;  %v2627_v29 = vrot.slane %v2619_v56, %v8993_v32  ;;  %v7703_v21 = vld [vmem:[#allocation14] ss:$16 sps:$4 sm:$0xff]   ;;  %v7705_v24 = vld [vmem:[#allocation14 + $0x4] ss:$16 sps:$4 sm:$0xff]   ;;  %v7706_v56 = vld [vmem:[#allocation14 + $0x8] ss:$16 sps:$4 sm:$0xff]  }
 0x74e   : > { %v2686_v9 = vrot.slane %v2672_v62, %v8993_v32  ;;  %v2702_v11 = vrot.slane %v2688_v26, %v8993_v32  ;;  %v2679_v33 = vrot.slane %v2671_v35, %v8993_v32  ;;  %v2695_v60 = vrot.slane %v2687_v6, %v8993_v32  ;;  %v7708_v62 = vld [vmem:[#allocation14 + $0xc] ss:$16 sps:$4 sm:$0xff]   ;;  %v7711_v26 = vld [vmem:[#allocation14 + $0x24] ss:$16 sps:$4 sm:$0xff]   ;;  %3109 = vmatprep.subr.bf16.mxu1 %v7705_v24  ;;  %v7712_v6 = vld [vmem:[#allocation14 + $0x28] ss:$16 sps:$4 sm:$0xff]  }
 0x74f   : > { %v2637_v19 = vcombine.low %v2618_v7, %v2634_v22  ;;  %v2635_v15 = vcombine.low %v2611_v27, %v2627_v29  ;;  %v2636_v4 = vcombine.high %v2611_v27, %v2627_v29  ;;  %v2638_v23 = vcombine.high %v2618_v7, %v2634_v22  ;;  %v7714_v35 = vld [vmem:[#allocation14 + $0x2c] ss:$16 sps:$4 sm:$0xff]   ;;  %3152 = vmatprep.subr.bf16.mxu0 %v7708_v62 }
 0x750   : > { %v2705_v10 = vcombine.low %v2686_v9, %v2702_v11  ;;  %v2704_v38 = vcombine.high %v2679_v33, %v2695_v60  ;;  %v2703_v39 = vcombine.low %v2679_v33, %v2695_v60  ;;  %v2706_v1 = vcombine.high %v2686_v9, %v2702_v11  ;;  %3110 = vmatpush1.bf16.msra.mxu1 %v7703_v21  ;;  %v7715_v60 = vld [vmem:[#allocation14 + $0x40] ss:$16 sps:$4 sm:$0xff]   ;;  %v6926_v21 = vld [vmem:[%s9993_s4] ss:$0 sm:$0xff] }
 0x751   : > { %3111 = vmatprep.subr.bf16.mxu1 %v7711_v26 }
 0x752   : > { %v7638_v40 = vpack.i.bf16 %v2705_v10, %v2637_v19  ;;  %v7633_v41 = vpack.i.bf16 %v2704_v38, %v2636_v4  ;;  %v7643_v42 = vpack.i.bf16 %v2706_v1, %v2638_v23  ;;  %v7718_v19 = vld [vmem:[#allocation14 + $0x48] ss:$16 sps:$4 sm:$0xff]   ;;  %v7721_v4 = vld [vmem:[#allocation14 + $0x60] ss:$16 sps:$4 sm:$0xff]   ;;  %v7723_v23 = vld [vmem:[#allocation14 + $0x64] ss:$16 sps:$4 sm:$0xff]  }
 0x753   : > { %v7724_v10 = vld [vmem:[#allocation14 + $0x68] ss:$16 sps:$4 sm:$0xff]   ;;  %v7726_v38 = vld [vmem:[#allocation14 + $0x6c] ss:$16 sps:$4 sm:$0xff]  }
 0x754   : > { %7639 = vrot.lane.b32.xlu1 %v7638_v40, %s8442_s22  ;;  %7634 = vrot.lane.b32.xlu0 %v7633_v41, %s8443_s16  ;;  %v7732_v1 = vld [vmem:[#allocation14 + $0x8c] ss:$16 sps:$4 sm:$0xff]   ;;  %v7727_v40 = vld [vmem:[#allocation14 + $0x80] ss:$16 sps:$4 sm:$0xff]   ;;  %v7730_v41 = vld [vmem:[#allocation14 + $0x88] ss:$16 sps:$4 sm:$0xff]  }
 0x758   : > { %7644 = vrot.lane.b32.xlu1 %v7643_v42, %s8441_s9  ;;  %v7735_v42 = vld [vmem:[#allocation14 + $0xa4] ss:$16 sps:$4 sm:$0xff]  }
 0x7c6   : > { %v7640_v43 = vpop.permute.xlu1 %7639  ;;  %v7635_v44 = vpop.permute.xlu0 %7634 }
 0x7c7   : > { %v7637_v45 = vunpack.i.h.bf16 %v7635_v44  ;;  %v7636_v46 = vunpack.i.l.bf16 %v7635_v44  ;;  %v7642_v47 = vunpack.i.h.bf16 %v7640_v43  ;;  %v7641_v48 = vunpack.i.l.bf16 %v7640_v43  ;;  %v7738_v43 = vld [vmem:[#allocation14 + $0xac] ss:$16 sps:$4 sm:$0xff]   ;;  %v7733_v44 = vld [vmem:[#allocation14 + $0xa0] ss:$16 sps:$4 sm:$0xff]  }
 0x7c9   : > { %v2731_v16 = vsel %vm1957_vm1, %v2635_v15, %v7636_v46  ;;  %v2732_v18 = vsel %vm1957_vm1, %v2703_v39, %v7637_v45  ;;  %v7720_v15 = vld [vmem:[#allocation14 + $0x4c] ss:$16 sps:$4 sm:$0xff]   ;;  %v7729_v39 = vld [vmem:[#allocation14 + $0x84] ss:$16 sps:$4 sm:$0xff]   ;;  %v7736_v45 = vld [vmem:[#allocation14 + $0xa8] ss:$16 sps:$4 sm:$0xff]  }
 0x7ca   : > { %v7645_v28 = vpop.permute.xlu1 %7644  ;;  %v2734_v36 = vsel %vm2733_vm9, %v2731_v16, %v7641_v48  ;;  %v2735_v50 = vsel %vm2733_vm9, %v2732_v18, %v7642_v47  ;;  %v7741_v46 = vld [vmem:[#allocation14 + $0xc4] ss:$16 sps:$4 sm:$0xff]   ;;  %v7744_v47 = vld [vmem:[#allocation14 + $0xcc] ss:$16 sps:$4 sm:$0xff]   ;;  %v7739_v48 = vld [vmem:[#allocation14 + $0xc0] ss:$16 sps:$4 sm:$0xff]  }
 0x7cb   : > { %v7647_v31 = vunpack.i.h.bf16 %v7645_v28  ;;  %v7646_v49 = vunpack.i.l.bf16 %v7645_v28  ;;  %v7742_v16 = vld [vmem:[#allocation14 + $0xc8] ss:$16 sps:$4 sm:$0xff]   ;;  %v7747_v18 = vld [vmem:[#allocation14 + $0xe4] ss:$16 sps:$4 sm:$0xff]   ;;  %v7750_v28 = vld [vmem:[#allocation14 + $0xec] ss:$16 sps:$4 sm:$0xff]  }
 0x7cd   : > { %v2737_v52 = vsel %vm2736_vm10, %v2734_v36, %v7646_v49  ;;  %v2738_v63 = vsel %vm2736_vm10, %v2735_v50, %v7647_v31  ;;  %v7745_v31 = vld [vmem:[#allocation14 + $0xe0] ss:$16 sps:$4 sm:$0xff]   ;;  %v7748_v49 = vld [vmem:[#allocation14 + $0xe8] ss:$16 sps:$4 sm:$0xff]  }
 0x7ce   : > { %v2739_v0 = vpack.c.bf16 %v2738_v63, %v2737_v52 }
 0x7d0   : > { %7390 = vmatmul.mubr.bf16.vlgmr.msra.gmra.mrb[20].mxu0 %v2739_v0 }
 0x7d1   : > { %3184 = vmatprep.mubr.bf16.mxu0 %v8439_v34  ;;  %3153 = vmatpush1.bf16.msra.mxu0 %v7706_v56 }
 0x7d2   : > { %3154 = vmatprep.subr.bf16.mxu0 %v7714_v35  ;;  %v7751_v35 = vld [vmem:[#allocation16 + $0x40] sm:$0xff]  }
 0x7d5   : > { %3155 = vmatpush1.bf16.msra.mxu0 %v7712_v6  ;;  %v7753_v6 = vld [vmem:[#allocation16] sm:$0xff]  }
 0x7d6   : > { %3156 = vmatprep.subr.bf16.mxu0 %v7720_v15  ;;  %v7765_v15 = vld [vmem:[#allocation16 + $0x18] sm:$0xff]  }
 0x7d9   : > { %3157 = vmatpush1.bf16.msra.mxu0 %v7718_v19  ;;  %v7764_v19 = vld [vmem:[#allocation16 + $0xd8] sm:$0xff]  }
 0x7da   : > { %3158 = vmatprep.subr.bf16.mxu0 %v7726_v38  ;;  %v7769_v38 = vld [vmem:[#allocation16 + $0x20] sm:$0xff]  }
 0x7dd   : > { %3159 = vmatpush1.bf16.msra.mxu0 %v7724_v10  ;;  %v7768_v10 = vld [vmem:[#allocation16 + $0xe0] sm:$0xff]  }
 0x7de   : > { %3160 = vmatprep.subr.bf16.mxu0 %v7732_v1  ;;  %v7771_v1 = vld [vmem:[#allocation16 + $0x68] sm:$0xff]  }
 0x7e1   : > { %3161 = vmatpush1.bf16.msra.mxu0 %v7730_v41  ;;  %v7773_v41 = vld [vmem:[#allocation16 + $0x28] sm:$0xff]  }
 0x7e2   : > { %3162 = vmatprep.subr.bf16.mxu0 %v7738_v43  ;;  %v7775_v43 = vld [vmem:[#allocation16 + $0x70] sm:$0xff]  }
 0x7e5   : > { %3163 = vmatpush1.bf16.msra.mxu0 %v7736_v45  ;;  %v7777_v45 = vld [vmem:[#allocation16 + $0x30] sm:$0xff]  }
 0x7e6   : > { %3164 = vmatprep.subr.bf16.mxu0 %v7744_v47  ;;  %v7779_v47 = vld [vmem:[#allocation16 + $0x78] sm:$0xff]  }
 0x7e9   : > { %3165 = vmatpush1.bf16.msra.mxu0 %v7742_v16  ;;  %v7781_v16 = vld [vmem:[#allocation16 + $0x38] sm:$0xff]  }
 0x7ea   : > { %3166 = vmatprep.subr.bf16.mxu0 %v7750_v28  ;;  %v2927_v28 = vld [vmem:[%s9994_s25] sm:$0xf] }
 0x7ed   : > { %3167 = vmatpush1.bf16.msra.mxu0 %v7748_v49  ;;  %v2932_v49 = vrot.slane %v2927_v28, %v8947_v59 }
 0x8a3   : > { %v2845_v2 = vpop.f32.mrb[20].mxu0 }
 0x8a4   : > { %v2846_v13 = vadd.f32 %v6916_v57, %v2845_v2  ;;  %v7391_v20 = vpop.f32.mrb[21].mxu0 }
 0x8a5   : > { %v2848_v14 = vpop.f32.mrb[22].mxu0  ;;  %v6925_v20 = vld [vmem:[%s9992_s19] ss:$0 sm:$0xff] }
 0x8a6   : > { %v9318_v54 = vadd.f32 %v2846_v13, %v8908_v3  ;;  %v2849_v55 = vadd.f32 %v6916_v57, %v2848_v14  ;;  %v7392_v53 = vpop.f32.mrb[23].mxu0  ;;  %v7709_v3 = vld [vmem:[#allocation14 + $0x20] ss:$16 sps:$4 sm:$0xff]  }
 0x8a7   : > { %3112 = vmatpush1.bf16.msra.mxu1 %v7709_v3  ;;  %v7752_v3 = vld [vmem:[#allocation16 + $0xc0] sm:$0xff]  }
 0x8a8   : > { %v9321_v17 = vadd.f32 %v2849_v55, %v8911_v5  ;;  %2856 = vadd.xlane.f32.xlu1 %v9318_v54  ;;  %3113 = vmatprep.subr.bf16.mxu1 %v7717_v37  ;;  %v7763_v37 = vld [vmem:[#allocation16 + $0x58] sm:$0xff]  }
 0x8a9   : > { %7205 = vmatprep.subr.bf16.mxu0 %v7752_v3 }
 0x8aa   : > { %2858 = vadd.xlane.f32.xlu0 %v9321_v17 }
 0x8ab   : > { %3114 = vmatpush1.bf16.msra.mxu1 %v7715_v60  ;;  %v7762_v60 = vld [vmem:[#allocation16 + $0x90] sm:$0xff]  }
 0x8ac   : > { %3115 = vmatprep.subr.bf16.mxu1 %v7723_v23  ;;  %v7767_v23 = vld [vmem:[#allocation16 + $0x60] sm:$0xff]  }
 0x8af   : > { %3116 = vmatpush1.bf16.msra.mxu1 %v7721_v4  ;;  %v7766_v4 = vld [vmem:[#allocation16 + $0x98] sm:$0xff]  }
 0x8b0   : > { %3117 = vmatprep.subr.bf16.mxu1 %v7729_v39  ;;  %v7770_v39 = vld [vmem:[#allocation16 + $0xa0] sm:$0xff]  }
 0x8b3   : > { %3118 = vmatpush1.bf16.msra.mxu1 %v7727_v40  ;;  %v7772_v40 = vld [vmem:[#allocation16 + $0xe8] sm:$0xff]  }
 0x8b4   : > { %3119 = vmatprep.subr.bf16.mxu1 %v7735_v42  ;;  %v7774_v42 = vld [vmem:[#allocation16 + $0xa8] sm:$0xff]  }
 0x8b7   : > { %3120 = vmatpush1.bf16.msra.mxu1 %v7733_v44  ;;  %v7776_v44 = vld [vmem:[#allocation16 + $0xf0] sm:$0xff]  }
 0x8b8   : > { %3121 = vmatprep.subr.bf16.mxu1 %v7741_v46  ;;  %v7778_v46 = vld [vmem:[#allocation16 + $0xb0] sm:$0xff]  }
 0x8bb   : > { %3122 = vmatpush1.bf16.msra.mxu1 %v7739_v48  ;;  %v7780_v48 = vld [vmem:[#allocation16 + $0xf8] sm:$0xff]  }
 0x8bc   : > { %3123 = vmatprep.subr.bf16.mxu1 %v7747_v18  ;;  %v7782_v18 = vld [vmem:[#allocation16 + $0xb8] sm:$0xff]  }
 0x8bf   : > { %3124 = vmatpush1.bf16.msra.mxu1 %v7745_v31  ;;  %v2943_v31 = vsub.s32 3, %v8944_v58 }
 0x8c0   : > { %7183 = vmatprep.subr.bf16.mxu1 %v7751_v35 }
 0x935   : > { %v2857_v5 = vpop.xlane.xlu1 %2856 }
 0x936   : > { %v2860_v7 = vmul.f32 0.0078125, %v2857_v5  ;;  %v7754_v5 = vld [vmem:[#allocation16 + $0x80] sm:$0xff]  }
 0x937   : > { %v2859_v22 = vpop.xlane.xlu0 %2858 }
 0x938   : > { %v9326_v27 = vsub.f32 %v9318_v54, %v2860_v7  ;;  %v2861_v29 = vmul.f32 0.0078125, %v2859_v22  ;;  %v7755_v7 = vld [vmem:[#allocation16 + $0x48] sm:$0xff]  }
 0x939   : > { %v7756_v22 = vld [vmem:[#allocation16 + $0xc8] sm:$0xff]  }
 0x93a   : > { %v9329_v9 = vsub.f32 %v9321_v17, %v2861_v29  ;;  %v2864_v11 = vmul.f32 %v9326_v27, %v9326_v27  ;;  %v7758_v29 = vld [vmem:[#allocation16 + $0x88] sm:$0xff]  }
 0x93c   : > { %2866 = vadd.xlane.f32.xlu0 %v2864_v11  ;;  %v2865_v33 = vmul.f32 %v9329_v9, %v9329_v9  ;;  %v7760_v11 = vld [vmem:[#allocation16 + $0xd0] sm:$0xff]  }
 0x940   : > { %2868 = vadd.xlane.f32.xlu0 %v2865_v33  ;;  %v7761_v33 = vld [vmem:[#allocation16 + $0x10] sm:$0xff]  }
 0x9c9   : > { %v2867_v36 = vpop.xlane.xlu0 %2866 }
 0x9ca   : > { %v2870_v50 = vmul.f32 0.0078125, %v2867_v36  ;;  %v2940_v36 = vrot.slane %v2927_v28, %v9146_v30 }
 0x9cc   : > { %v2872_v52 = vadd.f32 1e-05, %v2870_v50  ;;  %v2936_v50 = vrot.slane %v2927_v28, %v8955_v61 }
 0x9cd   : > { %v2869_v63 = vpop.xlane.xlu0 %2868 }
 0x9ce   : > { %7963 = vrsqrt.f32 %v2872_v52  ;;  %v2871_v0 = vmul.f32 0.0078125, %v2869_v63  ;;  %v2944_v52 = vrot.slane %v2927_v28, %v2943_v31 }
 0x9d0   : > { %v2873_v57 = vadd.f32 1e-05, %v2871_v0 }
 0x9d2   : > { %7965 = vrsqrt.f32 %v2873_v57 }
 0x9d8   : > { %v7964_v2 = vpop.eup %7963 }
 0x9d9   : > { %v2876_v13 = vmul.f32 %v7964_v2, %v9326_v27  ;;  %v7757_v27 = vld [vmem:[#allocation16 + $0x8] sm:$0xff]  }
 0x9db   : > { %v2884_v53 = vmul.f32 %v6925_v20, %v2876_v13 }
 0x9dc   : > { %v7966_v14 = vpop.eup %7965 }
 0x9dd   : > { %v2877_v55 = vmul.f32 %v7966_v14, %v9329_v9  ;;  %v2892_v56 = vadd.f32 %v6926_v21, %v2884_v53  ;;  %v7759_v9 = vld [vmem:[#allocation16 + $0x50] sm:$0xff]  }
 0x9df   : > { %v2885_v24 = vmul.f32 %v6925_v20, %v2877_v55 }
 0x9e1   : > { %v2893_v62 = vadd.f32 %v6926_v21, %v2885_v24 }
 0x9e3   : > { %v2894_v26 = vpack.c.bf16 %v2893_v62, %v2892_v56 }
 0x9e5   : > { %3142 = vmatmul.mubr.bf16.vlgmr.msra.gmra.mrb[20].mxu1 %v2894_v26  ;;  %3185 = vmatmul.mubr.bf16.vlgmr.msra.gmra.mrb[24].mxu0 %v2894_v26 }
 0x9e6   : > { %7184 = vmatpush3.bf16.msra.mxu1 %v7753_v6  ;;  %7206 = vmatpush3.bf16.msra.mxu0 %v7754_v5 }
 0x9e7   : > { %7185 = vmatprep.subr.bf16.mxu1 %v7755_v7  ;;  %7207 = vmatprep.subr.bf16.mxu0 %v7756_v22 }
 0x9ea   : > { %7186 = vmatpush3.bf16.msra.mxu1 %v7757_v27  ;;  %7208 = vmatpush3.bf16.msra.mxu0 %v7758_v29 }
 0x9eb   : > { %7187 = vmatprep.subr.bf16.mxu1 %v7759_v9  ;;  %7209 = vmatprep.subr.bf16.mxu0 %v7760_v11 }
 0x9ee   : > { %7188 = vmatpush3.bf16.msra.mxu1 %v7761_v33  ;;  %7210 = vmatpush3.bf16.msra.mxu0 %v7762_v60 }
 0x9ef   : > { %7189 = vmatprep.subr.bf16.mxu1 %v7763_v37  ;;  %7211 = vmatprep.subr.bf16.mxu0 %v7764_v19 }
 0x9f2   : > { %7190 = vmatpush3.bf16.msra.mxu1 %v7765_v15  ;;  %7212 = vmatpush3.bf16.msra.mxu0 %v7766_v4 }
 0x9f3   : > { %7191 = vmatprep.subr.bf16.mxu1 %v7767_v23  ;;  %7213 = vmatprep.subr.bf16.mxu0 %v7768_v10 }
 0x9f6   : > { %7192 = vmatpush3.bf16.msra.mxu1 %v7769_v38  ;;  %7214 = vmatpush3.bf16.msra.mxu0 %v7770_v39 }
 0x9f7   : > { %7193 = vmatprep.subr.bf16.mxu1 %v7771_v1  ;;  %7215 = vmatprep.subr.bf16.mxu0 %v7772_v40 }
 0x9fa   : > { %7194 = vmatpush3.bf16.msra.mxu1 %v7773_v41  ;;  %7216 = vmatpush3.bf16.msra.mxu0 %v7774_v42 }
 0x9fb   : > { %7195 = vmatprep.subr.bf16.mxu1 %v7775_v43  ;;  %7217 = vmatprep.subr.bf16.mxu0 %v7776_v44 }
 0x9fe   : > { %7196 = vmatpush3.bf16.msra.mxu1 %v7777_v45  ;;  %7218 = vmatpush3.bf16.msra.mxu0 %v7778_v46 }
 0x9ff   : > { %7197 = vmatprep.subr.bf16.mxu1 %v7779_v47  ;;  %7219 = vmatprep.subr.bf16.mxu0 %v7780_v48 }
 0xa02   : > { %7198 = vmatpush3.bf16.msra.mxu1 %v7781_v16  ;;  %7220 = vmatpush3.bf16.msra.mxu0 %v7782_v18 }
 0xa03   : > { %7393 = vmatprep.subr.bf16.mxu0 %v8438_v8 }
 0xab8   : > { %v3143_v63 = vpop.f32.mrb[20].mxu1  ;;  %v3186_v0 = vpop.f32.mrb[24].mxu0 }
 0xab9   : > { %v9353_v57 = vadd.f32 %v3143_v63, %v2932_v49  ;;  %v9355_v2 = vadd.f32 %v3186_v0, %v2940_v36  ;;  %v3145_v13 = vpop.f32.mrb[21].mxu1  ;;  %v3188_v20 = vpop.f32.mrb[25].mxu0 }
 0xaba   : > { %v9357_v14 = vadd.f32 %v3145_v13, %v2936_v50  ;;  %v9359_v55 = vadd.f32 %v3188_v20, %v2944_v52  ;;  %v3147_v53 = vpop.f32.mrb[22].mxu1  ;;  %v3190_v21 = vpop.f32.mrb[26].mxu0 }
 0xabb   : > { %v3203_v24 = vmul.f32 0.044715, %v9353_v57  ;;  %v3205_v56 = vmul.f32 0.044715, %v9355_v2  ;;  %v3148_v62 = vadd.f32 %v3147_v53, %v2932_v49  ;;  %v3191_v26 = vadd.f32 %v3190_v21, %v2940_v36  ;;  %v3149_v35 = vpop.f32.mrb[23].mxu1  ;;  %v3192_v3 = vpop.f32.mrb[27].mxu0 }
 0xabc   : > { %v3204_v6 = vmul.f32 0.044715, %v9357_v14  ;;  %v3206_v5 = vmul.f32 0.044715, %v9359_v55  ;;  %v9365_v7 = vadd.f32 %v3149_v35, %v2936_v50  ;;  %v9367_v22 = vadd.f32 %v3192_v3, %v2944_v52 }
 0xabd   : > { %v3211_v27 = vmul.f32 %v3203_v24, %v9353_v57  ;;  %v3213_v29 = vmul.f32 %v3205_v56, %v9355_v2  ;;  %v3207_v9 = vmul.f32 0.044715, %v3148_v62  ;;  %v3209_v11 = vmul.f32 0.044715, %v3191_v26 }
 0xabe   : > { %v3212_v33 = vmul.f32 %v3204_v6, %v9357_v14  ;;  %v3214_v60 = vmul.f32 %v3206_v5, %v9359_v55  ;;  %v3208_v37 = vmul.f32 0.044715, %v9365_v7  ;;  %v3210_v19 = vmul.f32 0.044715, %v9367_v22 }
 0xabf   : > { %v3219_v15 = vmul.f32 %v3211_v27, %v9353_v57  ;;  %v3221_v4 = vmul.f32 %v3213_v29, %v9355_v2  ;;  %v3215_v23 = vmul.f32 %v3207_v9, %v3148_v62  ;;  %v3217_v10 = vmul.f32 %v3209_v11, %v3191_v26 }
 0xac0   : > { %v3220_v38 = vmul.f32 %v3212_v33, %v9357_v14  ;;  %v3222_v39 = vmul.f32 %v3214_v60, %v9359_v55  ;;  %v3216_v1 = vmul.f32 %v3208_v37, %v9365_v7  ;;  %v3218_v40 = vmul.f32 %v3210_v19, %v9367_v22 }
 0xac1   : > { %v3227_v41 = vadd.f32 %v3219_v15, %v9353_v57  ;;  %v3229_v42 = vadd.f32 %v3221_v4, %v9355_v2  ;;  %v3223_v43 = vmul.f32 %v3215_v23, %v3148_v62  ;;  %v3225_v44 = vmul.f32 %v3217_v10, %v3191_v26 }
 0xac2   : > { %v3224_v45 = vmul.f32 %v3216_v1, %v9365_v7  ;;  %v3226_v46 = vmul.f32 %v3218_v40, %v9367_v22  ;;  %v3228_v28 = vadd.f32 %v3220_v38, %v9357_v14  ;;  %v3230_v52 = vadd.f32 %v3222_v39, %v9359_v55 }
 0xac3   : > { %v3235_v47 = vmul.f32 0.7978846, %v3227_v41  ;;  %v3237_v48 = vmul.f32 0.7978846, %v3229_v42  ;;  %v3231_v16 = vadd.f32 %v3223_v43, %v3148_v62  ;;  %v3233_v18 = vadd.f32 %v3225_v44, %v3191_v26 }
 0xac4   : > { %v3232_v49 = vadd.f32 %v3224_v45, %v9365_v7  ;;  %v3236_v63 = vmul.f32 0.7978846, %v3228_v28  ;;  %v3234_v13 = vadd.f32 %v3226_v46, %v9367_v22  ;;  %v3238_v20 = vmul.f32 0.7978846, %v3230_v52 }
 0xac5   : > { %7967 = vtanh.f32 %v3235_v47  ;;  %v3239_v36 = vmul.f32 0.7978846, %v3231_v16  ;;  %v3241_v50 = vmul.f32 0.7978846, %v3233_v18  ;;  %v3195_v5 = vmul.f32 0.5, %v9353_v57 }
 0xac6   : > { %7969 = vtanh.f32 %v3237_v48  ;;  %v3240_v0 = vmul.f32 0.7978846, %v3232_v49  ;;  %v3242_v53 = vmul.f32 0.7978846, %v3234_v13  ;;  %v3199_v27 = vmul.f32 0.5, %v3148_v62 }
 0xac7   : > { %7971 = vtanh.f32 %v3239_v36  ;;  %v3197_v11 = vmul.f32 0.5, %v9355_v2  ;;  %v3201_v33 = vmul.f32 0.5, %v3191_v26  ;;  %v3196_v19 = vmul.f32 0.5, %v9357_v14 }
 0xac8   : > { %7973 = vtanh.f32 %v3241_v50  ;;  %v3200_v38 = vmul.f32 0.5, %v9365_v7  ;;  %v3198_v62 = vmul.f32 0.5, %v9359_v55  ;;  %v3202_v41 = vmul.f32 0.5, %v9367_v22  ;;  %v6959_v7 = vld [vmem:[%s9995_s10] ss:$0 sm:$0xff] }
 0xac9   : > { %7975 = vtanh.f32 %v3236_v63 }
 0xaca   : > { %7977 = vtanh.f32 %v3240_v0 }
 0xacb   : > { %7979 = vtanh.f32 %v3238_v20 }
 0xacc   : > { %7981 = vtanh.f32 %v3242_v53 }
 0xacf   : > { %v7968_v21 = vpop.eup %7967 }
 0xad0   : > { %v7970_v24 = vpop.eup %7969  ;;  %v3251_v56 = vadd.f32 1.0, %v7968_v21 }
 0xad1   : > { %v7972_v35 = vpop.eup %7971  ;;  %v3253_v3 = vadd.f32 1.0, %v7970_v24 }
 0xad2   : > { %v7974_v6 = vpop.eup %7973  ;;  %v3255_v29 = vadd.f32 1.0, %v7972_v35  ;;  %v3259_v4 = vmul.f32 %v3251_v56, %v3195_v5  ;;  %v7786_v5 = vld [vmem:[#allocation11 + $0xc8] ss:$12 sps:$4 sm:$0xff]  }
 0xad3   : > { %v7976_v9 = vpop.eup %7975  ;;  %v3257_v60 = vadd.f32 1.0, %v7974_v6  ;;  %v3261_v1 = vmul.f32 %v3253_v3, %v3197_v11  ;;  %v7783_v3 = vld [vmem:[#allocation11 + $0xc0] ss:$12 sps:$4 sm:$0xff]   ;;  %v7785_v6 = vld [vmem:[#allocation11 + $0xc4] ss:$12 sps:$4 sm:$0xff]  }
 0xad4   : > { %v7978_v37 = vpop.eup %7977  ;;  %v3252_v15 = vadd.f32 1.0, %v7976_v9  ;;  %v3263_v23 = vmul.f32 %v3255_v29, %v3199_v27  ;;  %v7789_v27 = vld [vmem:[#allocation11 + $0xdc] ss:$12 sps:$4 sm:$0xff]   ;;  %3840 = vmatprep.subr.bf16.mxu1 %v7785_v6  ;;  %v7790_v29 = vld [vmem:[#allocation11 + $0xe0] ss:$12 sps:$4 sm:$0xff]  }
 0xad5   : > { %v7980_v10 = vpop.eup %7979  ;;  %v3256_v39 = vadd.f32 1.0, %v7978_v37  ;;  %v3265_v40 = vmul.f32 %v3257_v60, %v3201_v33  ;;  %v7787_v9 = vld [vmem:[#allocation11 + $0xd8] ss:$12 sps:$4 sm:$0xff]  }
 0xad6   : > { %v7982_v57 = vpop.eup %7981  ;;  %v3254_v2 = vadd.f32 1.0, %v7980_v10  ;;  %v3267_v26 = vpack.c.bf16 %v3263_v23, %v3259_v4  ;;  %v3260_v42 = vmul.f32 %v3252_v15, %v3196_v19  ;;  %v7793_v4 = vld [vmem:[#allocation11 + $0xf4] ss:$12 sps:$4 sm:$0xff]   ;;  %v7791_v23 = vld [vmem:[#allocation11 + $0xf0] ss:$12 sps:$4 sm:$0xff]  }
 0xad7   : > { %v3264_v43 = vmul.f32 %v3256_v39, %v3200_v38  ;;  %v3258_v44 = vadd.f32 1.0, %v7982_v57  ;;  %v3269_v14 = vpack.c.bf16 %v3265_v40, %v3261_v1  ;;  %v7794_v10 = vld [vmem:[#allocation11 + $0xf8] ss:$12 sps:$4 sm:$0xff]   ;;  %v7795_v39 = vld [vmem:[#allocation11 + $0x108] ss:$12 sps:$4 sm:$0xff]  }
 0xad8   : > { %v3262_v46 = vmul.f32 %v3254_v2, %v3198_v62  ;;  %v7797_v38 = vld [vmem:[#allocation11 + $0x10c] ss:$12 sps:$4 sm:$0xff]   ;;  %v7798_v1 = vld [vmem:[#allocation11 + $0x110] ss:$12 sps:$4 sm:$0xff]   ;;  %v7802_v62 = vld [vmem:[#allocation11 + $0x128] ss:$12 sps:$4 sm:$0xff]  }
 0xad9   : > { %v3268_v45 = vpack.c.bf16 %v3264_v43, %v3260_v42  ;;  %v3266_v47 = vmul.f32 %v3258_v44, %v3202_v41  ;;  %v7801_v40 = vld [vmem:[#allocation11 + $0x124] ss:$12 sps:$4 sm:$0xff]   ;;  %v7799_v57 = vld [vmem:[#allocation11 + $0x120] ss:$12 sps:$4 sm:$0xff]   ;;  %v7805_v41 = vld [vmem:[#allocation11 + $0x13c] ss:$12 sps:$4 sm:$0xff]  }
 0xada   : > { %v7803_v2 = vld [vmem:[#allocation11 + $0x138] ss:$12 sps:$4 sm:$0xff]   ;;  %v7809_v42 = vld [vmem:[#allocation11 + $0x154] ss:$12 sps:$4 sm:$0xff]   ;;  %v7807_v43 = vld [vmem:[#allocation11 + $0x150] ss:$12 sps:$4 sm:$0xff]  }
 0xadb   : > { %3566 = vmatprep.mubr.bf16.mxu1 %v3268_v45  ;;  %v3270_v48 = vpack.c.bf16 %v3266_v47, %v3262_v46  ;;  %v7810_v44 = vld [vmem:[#allocation11 + $0x158] ss:$12 sps:$4 sm:$0xff]   ;;  %v7811_v45 = vld [vmem:[#allocation11 + $0x168] ss:$12 sps:$4 sm:$0xff]   ;;  %v7814_v46 = vld [vmem:[#allocation11 + $0x170] ss:$12 sps:$4 sm:$0xff]  }
 0xadc   : > { %3567 = vmatmul.mubr.bf16.vlgmr.msra.gmra.mrb[24].mxu1 %v3267_v26  ;;  %v7806_v26 = vld [vmem:[#allocation11 + $0x140] ss:$12 sps:$4 sm:$0xff]  }
 0xadd   : > { %3607 = vmatprep.mubr.bf16.mxu0 %v3270_v48  ;;  %3872 = vmatprep.mubr.bf16.mxu1 %v8439_v34 }
 0xade   : > { %3608 = vmatmul.mubr.bf16.vlgmr.msra.gmra.mrb[28].mxu0 %v3269_v14  ;;  %3841 = vmatpush1.bf16.msra.mxu1 %v7783_v3  ;;  %v7813_v14 = vld [vmem:[#allocation11 + $0x16c] ss:$12 sps:$4 sm:$0xff]  }
 0xadf   : > { %7409 = vmatprep.mubr.msk.bf16.mxu0 %vm8440_vm0, %v8438_v8  ;;  %7394 = vmatpush3.bf16.msra.mxu0 %v7786_v5 }
 0xae0   : > { %7395 = vmatprep.subr.bf16.mxu0 %v8438_v8  ;;  %3842 = vmatprep.subr.bf16.mxu1 %v7789_v27 }
 0xae2   : > { %3843 = vmatpush1.bf16.msra.mxu1 %v7787_v9 }
 0xae3   : > { %7396 = vmatpush3.bf16.msra.mxu0 %v7790_v29  ;;  %3844 = vmatprep.subr.bf16.mxu1 %v7793_v4 }
 0xae4   : > { %7397 = vmatprep.subr.bf16.mxu0 %v8438_v8 }
 0xae6   : > { %3845 = vmatpush1.bf16.msra.mxu1 %v7791_v23 }
 0xae7   : > { %7398 = vmatpush3.bf16.msra.mxu0 %v7794_v10  ;;  %3846 = vmatprep.subr.bf16.mxu1 %v7797_v38 }
 0xae8   : > { %7399 = vmatprep.subr.bf16.mxu0 %v8438_v8 }
 0xaea   : > { %3847 = vmatpush1.bf16.msra.mxu1 %v7795_v39 }
 0xaeb   : > { %7400 = vmatpush3.bf16.msra.mxu0 %v7798_v1  ;;  %3848 = vmatprep.subr.bf16.mxu1 %v7801_v40 }
 0xaec   : > { %7401 = vmatprep.subr.bf16.mxu0 %v8438_v8 }
 0xaee   : > { %3849 = vmatpush1.bf16.msra.mxu1 %v7799_v57 }
 0xaef   : > { %7402 = vmatpush3.bf16.msra.mxu0 %v7802_v62  ;;  %3850 = vmatprep.subr.bf16.mxu1 %v7805_v41 }
 0xaf0   : > { %7403 = vmatprep.subr.bf16.mxu0 %v8438_v8 }
 0xaf2   : > { %3851 = vmatpush1.bf16.msra.mxu1 %v7803_v2 }
 0xaf3   : > { %7404 = vmatpush3.bf16.msra.mxu0 %v7806_v26  ;;  %3852 = vmatprep.subr.bf16.mxu1 %v7809_v42 }
 0xaf4   : > { %7405 = vmatprep.subr.bf16.mxu0 %v8438_v8 }
 0xaf6   : > { %3853 = vmatpush1.bf16.msra.mxu1 %v7807_v43 }
 0xaf7   : > { %7406 = vmatpush3.bf16.msra.mxu0 %v7810_v44  ;;  %3854 = vmatprep.subr.bf16.mxu1 %v7813_v14 }
 0xaf8   : > { %7407 = vmatprep.subr.bf16.mxu0 %v8438_v8 }
 0xafa   : > { %3855 = vmatpush1.bf16.msra.mxu1 %v7811_v45 }
 0xafb   : > { %7408 = vmatpush3.bf16.msra.mxu0 %v7814_v46  ;;  %7413 = vmatprep.subr.bf16.mxu1 %v8438_v8 }
 0xafc   : > { %7437 = vmatprep.subr.bf16.mxu0 %v8438_v8 }
 0xbaf   : > { %v7199_v55 = vpop.f32.mrb[24].mxu1 }
 0xbb0   : > { %v7200_v22 = vpop.f32.mrb[25].mxu1 }
 0xbb1   : > { %v7221_v16 = vpop.f32.mrb[28].mxu0  ;;  %v7201_v18 = vadd.f32 %v7200_v22, %v7199_v55  ;;  %v7202_v28 = vpop.f32.mrb[26].mxu1 }
 0xbb2   : > { %v7222_v49 = vpop.f32.mrb[29].mxu0  ;;  %v7203_v36 = vpop.f32.mrb[27].mxu1 }
 0xbb3   : > { %v3569_v50 = vadd.f32 %v7201_v18, %v6959_v7  ;;  %v7223_v52 = vadd.f32 %v7222_v49, %v7221_v16  ;;  %v7224_v63 = vpop.f32.mrb[30].mxu0  ;;  %v7204_v0 = vadd.f32 %v7203_v36, %v7202_v28  ;;  %v6992_v28 = vld [vmem:[#allocation8 + $0x1] ss:$0 sm:$0xff] }
 0xbb4   : > { %v7225_v13 = vpop.f32.mrb[31].mxu0 }
 0xbb5   : > { %v3610_v20 = vadd.f32 %v7223_v52, %v3569_v50  ;;  %v3572_v53 = vadd.f32 %v7204_v0, %v6959_v7  ;;  %v7226_v21 = vadd.f32 %v7225_v13, %v7224_v63  ;;  %v6993_v63 = vld [vmem:[#allocation10 + $0x1] ss:$0 sm:$0xff] }
 0xbb7   : > { %v3613_v24 = vadd.f32 %v7226_v21, %v3572_v53  ;;  %v9402_v56 = vadd.f32 %v3610_v20, %v9318_v54  ;;  %v6994_v21 = vld [vmem:[%s9906_s6 + $0x3] sm:$0x7] }
 0xbb8   : > { %v3708_v27 = vrot.slane %v6994_v21, %v9146_v30  ;;  %v3704_v29 = vrot.slane %v6994_v21, %v8955_v61 }
 0xbb9   : > { %3622 = vadd.xlane.f32.xlu1 %v9402_v56  ;;  %v9406_v35 = vadd.f32 %v3613_v24, %v9321_v17  ;;  %v3700_v24 = vrot.slane %v6994_v21, %v8947_v59 }
 0xbbb   : > { %3624 = vadd.xlane.f32.xlu0 %v9406_v35 }
 0xc46   : > { %v3623_v54 = vpop.xlane.xlu1 %3622 }
 0xc47   : > { %v3626_v17 = vmul.f32 0.0078125, %v3623_v54 }
 0xc48   : > { %v3625_v11 = vpop.xlane.xlu0 %3624 }
 0xc49   : > { %v3628_v33 = vsub.f32 %v9402_v56, %v3626_v17  ;;  %v3627_v60 = vmul.f32 0.0078125, %v3625_v11 }
 0xc4b   : > { %v3629_v37 = vsub.f32 %v9406_v35, %v3627_v60  ;;  %v3630_v19 = vmul.f32 %v3628_v33, %v3628_v33 }
 0xc4d   : > { %3632 = vadd.xlane.f32.xlu1 %v3630_v19  ;;  %v3631_v15 = vmul.f32 %v3629_v37, %v3629_v37 }
 0xc4f   : > { %3634 = vadd.xlane.f32.xlu0 %v3631_v15 }
 0xcda   : > { %v3633_v47 = vpop.xlane.xlu1 %3632 }
 0xcdb   : > { %v3636_v48 = vmul.f32 0.0078125, %v3633_v47 }
 0xcdc   : > { %v3635_v55 = vpop.xlane.xlu0 %3634 }
 0xcdd   : > { %v3638_v7 = vadd.f32 1e-05, %v3636_v48  ;;  %v3637_v22 = vmul.f32 0.0078125, %v3635_v55 }
 0xcdf   : > { %7983 = vrsqrt.f32 %v3638_v7  ;;  %v3639_v16 = vadd.f32 1e-05, %v3637_v22 }
 0xce1   : > { %7985 = vrsqrt.f32 %v3639_v16 }
 0xce9   : > { %v7984_v18 = vpop.eup %7983 }
 0xcea   : > { %v3642_v49 = vmul.f32 %v7984_v18, %v3628_v33 }
 0xceb   : > { %v7986_v36 = vpop.eup %7985 }
 0xcec   : > { %v3643_v50 = vmul.f32 %v7986_v36, %v3629_v37  ;;  %v3650_v52 = vmul.f32 %v6992_v28, %v3642_v49 }
 0xcee   : > { %v3651_v0 = vmul.f32 %v6992_v28, %v3643_v50  ;;  %v3658_v13 = vadd.f32 %v6993_v63, %v3650_v52 }
 0xcf0   : > { %v3659_v20 = vadd.f32 %v6993_v63, %v3651_v0 }
 0xcf2   : > { %v3660_v53 = vpack.c.bf16 %v3659_v20, %v3658_v13 }
 0xcf4   : > { %3873 = vmatmul.mubr.bf16.vlgmr.msra.gmra.mrb[28].mxu1 %v3660_v53  ;;  %7410 = vmatmul.mubr.bf16.vlgmr.msra.gmra.mrb[32].mxu0 %v3660_v53 }
 0xcf5   : > { %7415 = vmatprep.mubr.msk.bf16.mxu1 %vm8440_vm0, %v8438_v8  ;;  %7439 = vmatprep.mubr.msk.bf16.mxu0 %vm8440_vm0, %v8438_v8 }
 0xdc7   : > { %v3874_v3 = vpop.f32.mrb[28].mxu1  ;;  %v3917_v6 = vpop.f32.mrb[32].mxu0 }
 0xdc8   : > { %v9428_v5 = vadd.f32 %v3874_v3, %v3700_v24  ;;  %v3876_v9 = vpop.f32.mrb[29].mxu1  ;;  %v7411_v54 = vpop.f32.mrb[33].mxu0  ;;  %v9454_v23 = vadd.f32 %v3917_v6, %v3708_v27 }
 0xdc9   : > { %v3878_v17 = vpop.f32.mrb[30].mxu1  ;;  %v3920_v11 = vpop.f32.mrb[34].mxu0  ;;  %v3877_v15 = vadd.f32 %v3876_v9, %v3704_v29 }
 0xdca   : > { %v9432_v33 = vadd.f32 %v3878_v17, %v3700_v24  ;;  %v9434_v60 = vadd.f32 %v3920_v11, %v3708_v27  ;;  %v3880_v37 = vpop.f32.mrb[31].mxu1  ;;  %v7412_v19 = vpop.f32.mrb[35].mxu0  ;;  %3926 = vrot.lane.b32.xlu1 %v9428_v5, %s8441_s9 }
 0xdcb   : > { %v3881_v4 = vadd.f32 %v3880_v37, %v3704_v29 }
 0xdcc   : > { %3928 = vrot.lane.b32.xlu0 %v9432_v33, %s8441_s9 }
 0xdce   : > { %4218 = vrot.lane.b32.xlu1 %v3877_v15, %s8441_s9 }
 0xdd0   : > { %4220 = vrot.lane.b32.xlu0 %v3881_v4, %s8441_s9 }
 0xdd2   : > { %4224 = vrot.lane.b32.xlu1 %v3877_v15, %s8442_s22 }
 0xdd4   : > { %4232 = vrot.lane.b32.xlu0 %v3881_v4, %s8443_s16 }
 0xdd6   : > { %4230 = vrot.lane.b32.xlu1 %v3877_v15, %s8443_s16 }
 0xdd8   : > { %3934 = vrot.lane.b32.xlu0 %v9432_v33, %s8442_s22 }
 0xdda   : > { %4226 = vrot.lane.b32.xlu1 %v3881_v4, %s8442_s22 }
 0xddc   : > { %3940 = vrot.lane.b32.xlu0 %v9432_v33, %s8443_s16 }
 0xdde   : > { %3932 = vrot.lane.b32.xlu1 %v9428_v5, %s8442_s22 }
 0xde2   : > { %3938 = vrot.lane.b32.xlu1 %v9428_v5, %s8443_s16 }
 0xde6   : > { %4510 = vrot.lane.b32.xlu1 %v9454_v23, %s8441_s9 }
 0xe3c   : > { %v9458_v10 = vpop.permute.xlu1 %3926 }
 0xe3e   : > { %v3929_v38 = vpop.permute.xlu0 %3928 }
 0xe40   : > { %v4219_v39 = vpop.permute.xlu1 %4218 }
 0xe42   : > { %v4221_v1 = vpop.permute.xlu0 %4220 }
 0xe44   : > { %v4225_v40 = vpop.permute.xlu1 %4224 }
 0xe45   : > { %v4236_v57 = vcombine.low %v3877_v15, %v4225_v40  ;;  %v4237_v62 = vcombine.high %v3877_v15, %v4225_v40 }
 0xe46   : > { %v4233_v41 = vpop.permute.xlu0 %4232 }
 0xe47   : > { %v4244_v43 = vrot.slane %v4236_v57, %v8990_v25  ;;  %v4251_v44 = vrot.slane %v4237_v62, %v8990_v25  ;;  %v4320_v45 = vcombine.low %v4221_v1, %v4233_v41  ;;  %v4321_v46 = vcombine.high %v4221_v1, %v4233_v41 }
 0xe48   : > { %v4231_v2 = vpop.permute.xlu1 %4230 }
 0xe49   : > { %v4252_v26 = vcombine.low %v4219_v39, %v4231_v2  ;;  %v4253_v42 = vcombine.high %v4219_v39, %v4231_v2  ;;  %v4328_v50 = vrot.slane %v4320_v45, %v8990_v25  ;;  %v4335_v52 = vrot.slane %v4321_v46, %v8990_v25 }
 0xe4a   : > { %v3935_v14 = vpop.permute.xlu0 %3934 }
 0xe4b   : > { %v4260_v47 = vrot.slane %v4252_v26, %v8990_v25  ;;  %v4267_v48 = vrot.slane %v4253_v42, %v8990_v25  ;;  %v4012_v63 = vcombine.low %v9432_v33, %v3935_v14  ;;  %v4013_v0 = vcombine.high %v9432_v33, %v3935_v14 }
 0xe4c   : > { %v4227_v55 = vpop.permute.xlu1 %4226 }
 0xe4d   : > { %v4268_v7 = vcombine.low %v4244_v43, %v4260_v47  ;;  %v4269_v22 = vcombine.high %v4244_v43, %v4260_v47  ;;  %v4284_v16 = vcombine.low %v4251_v44, %v4267_v48  ;;  %v4285_v18 = vcombine.high %v4251_v44, %v4267_v48 }
 0xe4e   : > { %v4304_v28 = vcombine.low %v3881_v4, %v4227_v55  ;;  %v4305_v49 = vcombine.high %v3881_v4, %v4227_v55  ;;  %v3941_v36 = vpop.permute.xlu0 %3940  ;;  %v4020_v33 = vrot.slane %v4012_v63, %v8990_v25  ;;  %v4027_v37 = vrot.slane %v4013_v0, %v8990_v25 }
 0xe4f   : > { %v4276_v13 = vrot.slane %v4268_v7, %v8993_v32  ;;  %v4283_v20 = vrot.slane %v4269_v22, %v8993_v32  ;;  %v4292_v24 = vrot.slane %v4284_v16, %v8993_v32  ;;  %v4299_v3 = vrot.slane %v4285_v18, %v8993_v32 }
 0xe50   : > { %v4312_v53 = vrot.slane %v4304_v28, %v8990_v25  ;;  %v4319_v21 = vrot.slane %v4305_v49, %v8990_v25  ;;  %v4028_v6 = vcombine.low %v3929_v38, %v3941_v36  ;;  %v4029_v27 = vcombine.high %v3929_v38, %v3941_v36  ;;  %v3933_v29 = vpop.permute.xlu1 %3932 }
 0xe51   : > { %v4372_v19 = vcombine.low %v4276_v13, %v4283_v20  ;;  %v7023_v15 = vcombine.high %v4276_v13, %v4283_v20  ;;  %v4388_v1 = vcombine.low %v4292_v24, %v4299_v3  ;;  %v7024_v40 = vcombine.high %v4292_v24, %v4299_v3 }
 0xe52   : > { %v4336_v9 = vcombine.low %v4312_v53, %v4328_v50  ;;  %v4337_v54 = vcombine.high %v4312_v53, %v4328_v50  ;;  %v4352_v17 = vcombine.low %v4319_v21, %v4335_v52  ;;  %v4353_v11 = vcombine.high %v4319_v21, %v4335_v52 }
 0xe53   : > { %v4036_v57 = vrot.slane %v4028_v6, %v8990_v25  ;;  %v4043_v38 = vrot.slane %v4029_v27, %v8990_v25  ;;  %v9483_v46 = vrot.slane %v4372_v19, %v8990_v25  ;;  %v9486_v47 = vrot.slane %v7023_v15, %v8990_v25 }
 0xe54   : > { %v4344_v4 = vrot.slane %v4336_v9, %v8993_v32  ;;  %v4351_v39 = vrot.slane %v4337_v54, %v8993_v32  ;;  %v4360_v62 = vrot.slane %v4352_v17, %v8993_v32  ;;  %v4367_v41 = vrot.slane %v4353_v11, %v8993_v32  ;;  %v3939_v45 = vpop.permute.xlu1 %3938 }
 0xe55   : > { %v4044_v42 = vcombine.low %v4020_v33, %v4036_v57  ;;  %v4045_v43 = vcombine.high %v4020_v33, %v4036_v57  ;;  %v4060_v44 = vcombine.low %v4027_v37, %v4043_v38  ;;  %v4061_v14 = vcombine.high %v4027_v37, %v4043_v38 }
 0xe56   : > { %v4440_v2 = vcombine.low %v4344_v4, %v4351_v39  ;;  %v7025_v26 = vcombine.high %v4344_v4, %v4351_v39  ;;  %v3944_v48 = vcombine.low %v9428_v5, %v3933_v29  ;;  %v3945_v55 = vcombine.high %v9428_v5, %v3933_v29 }
 0xe57   : > { %v4052_v7 = vrot.slane %v4044_v42, %v8993_v32  ;;  %v4059_v22 = vrot.slane %v4045_v43, %v8993_v32  ;;  %v4068_v16 = vrot.slane %v4060_v44, %v8993_v32  ;;  %v4075_v18 = vrot.slane %v4061_v14, %v8993_v32 }
 0xe58   : > { %v9495_v28 = vrot.slane %v4388_v1, %v8990_v25  ;;  %v9498_v49 = vrot.slane %v7024_v40, %v8990_v25  ;;  %v3960_v36 = vcombine.low %v9458_v10, %v3939_v45  ;;  %v3961_v50 = vcombine.high %v9458_v10, %v3939_v45 }
 0xe59   : > { %v9503_v5 = vrot.slane %v4440_v2, %v8990_v25  ;;  %v9506_v52 = vrot.slane %v7025_v26, %v8990_v25  ;;  %v4456_v63 = vcombine.low %v4360_v62, %v4367_v41  ;;  %v7026_v0 = vcombine.high %v4360_v62, %v4367_v41 }
 0xe5a   : > { %v3952_v13 = vrot.slane %v3944_v48, %v8990_v25  ;;  %v3959_v20 = vrot.slane %v3945_v55, %v8990_v25  ;;  %v3968_v53 = vrot.slane %v3960_v36, %v8990_v25  ;;  %v3975_v21 = vrot.slane %v3961_v50, %v8990_v25 }
 0xe5b   : > { %v4148_v24 = vcombine.low %v4052_v7, %v4059_v22  ;;  %v7021_v3 = vcombine.high %v4052_v7, %v4059_v22  ;;  %v4164_v6 = vcombine.low %v4068_v16, %v4075_v18  ;;  %v7022_v10 = vcombine.high %v4068_v16, %v4075_v18 }
 0xe5c   : > { %v3976_v27 = vcombine.low %v3952_v13, %v3968_v53  ;;  %v3977_v29 = vcombine.high %v3952_v13, %v3968_v53  ;;  %v3992_v9 = vcombine.low %v3959_v20, %v3975_v21  ;;  %v3993_v54 = vcombine.high %v3959_v20, %v3975_v21 }
 0xe5d   : > { %v4463_v17 = vrot.slane %v4456_v63, %v8990_v25  ;;  %v4471_v11 = vrot.slane %v7026_v0, %v8990_v25  ;;  %v4404_v33 = vcombine.low %v9483_v46, %v9486_v47  ;;  %v4420_v37 = vcombine.low %v9495_v28, %v9498_v49 }
 0xe5e   : > { %v3984_v19 = vrot.slane %v3976_v27, %v8993_v32  ;;  %v3991_v15 = vrot.slane %v3977_v29, %v8993_v32  ;;  %v4000_v4 = vrot.slane %v3992_v9, %v8993_v32  ;;  %v4007_v39 = vrot.slane %v3993_v54, %v8993_v32 }
 0xe5f   : > { %v9523_v1 = vrot.slane %v4148_v24, %v8990_v25  ;;  %v9526_v40 = vrot.slane %v7021_v3, %v8990_v25  ;;  %v9529_v57 = vrot.slane %v4164_v6, %v8990_v25  ;;  %v4179_v38 = vrot.slane %v7022_v10, %v8990_v25 }
 0xe60   : > { %v4080_v62 = vcombine.low %v3984_v19, %v3991_v15  ;;  %v7019_v41 = vcombine.high %v3984_v19, %v3991_v15  ;;  %v4096_v2 = vcombine.low %v4000_v4, %v4007_v39  ;;  %v7020_v26 = vcombine.high %v4000_v4, %v4007_v39 }
 0xe61   : > { %v4412_v42 = vrot.slane %v4404_v33, %v8993_v32  ;;  %v4428_v43 = vrot.slane %v4420_v37, %v8993_v32  ;;  %v4472_v44 = vcombine.low %v9503_v5, %v9506_v52  ;;  %v4488_v14 = vcombine.low %v4463_v17, %v4471_v11 }
 0xe62   : > { %v4087_v45 = vrot.slane %v4080_v62, %v8990_v25  ;;  %v4095_v48 = vrot.slane %v7019_v41, %v8990_v25  ;;  %v4103_v55 = vrot.slane %v4096_v2, %v8990_v25  ;;  %v4111_v7 = vrot.slane %v7020_v26, %v8990_v25 }
 0xe63   : > { %v4180_v22 = vcombine.low %v9523_v1, %v9526_v40  ;;  %v4196_v16 = vcombine.low %v9529_v57, %v4179_v38  ;;  %v4480_v18 = vrot.slane %v4472_v44, %v8993_v32  ;;  %v4496_v36 = vrot.slane %v4488_v14, %v8993_v32 }
 0xe64   : > { %v4112_v50 = vcombine.low %v4087_v45, %v4095_v48  ;;  %v4128_v63 = vcombine.low %v4103_v55, %v4111_v7  ;;  %v4436_v0 = vcombine.low %v4412_v42, %v4428_v43  ;;  %v4473_v29 = vcombine.high %v9503_v5, %v9506_v52 }
 0xe65   : > { %v4504_v13 = vcombine.low %v4480_v18, %v4496_v36  ;;  %v4188_v21 = vrot.slane %v4180_v22, %v8993_v32  ;;  %v4204_v24 = vrot.slane %v4196_v16, %v8993_v32  ;;  %v4505_v6 = vcombine.high %v4480_v18, %v4496_v36 }
 0xe66   : > { %v4120_v20 = vrot.slane %v4112_v50, %v8993_v32  ;;  %v4136_v53 = vrot.slane %v4128_v63, %v8993_v32  ;;  %v4489_v9 = vcombine.high %v4463_v17, %v4471_v11  ;;  %v4437_v33 = vcombine.high %v4412_v42, %v4428_v43 }
 0xe67   : > { %v4804_v3 = vpack.c.bf16 %v4504_v13, %v4436_v0  ;;  %v4212_v54 = vcombine.low %v4188_v21, %v4204_v24  ;;  %v4405_v37 = vcombine.high %v9483_v46, %v9486_v47  ;;  %v4421_v19 = vcombine.high %v9495_v28, %v9498_v49 }
 0xe68   : > { %v4144_v27 = vcombine.low %v4120_v20, %v4136_v53  ;;  %v4805_v4 = vpack.c.bf16 %v4505_v6, %v4437_v33  ;;  %v4487_v39 = vrot.slane %v4473_v29, %v8993_v32  ;;  %v4503_v62 = vrot.slane %v4489_v9, %v8993_v32 }
 0xe69   : > { %v4812_v10 = vsel %vm1957_vm1, %v4804_v3, 0  ;;  %v4419_v5 = vrot.slane %v4405_v37, %v8993_v32  ;;  %v4435_v52 = vrot.slane %v4421_v19, %v8993_v32  ;;  %v4113_v46 = vcombine.high %v4087_v45, %v4095_v48 }
 0xe6a   : > { %7414 = vmatpush3.bf16.xpose.msra.mxu1 %v4812_v10  ;;  %v4800_v15 = vpack.c.bf16 %v4212_v54, %v4144_v27  ;;  %v4859_v17 = vsel %vm1957_vm1, %v4805_v4, 0  ;;  %v4506_v11 = vcombine.low %v4487_v39, %v4503_v62  ;;  %v4129_v47 = vcombine.high %v4103_v55, %v4111_v7 }
 0xe6b   : > { %7419 = vmatprep.subr.bf16.mxu1 %v8438_v8  ;;  %v4145_v28 = vcombine.high %v4120_v20, %v4136_v53  ;;  %v4438_v49 = vcombine.low %v4419_v5, %v4435_v52  ;;  %v4181_v41 = vcombine.high %v9523_v1, %v9526_v40  ;;  %v4197_v2 = vcombine.high %v9529_v57, %v4179_v38 }
 0xe6c   : > { %v4213_v26 = vcombine.high %v4188_v21, %v4204_v24  ;;  %v4127_v43 = vrot.slane %v4113_v46, %v8993_v32  ;;  %v4143_v44 = vrot.slane %v4129_v47, %v8993_v32  ;;  %v4507_v55 = vcombine.high %v4487_v39, %v4503_v62 }
 0xe6d   : > { %v4806_v42 = vpack.c.bf16 %v4506_v11, %v4438_v49  ;;  %v4195_v22 = vrot.slane %v4181_v41, %v8993_v32  ;;  %v4211_v45 = vrot.slane %v4197_v2, %v8993_v32  ;;  %v4439_v40 = vcombine.high %v4419_v5, %v4435_v52 }
 0xe6e   : > { %v4801_v14 = vpack.c.bf16 %v4213_v26, %v4145_v28  ;;  %v4146_v1 = vcombine.low %v4127_v43, %v4143_v44  ;;  %v4147_v18 = vcombine.high %v4127_v43, %v4143_v44 }
 0xe6f   : > { %v4906_v48 = vsel %vm1957_vm1, %v4806_v42, 0  ;;  %v4214_v57 = vcombine.low %v4195_v22, %v4211_v45  ;;  %v4807_v38 = vpack.c.bf16 %v4507_v55, %v4439_v40  ;;  %v4215_v36 = vcombine.high %v4195_v22, %v4211_v45 }
 0xe71   : > { %7416 = vmatmul.mubr.msk.bf16.vlgmr.msra.gmra.mrb[32].mxu1 %vm1957_vm1, %v4800_v15  ;;  %v4802_v7 = vpack.c.bf16 %v4214_v57, %v4146_v1  ;;  %v4953_v16 = vsel %vm1957_vm1, %v4807_v38, 0  ;;  %v4803_v50 = vpack.c.bf16 %v4215_v36, %v4147_v18  ;;  %v9608_v1 = vpop.permute.xlu1 %4510 }
 0xe72   : > { %7420 = vmatpush3.bf16.xpose.msra.mxu1 %v4859_v17  ;;  %7421 = vmatprep.mubr.msk.bf16.mxu1 %vm8440_vm0, %v8438_v8 }
 0xe73   : > { %7425 = vmatprep.subr.bf16.mxu1 %v8438_v8 }
 0xe79   : > { %7422 = vmatmul.mubr.msk.bf16.vlgmr.msra.gmra.mrb[36].mxu1 %vm1957_vm1, %v4801_v14 }
 0xe7a   : > { %7426 = vmatpush3.bf16.xpose.msra.mxu1 %v4906_v48  ;;  %7427 = vmatprep.mubr.msk.bf16.mxu1 %vm8440_vm0, %v8438_v8 }
 0xe7b   : > { %7431 = vmatprep.subr.bf16.mxu1 %v8438_v8 }
 0xe81   : > { %7428 = vmatmul.mubr.msk.bf16.vlgmr.msra.gmra.mrb[40].mxu1 %vm1957_vm1, %v4802_v7 }
 0xe82   : > { %7432 = vmatpush3.bf16.xpose.msra.mxu1 %v4953_v16  ;;  %7433 = vmatprep.mubr.msk.bf16.mxu1 %vm8440_vm0, %v8438_v8 }
 0xe83   : > { %7443 = vmatprep.subr.bf16.mxu1 %v8438_v8 }
 0xe89   : > { %7434 = vmatmul.mubr.msk.bf16.vlgmr.msra.gmra.mrb[44].mxu1 %vm1957_vm1, %v4803_v50 }
 0xe8a   : > { %7445 = vmatprep.mubr.msk.bf16.mxu1 %vm8440_vm0, %v8438_v8 }
 0xf44   : > { %v4848_v63 = vpop.f32.mrb[32].mxu1 }
 0xf45   : > { %v4996_v0 = vmul.f32 0.17677669, %v4848_v63  ;;  %v7417_v13 = vpop.f32.mrb[33].mxu1 }
 0xf46   : > { %v4851_v20 = vpop.f32.mrb[34].mxu1 }
 0xf47   : > { %v4997_v53 = vmul.f32 0.17677669, %v4851_v20  ;;  %v7418_v21 = vpop.f32.mrb[35].mxu1  ;;  %v5004_v24 = vadd.f32 %v4996_v0, %v9132_v51 }
 0xf49   : > { %v5012_v3 = vsel %vm2162_vm8, %v5004_v24, -inf  ;;  %v5005_v6 = vadd.f32 %v4997_v53, %v9134_v12 }
 0xf4a   : > { %5013 = vmax.xlane.f32.xlu1 %v5012_v3 }
 0xf4b   : > { %v5015_v10 = vsel %vm2162_vm8, %v5005_v6, -inf }
 0xf4c   : > { %5016 = vmax.xlane.f32.xlu0 %v5015_v10  ;;  %v4895_v27 = vpop.f32.mrb[36].mxu1 }
 0xf4d   : > { %v4998_v29 = vmul.f32 0.17677669, %v4895_v27  ;;  %v7423_v9 = vpop.f32.mrb[37].mxu1 }
 0xf4e   : > { %v4898_v54 = vpop.f32.mrb[38].mxu1 }
 0xf4f   : > { %v4999_v33 = vmul.f32 0.17677669, %v4898_v54  ;;  %v7424_v37 = vpop.f32.mrb[39].mxu1  ;;  %v5006_v19 = vadd.f32 %v4998_v29, %v9132_v51 }
 0xf51   : > { %v5018_v15 = vsel %vm2162_vm8, %v5006_v19, -inf  ;;  %v5007_v4 = vadd.f32 %v4999_v33, %v9134_v12 }
 0xf52   : > { %5019 = vmax.xlane.f32.xlu0 %v5018_v15 }
 0xf53   : > { %v5021_v52 = vsel %vm2162_vm8, %v5007_v4, -inf }
 0xf54   : > { %v4942_v39 = vpop.f32.mrb[40].mxu1 }
 0xf55   : > { %v5000_v62 = vmul.f32 0.17677669, %v4942_v39  ;;  %v7429_v5 = vpop.f32.mrb[41].mxu1 }
 0xf56   : > { %5022 = vmax.xlane.f32.xlu0 %v5021_v52  ;;  %v4945_v17 = vpop.f32.mrb[42].mxu1 }
 0xf57   : > { %v5001_v11 = vmul.f32 0.17677669, %v4945_v17  ;;  %v7430_v46 = vpop.f32.mrb[43].mxu1  ;;  %v5008_v47 = vadd.f32 %v5000_v62, %v9132_v51 }
 0xf59   : > { %v5024_v28 = vsel %vm2162_vm8, %v5008_v47, -inf  ;;  %v5009_v49 = vadd.f32 %v5001_v11, %v9134_v12 }
 0xf5a   : > { %5025 = vmax.xlane.f32.xlu1 %v5024_v28 }
 0xf5b   : > { %v5027_v41 = vsel %vm2162_vm8, %v5009_v49, -inf }
 0xf5c   : > { %5028 = vmax.xlane.f32.xlu0 %v5027_v41  ;;  %v4989_v2 = vpop.f32.mrb[44].mxu1 }
 0xf5d   : > { %v5002_v26 = vmul.f32 0.17677669, %v4989_v2  ;;  %v7435_v42 = vpop.f32.mrb[45].mxu1 }
 0xf5e   : > { %v4992_v43 = vpop.f32.mrb[46].mxu1 }
 0xf5f   : > { %v5003_v44 = vmul.f32 0.17677669, %v4992_v43  ;;  %v7436_v14 = vpop.f32.mrb[47].mxu1  ;;  %v5010_v22 = vadd.f32 %v5002_v26, %v9132_v51 }
 0xf61   : > { %v5030_v45 = vsel %vm2162_vm8, %v5010_v22, -inf  ;;  %v5011_v48 = vadd.f32 %v5003_v44, %v9134_v12 }
 0xf62   : > { %5031 = vmax.xlane.f32.xlu1 %v5030_v45 }
 0xf63   : > { %v5033_v55 = vsel %vm2162_vm8, %v5011_v48, -inf }
 0xf64   : > { %5034 = vmax.xlane.f32.xlu0 %v5033_v55 }
 0xf73   : > { %4516 = vrot.lane.b32.xlu1 %v9454_v23, %s8442_s22 }
 0xf77   : > { %4518 = vrot.lane.b32.xlu1 %v9434_v60, %s8442_s22 }
 0xf7a   : > { %4512 = vrot.lane.b32.xlu0 %v9434_v60, %s8441_s9 }
 0xfd7   : > { %v5014_v51 = vpop.xlane.xlu1 %5013 }
 0xfd8   : > { %v5036_v40 = vsub.f32 %v5004_v24, %v5014_v51 }
 0xfd9   : > { %v5017_v57 = vpop.xlane.xlu0 %5016 }
 0xfda   : > { %v5044_v38 = vmul.f32 1.442695, %v5036_v40  ;;  %v5037_v12 = vsub.f32 %v5005_v6, %v5017_v57 }
 0xfdc   : > { %7987 = vpow2.f32 %v5044_v38  ;;  %v5046_v7 = vmul.f32 1.442695, %v5037_v12 }
 0xfde   : > { %7989 = vpow2.f32 %v5046_v7 }
 0xfdf   : > { %v5020_v16 = vpop.xlane.xlu0 %5019 }
 0xfe0   : > { %v5038_v18 = vsub.f32 %v5006_v19, %v5020_v16 }
 0xfe2   : > { %v5048_v36 = vmul.f32 1.442695, %v5038_v18 }
 0xfe3   : > { %v5023_v21 = vpop.xlane.xlu0 %5022 }
 0xfe4   : > { %7991 = vpow2.f32 %v5048_v36  ;;  %v5039_v24 = vsub.f32 %v5007_v4, %v5023_v21 }
 0xfe6   : > { %v9610_v50 = vpop.eup %7987  ;;  %v5050_v10 = vmul.f32 1.442695, %v5039_v24 }
 0xfe7   : > { %v5060_v63 = vsel %vm2162_vm8, %v9610_v50, 0.0  ;;  %v5026_v3 = vpop.xlane.xlu1 %5025 }
 0xfe8   : > { %v9614_v0 = vpop.eup %7989  ;;  %5061 = vadd.xlane.f32.xlu1 %v5060_v63  ;;  %v5040_v9 = vsub.f32 %v5008_v47, %v5026_v3  ;;  %7993 = vpow2.f32 %v5050_v10 }
 0xfe9   : > { %v5063_v13 = vsel %vm2162_vm8, %v9614_v0, 0.0  ;;  %v5029_v6 = vpop.xlane.xlu0 %5028 }
 0xfea   : > { %5064 = vadd.xlane.f32.xlu0 %v5063_v13  ;;  %v5041_v27 = vsub.f32 %v5009_v49, %v5029_v6  ;;  %v5052_v19 = vmul.f32 1.442695, %v5040_v9 }
 0xfec   : > { %v5054_v54 = vmul.f32 1.442695, %v5041_v27 }
 0xfee   : > { %v9618_v20 = vpop.eup %7991  ;;  %7995 = vpow2.f32 %v5054_v54 }
 0xfef   : > { %v5066_v53 = vsel %vm2162_vm8, %v9618_v20, 0.0  ;;  %v5032_v29 = vpop.xlane.xlu1 %5031  ;;  %7997 = vpow2.f32 %v5052_v19 }
 0xff0   : > { %5067 = vadd.xlane.f32.xlu1 %v5066_v53  ;;  %v5042_v33 = vsub.f32 %v5010_v22, %v5032_v29 }
 0xff1   : > { %v5035_v37 = vpop.xlane.xlu0 %5034 }
 0xff2   : > { %v5056_v15 = vmul.f32 1.442695, %v5042_v33  ;;  %v5043_v39 = vsub.f32 %v5011_v48, %v5035_v37  ;;  %v9626_v5 = vpop.eup %7993 }
 0xff3   : > { %v5069_v4 = vsel %vm2162_vm8, %v9626_v5, 0.0  ;;  %v4517_v2 = vpop.permute.xlu1 %4516 }
 0xff4   : > { %7999 = vpow2.f32 %v5056_v15  ;;  %v5058_v62 = vmul.f32 1.442695, %v5043_v39  ;;  %v4528_v63 = vcombine.low %v9454_v23, %v4517_v2 }
 0xff5   : > { %v4513_v26 = vpop.permute.xlu0 %4512 }
 0xff6   : > { %8001 = vpow2.f32 %v5058_v62  ;;  %v4536_v33 = vrot.slane %v4528_v63, %v8990_v25 }
 0xff7   : > { %v4519_v42 = vpop.permute.xlu1 %4518 }
 0xff8   : > { %v9630_v52 = vpop.eup %7995  ;;  %v4596_v14 = vcombine.low %v9434_v60, %v4519_v42  ;;  %v4597_v22 = vcombine.high %v9434_v60, %v4519_v42 }
 0xff9   : > { %v9632_v17 = vpop.eup %7997  ;;  %v5075_v11 = vsel %vm2162_vm8, %v9630_v52, 0.0 }
 0xffa   : > { %v5072_v47 = vsel %vm2162_vm8, %v9632_v17, 0.0  ;;  %v4604_v40 = vrot.slane %v4596_v14, %v8990_v25  ;;  %v4611_v57 = vrot.slane %v4597_v22, %v8990_v25 }
 0xffe   : > { %v9636_v46 = vpop.eup %7999 }
 0xfff   : > { %v5078_v28 = vsel %vm2162_vm8, %v9636_v46, 0.0 }
0x1000   : > { %4524 = vrot.lane.b32.xlu0 %v9434_v60, %s8443_s16  ;;  %v9642_v49 = vpop.eup %8001  ;;  %v4529_v60 = vcombine.high %v9454_v23, %v4517_v2 }
0x1001   : > { %4522 = vrot.lane.b32.xlu1 %v9454_v23, %s8443_s16  ;;  %v5081_v41 = vsel %vm2162_vm8, %v9642_v49, 0.0 }
0x1002   : > { %v4543_v23 = vrot.slane %v4529_v60, %v8990_v25 }
0x101f   : > { %5070 = vadd.xlane.f32.xlu0 %v5069_v4 }
0x1023   : > { %5076 = vadd.xlane.f32.xlu0 %v5075_v11 }
0x1025   : > { %5073 = vadd.xlane.f32.xlu1 %v5072_v47 }
0x1027   : > { %5079 = vadd.xlane.f32.xlu0 %v5078_v28 }
0x102b   : > { %5082 = vadd.xlane.f32.xlu0 %v5081_v41 }
0x1075   : > { %v5062_v44 = vpop.xlane.xlu1 %5061 }
0x1077   : > { %v5065_v43 = vpop.xlane.xlu0 %5064 }
0x1078   : > { %8003 = vrcp.f32 %v5065_v43 }
0x1079   : > { %8005 = vrcp.f32 %v5062_v44 }
0x107b   : > { %v4525_v45 = vpop.permute.xlu0 %4524 }
0x107c   : > { %v4612_v48 = vcombine.low %v4513_v26, %v4525_v45  ;;  %v4613_v55 = vcombine.high %v4513_v26, %v4525_v45 }
0x107d   : > { %v9648_v51 = vpop.xlane.xlu1 %5067 }
0x107e   : > { %v4620_v38 = vrot.slane %v4612_v48, %v8990_v25  ;;  %v4627_v12 = vrot.slane %v4613_v55, %v8990_v25  ;;  %8007 = vrcp.f32 %v9648_v51 }
0x1080   : > { %v4628_v7 = vcombine.low %v4604_v40, %v4620_v38  ;;  %v4629_v16 = vcombine.high %v4604_v40, %v4620_v38  ;;  %v4644_v18 = vcombine.low %v4611_v57, %v4627_v12  ;;  %v4645_v36 = vcombine.high %v4611_v57, %v4627_v12 }
0x1081   : > { %v4523_v13 = vpop.permute.xlu1 %4522 }
0x1082   : > { %v4636_v53 = vrot.slane %v4628_v7, %v8993_v32  ;;  %v4643_v21 = vrot.slane %v4629_v16, %v8993_v32  ;;  %v4652_v24 = vrot.slane %v4644_v18, %v8993_v32  ;;  %v4659_v3 = vrot.slane %v4645_v36, %v8993_v32  ;;  %v8004_v36 = vpop.eup %8003 }
0x1083   : > { %v4544_v6 = vcombine.low %v9608_v1, %v4523_v13  ;;  %v4545_v10 = vcombine.high %v9608_v1, %v4523_v13 }
0x1084   : > { %v4732_v27 = vcombine.low %v4636_v53, %v4643_v21  ;;  %v7029_v29 = vcombine.high %v4636_v53, %v4643_v21  ;;  %v4748_v9 = vcombine.low %v4652_v24, %v4659_v3  ;;  %v7030_v54 = vcombine.high %v4652_v24, %v4659_v3 }
0x1085   : > { %v4552_v37 = vrot.slane %v4544_v6, %v8990_v25  ;;  %v4559_v19 = vrot.slane %v4545_v10, %v8990_v25 }
0x1086   : > { %v4739_v11 = vrot.slane %v4732_v27, %v8990_v25  ;;  %v4747_v1 = vrot.slane %v7029_v29, %v8990_v25  ;;  %v4755_v47 = vrot.slane %v4748_v9, %v8990_v25  ;;  %v4763_v28 = vrot.slane %v7030_v54, %v8990_v25  ;;  %v8006_v29 = vpop.eup %8005 }
0x1087   : > { %v4560_v15 = vcombine.low %v4536_v33, %v4552_v37  ;;  %v4561_v39 = vcombine.high %v4536_v33, %v4552_v37  ;;  %v4576_v62 = vcombine.low %v4543_v23, %v4559_v19  ;;  %v4577_v4 = vcombine.high %v4543_v23, %v4559_v19 }
0x1088   : > { %v4764_v48 = vcombine.low %v4739_v11, %v4747_v1  ;;  %v4780_v55 = vcombine.low %v4755_v47, %v4763_v28  ;;  %v4765_v18 = vcombine.high %v4739_v11, %v4747_v1  ;;  %v4781_v44 = vcombine.high %v4755_v47, %v4763_v28 }
0x1089   : > { %v4568_v41 = vrot.slane %v4560_v15, %v8993_v32  ;;  %v4575_v2 = vrot.slane %v4561_v39, %v8993_v32  ;;  %v4584_v26 = vrot.slane %v4576_v62, %v8993_v32  ;;  %v4591_v42 = vrot.slane %v4577_v4, %v8993_v32 }
0x108a   : > { %v4772_v60 = vrot.slane %v4764_v48, %v8993_v32  ;;  %v4788_v13 = vrot.slane %v4780_v55, %v8993_v32  ;;  %v4779_v10 = vrot.slane %v4765_v18, %v8993_v32  ;;  %v4795_v27 = vrot.slane %v4781_v44, %v8993_v32  ;;  %v7817_v18 = vld [vmem:[#allocation13 + $0x50] sm:$0xff]   ;;  %v7818_v44 = vld [vmem:[#allocation13 + $0x58] sm:$0xff]  }
0x108b   : > { %v4664_v43 = vcombine.low %v4568_v41, %v4575_v2  ;;  %v7027_v14 = vcombine.high %v4568_v41, %v4575_v2  ;;  %v4680_v22 = vcombine.low %v4584_v26, %v4591_v42  ;;  %v7028_v45 = vcombine.high %v4584_v26, %v4591_v42  ;;  %v8008_v41 = vpop.eup %8007 }
0x108c   : > { %v4796_v54 = vcombine.low %v4772_v60, %v4788_v13  ;;  %v4797_v23 = vcombine.high %v4772_v60, %v4788_v13  ;;  %v5093_v37 = vmul.f32 %v8004_v36, %v9614_v0  ;;  %v5092_v62 = vmul.f32 %v8006_v29, %v9610_v50 }
0x108d   : > { %v4671_v40 = vrot.slane %v4664_v43, %v8990_v25  ;;  %v4679_v57 = vrot.slane %v7027_v14, %v8990_v25  ;;  %v4687_v38 = vrot.slane %v4680_v22, %v8990_v25  ;;  %v4695_v12 = vrot.slane %v7028_v45, %v8990_v25 }
0x108e   : > { %v4798_v4 = vcombine.low %v4779_v10, %v4795_v27  ;;  %v5100_v11 = vpack.c.bf16 %v5093_v37, %v5092_v62  ;;  %v5094_v42 = vmul.f32 %v8008_v41, %v9618_v20  ;;  %v4799_v22 = vcombine.high %v4779_v10, %v4795_v27 }
0x108f   : > { %v4696_v7 = vcombine.low %v4671_v40, %v4679_v57  ;;  %v4697_v16 = vcombine.high %v4671_v40, %v4679_v57  ;;  %v4712_v63 = vcombine.low %v4687_v38, %v4695_v12  ;;  %v4713_v53 = vcombine.high %v4687_v38, %v4695_v12 }
0x1091   : > { %v4704_v21 = vrot.slane %v4696_v7, %v8993_v32  ;;  %v4720_v24 = vrot.slane %v4712_v63, %v8993_v32  ;;  %v4711_v3 = vrot.slane %v4697_v16, %v8993_v32  ;;  %v4727_v6 = vrot.slane %v4713_v53, %v8993_v32 }
0x1093   : > { %v4728_v9 = vcombine.low %v4704_v21, %v4720_v24  ;;  %v4729_v33 = vcombine.high %v4704_v21, %v4720_v24  ;;  %v4730_v39 = vcombine.low %v4711_v3, %v4727_v6  ;;  %v4731_v26 = vcombine.high %v4711_v3, %v4727_v6 }
0x1095   : > { %v5104_v19 = vpack.c.bf16 %v4796_v54, %v4728_v9  ;;  %v5105_v15 = vpack.c.bf16 %v4797_v23, %v4729_v33  ;;  %v5106_v1 = vpack.c.bf16 %v4798_v4, %v4730_v39  ;;  %v5107_v48 = vpack.c.bf16 %v4799_v22, %v4731_v26 }
0x1097   : > { %7438 = vmatpush3.bf16.msra.mxu0 %v5104_v19  ;;  %7444 = vmatpush3.bf16.msra.mxu1 %v5105_v15 }
0x1098   : > { %7449 = vmatprep.subr.bf16.mxu0 %v8438_v8  ;;  %7455 = vmatprep.subr.bf16.mxu1 %v8438_v8 }
0x109a   : > { %7440 = vmatmul.mubr.msk.bf16.vlgmr.msra.gmra.mrb[36].mxu0 %vm2162_vm8, %v5100_v11 }
0x109b   : > { %7450 = vmatpush3.bf16.msra.mxu0 %v5106_v1  ;;  %7451 = vmatprep.mubr.msk.bf16.mxu0 %vm8440_vm0, %v8438_v8 }
0x109c   : > { %7461 = vmatprep.subr.bf16.mxu0 %v8438_v8 }
0x10ac   : > { %v5071_v50 = vpop.xlane.xlu0 %5070 }
0x10ad   : > { %8009 = vrcp.f32 %v5071_v50 }
0x10b0   : > { %v5077_v0 = vpop.xlane.xlu0 %5076 }
0x10b1   : > { %8011 = vrcp.f32 %v5077_v0 }
0x10b2   : > { %v5074_v47 = vpop.xlane.xlu1 %5073 }
0x10b3   : > { %8013 = vrcp.f32 %v5074_v47 }
0x10b4   : > { %v5080_v28 = vpop.xlane.xlu0 %5079 }
0x10b5   : > { %8015 = vrcp.f32 %v5080_v28 }
0x10b7   : > { %v8010_v2 = vpop.eup %8009 }
0x10b8   : > { %v5095_v43 = vmul.f32 %v8010_v2, %v9626_v5  ;;  %v5083_v14 = vpop.xlane.xlu0 %5082 }
0x10b9   : > { %8017 = vrcp.f32 %v5083_v14 }
0x10ba   : > { %v5101_v45 = vpack.c.bf16 %v5095_v43, %v5094_v42 }
0x10bb   : > { %v8012_v51 = vpop.eup %8011 }
0x10bc   : > { %7446 = vmatmul.mubr.msk.bf16.vlgmr.msra.gmra.mrb[48].mxu1 %vm2162_vm8, %v5101_v45  ;;  %v5097_v40 = vmul.f32 %v8012_v51, %v9630_v52  ;;  %v7815_v52 = vld [vmem:[#allocation13 + $0x40] sm:$0xff]  }
0x10bd   : > { %v8014_v55 = vpop.eup %8013  ;;  %7456 = vmatpush3.bf16.msra.mxu1 %v5107_v48  ;;  %7457 = vmatprep.mubr.msk.bf16.mxu1 %vm8440_vm0, %v8438_v8 }
0x10be   : > { %v5096_v57 = vmul.f32 %v8014_v55, %v9632_v17  ;;  %v7816_v17 = vld [vmem:[#allocation13 + $0x48] sm:$0xff]  }
0x10bf   : > { %v8016_v38 = vpop.eup %8015 }
0x10c0   : > { %v5102_v20 = vpack.c.bf16 %v5097_v40, %v5096_v57  ;;  %v5098_v12 = vmul.f32 %v8016_v38, %v9636_v46  ;;  %v7819_v46 = vld [vmem:[#allocation13 + $0x60] sm:$0xff]  }
0x10c2   : > { %7452 = vmatmul.mubr.msk.bf16.vlgmr.msra.gmra.mrb[40].mxu0 %vm2162_vm8, %v5102_v20 }
0x10c3   : > { %v8018_v5 = vpop.eup %8017  ;;  %7477 = vmatprep.mubr.msk.bf16.mxu0 %vm8440_vm0, %v8438_v8  ;;  %7462 = vmatpush3.bf16.msra.mxu0 %v7815_v52 }
0x10c4   : > { %v5099_v7 = vmul.f32 %v8018_v5, %v9642_v49  ;;  %7463 = vmatprep.subr.bf16.mxu0 %v8438_v8  ;;  %v7820_v49 = vld [vmem:[#allocation13 + $0x68] sm:$0xff]  }
0x10c6   : > { %v5103_v16 = vpack.c.bf16 %v5099_v7, %v5098_v12 }
0x10c7   : > { %7464 = vmatpush3.bf16.msra.mxu0 %v7816_v17 }
0x10c8   : > { %7458 = vmatmul.mubr.msk.bf16.vlgmr.msra.gmra.mrb[52].mxu1 %vm2162_vm8, %v5103_v16  ;;  %7465 = vmatprep.subr.bf16.mxu0 %v8438_v8 }
0x10c9   : > { %5994 = vmatprep.mubr.bf16.mxu1 %v8439_v34 }
0x10cb   : > { %7466 = vmatpush3.bf16.msra.mxu0 %v7817_v18 }
0x10cc   : > { %7467 = vmatprep.subr.bf16.mxu0 %v8438_v8 }
0x10cf   : > { %7468 = vmatpush3.bf16.msra.mxu0 %v7818_v44 }
0x10d0   : > { %7469 = vmatprep.subr.bf16.mxu0 %v8438_v8 }
0x10d3   : > { %7470 = vmatpush3.bf16.msra.mxu0 %v7819_v46 }
0x10d4   : > { %7471 = vmatprep.subr.bf16.mxu0 %v8438_v8 }
0x10d7   : > { %7472 = vmatpush3.bf16.msra.mxu0 %v7820_v49 }
0x10d8   : > { %7473 = vmatprep.subr.bf16.mxu0 %v8438_v8 }
0x116d   : > { %v5145_v36 = vpop.f32.mrb[36].mxu0 }
0x116e   : > { %v7441_v63 = vpop.f32.mrb[37].mxu0 }
0x116f   : > { %v5148_v60 = vpop.f32.mrb[38].mxu0 }
0x1170   : > { %v7442_v13 = vpop.f32.mrb[39].mxu0 }
0x118f   : > { %v5189_v53 = vpop.f32.mrb[48].mxu1 }
0x1190   : > { %v7447_v21 = vpop.f32.mrb[49].mxu1 }
0x1191   : > { %v5192_v24 = vpop.f32.mrb[50].mxu1 }
0x1192   : > { %v7448_v3 = vpop.f32.mrb[51].mxu1 }
0x1195   : > { %v5233_v6 = vpop.f32.mrb[40].mxu0 }
0x1196   : > { %v5284_v10 = vcombine.low %v5145_v36, %v5233_v6  ;;  %v5285_v27 = vcombine.high %v5145_v36, %v5233_v6  ;;  %v7453_v29 = vpop.f32.mrb[41].mxu0 }
0x1197   : > { %v5236_v9 = vpop.f32.mrb[42].mxu0  ;;  %v7821_v29 = vld [vmem:[#allocation13 + $0x70] sm:$0xff]  }
0x1198   : > { %v5352_v54 = vcombine.low %v5148_v60, %v5236_v9  ;;  %v5353_v33 = vcombine.high %v5148_v60, %v5236_v9  ;;  %v7454_v23 = vpop.f32.mrb[43].mxu0  ;;  %v5292_v62 = vrot.slane %v5284_v10, %v8990_v25  ;;  %v5299_v4 = vrot.slane %v5285_v27, %v8990_v25  ;;  %7474 = vmatpush3.bf16.msra.mxu0 %v7821_v29  ;;  %v7826_v29 = vld [vmem:[#allocation14 + $0x108] ss:$16 sps:$4 sm:$0xff]  }
0x1199   : > { %7475 = vmatprep.subr.bf16.mxu0 %v8438_v8 }
0x119a   : > { %v5360_v43 = vrot.slane %v5352_v54, %v8990_v25  ;;  %v5367_v14 = vrot.slane %v5353_v33, %v8990_v25 }
0x119b   : > { %v5277_v37 = vpop.f32.mrb[52].mxu1 }
0x119c   : > { %v5300_v19 = vcombine.low %v5189_v53, %v5277_v37  ;;  %v5301_v15 = vcombine.high %v5189_v53, %v5277_v37  ;;  %v7459_v39 = vpop.f32.mrb[53].mxu1 }
0x119d   : > { %v5280_v11 = vpop.f32.mrb[54].mxu1 }
0x119e   : > { %v5308_v1 = vrot.slane %v5300_v19, %v8990_v25  ;;  %v5315_v50 = vrot.slane %v5301_v15, %v8990_v25  ;;  %v5368_v0 = vcombine.low %v5192_v24, %v5280_v11  ;;  %v5369_v47 = vcombine.high %v5192_v24, %v5280_v11  ;;  %v7460_v28 = vpop.f32.mrb[55].mxu1 }
0x11a0   : > { %v5316_v41 = vcombine.low %v5292_v62, %v5308_v1  ;;  %v5317_v2 = vcombine.high %v5292_v62, %v5308_v1  ;;  %v5332_v26 = vcombine.low %v5299_v4, %v5315_v50  ;;  %v5333_v42 = vcombine.high %v5299_v4, %v5315_v50 }
0x11a1   : > { %v5376_v22 = vrot.slane %v5368_v0, %v8990_v25  ;;  %v5383_v45 = vrot.slane %v5369_v47, %v8990_v25 }
0x11a2   : > { %v5324_v51 = vrot.slane %v5316_v41, %v8993_v32  ;;  %v5331_v48 = vrot.slane %v5317_v2, %v8993_v32  ;;  %v5340_v55 = vrot.slane %v5332_v26, %v8993_v32  ;;  %v5347_v40 = vrot.slane %v5333_v42, %v8993_v32  ;;  %v7822_v42 = vld [vmem:[#allocation13 + $0x78] sm:$0xff]  }
0x11a3   : > { %v5384_v57 = vcombine.low %v5360_v43, %v5376_v22  ;;  %v5385_v20 = vcombine.high %v5360_v43, %v5376_v22  ;;  %v5400_v38 = vcombine.low %v5367_v14, %v5383_v45  ;;  %v5401_v5 = vcombine.high %v5367_v14, %v5383_v45  ;;  %7476 = vmatpush3.bf16.msra.mxu0 %v7822_v42  ;;  %v7852_v42 = vld [vmem:[#allocation14 + $0x18c] ss:$16 sps:$4 sm:$0xff]  }
0x11a4   : > { %v5420_v12 = vcombine.low %v5324_v51, %v5331_v48  ;;  %v7039_v7 = vcombine.high %v5324_v51, %v5331_v48  ;;  %v5436_v16 = vcombine.low %v5340_v55, %v5347_v40  ;;  %v7040_v52 = vcombine.high %v5340_v55, %v5347_v40 }
0x11a5   : > { %v5392_v17 = vrot.slane %v5384_v57, %v8993_v32  ;;  %v5399_v18 = vrot.slane %v5385_v20, %v8993_v32  ;;  %v5408_v44 = vrot.slane %v5400_v38, %v8993_v32  ;;  %v5415_v46 = vrot.slane %v5401_v5, %v8993_v32 }
0x11a6   : > { %v5427_v49 = vrot.slane %v5420_v12, %v8990_v25  ;;  %v5435_v36 = vrot.slane %v7039_v7, %v8990_v25  ;;  %v5443_v63 = vrot.slane %v5436_v16, %v8990_v25  ;;  %v5451_v60 = vrot.slane %v7040_v52, %v8990_v25 }
0x11a7   : > { %v5488_v13 = vcombine.low %v5392_v17, %v5399_v18  ;;  %v7041_v53 = vcombine.high %v5392_v17, %v5399_v18  ;;  %v5504_v21 = vcombine.low %v5408_v44, %v5415_v46  ;;  %v7042_v24 = vcombine.high %v5408_v44, %v5415_v46 }
0x11a8   : > { %v5453_v3 = vcombine.high %v5427_v49, %v5435_v36  ;;  %v5469_v6 = vcombine.high %v5443_v63, %v5451_v60  ;;  %v5452_v10 = vcombine.low %v5427_v49, %v5435_v36  ;;  %v5468_v27 = vcombine.low %v5443_v63, %v5451_v60  ;;  %v7044_v36 = vld [vmem:[%s9991_s7 + $0x1] ss:$0 sm:$0xff] }
0x11a9   : > { %v5495_v9 = vrot.slane %v5488_v13, %v8990_v25  ;;  %v5503_v54 = vrot.slane %v7041_v53, %v8990_v25  ;;  %v5511_v33 = vrot.slane %v5504_v21, %v8990_v25  ;;  %v5519_v23 = vrot.slane %v7042_v24, %v8990_v25 }
0x11aa   : > { %v5467_v37 = vrot.slane %v5453_v3, %v8993_v32  ;;  %v5483_v19 = vrot.slane %v5469_v6, %v8993_v32  ;;  %v5460_v15 = vrot.slane %v5452_v10, %v8993_v32  ;;  %v5476_v39 = vrot.slane %v5468_v27, %v8993_v32  ;;  %v7823_v10 = vld [vmem:[#allocation14 + $0x100] ss:$16 sps:$4 sm:$0xff]   ;;  %v7825_v27 = vld [vmem:[#allocation14 + $0x104] ss:$16 sps:$4 sm:$0xff]  }
0x11ab   : > { %v5521_v62 = vcombine.high %v5495_v9, %v5503_v54  ;;  %v5537_v4 = vcombine.high %v5511_v33, %v5519_v23  ;;  %v5520_v11 = vcombine.low %v5495_v9, %v5503_v54  ;;  %v5536_v1 = vcombine.low %v5511_v33, %v5519_v23  ;;  %v7828_v9 = vld [vmem:[#allocation14 + $0x10c] ss:$16 sps:$4 sm:$0xff]   ;;  %v7831_v54 = vld [vmem:[#allocation14 + $0x124] ss:$16 sps:$4 sm:$0xff]   ;;  %5962 = vmatprep.subr.bf16.mxu1 %v7825_v27  ;;  %v7832_v23 = vld [vmem:[#allocation14 + $0x128] ss:$16 sps:$4 sm:$0xff]  }
0x11ac   : > { %v5486_v50 = vcombine.low %v5467_v37, %v5483_v19  ;;  %v5484_v0 = vcombine.low %v5460_v15, %v5476_v39  ;;  %v5485_v47 = vcombine.high %v5460_v15, %v5476_v39  ;;  %v5487_v28 = vcombine.high %v5467_v37, %v5483_v19  ;;  %v7834_v33 = vld [vmem:[#allocation14 + $0x12c] ss:$16 sps:$4 sm:$0xff]   ;;  %6005 = vmatprep.subr.bf16.mxu0 %v7828_v9  ;;  %v7871_v27 = vld [vmem:[#allocation16 + $0x140] sm:$0xff]  }
0x11ad   : > { %v5535_v25 = vrot.slane %v5521_v62, %v8993_v32  ;;  %v5551_v41 = vrot.slane %v5537_v4, %v8993_v32  ;;  %v5528_v2 = vrot.slane %v5520_v11, %v8993_v32  ;;  %v5544_v26 = vrot.slane %v5536_v1, %v8993_v32  ;;  %5963 = vmatpush1.bf16.msra.mxu1 %v7823_v10  ;;  %v7837_v1 = vld [vmem:[#allocation14 + $0x144] ss:$16 sps:$4 sm:$0xff]  }
0x11ae   : > { %5964 = vmatprep.subr.bf16.mxu1 %v7831_v54  ;;  %v7873_v9 = vld [vmem:[#allocation16 + $0x100] sm:$0xff]  }
0x11af   : > { %v5554_v43 = vcombine.low %v5535_v25, %v5551_v41  ;;  %v5553_v14 = vcombine.high %v5528_v2, %v5544_v26  ;;  %v5552_v22 = vcombine.low %v5528_v2, %v5544_v26  ;;  %v5555_v45 = vcombine.high %v5535_v25, %v5551_v41  ;;  %v7846_v25 = vld [vmem:[#allocation14 + $0x16c] ss:$16 sps:$4 sm:$0xff]   ;;  %v7841_v41 = vld [vmem:[#allocation14 + $0x160] ss:$16 sps:$4 sm:$0xff]   ;;  %v7844_v2 = vld [vmem:[#allocation14 + $0x168] ss:$16 sps:$4 sm:$0xff]  }
0x11b0   : > { %v7849_v26 = vld [vmem:[#allocation14 + $0x184] ss:$16 sps:$4 sm:$0xff]  }
0x11b1   : > { %v7653_v51 = vpack.i.bf16 %v5554_v43, %v5486_v50  ;;  %v7648_v8 = vpack.i.bf16 %v5553_v14, %v5485_v47  ;;  %v7658_v48 = vpack.i.bf16 %v5555_v45, %v5487_v28  ;;  %v7840_v50 = vld [vmem:[#allocation14 + $0x14c] ss:$16 sps:$4 sm:$0xff]   ;;  %v7838_v47 = vld [vmem:[#allocation14 + $0x148] ss:$16 sps:$4 sm:$0xff]   ;;  %v7843_v28 = vld [vmem:[#allocation14 + $0x164] ss:$16 sps:$4 sm:$0xff]  }
0x11b2   : > { %v7847_v43 = vld [vmem:[#allocation14 + $0x180] ss:$16 sps:$4 sm:$0xff]   ;;  %v7850_v14 = vld [vmem:[#allocation14 + $0x188] ss:$16 sps:$4 sm:$0xff]   ;;  %v7858_v45 = vld [vmem:[#allocation14 + $0x1ac] ss:$16 sps:$4 sm:$0xff]  }
0x11b3   : > { %7654 = vrot.lane.b32.xlu0 %v7653_v51, %s8442_s22  ;;  %7649 = vrot.lane.b32.xlu1 %v7648_v8, %s8443_s16  ;;  %v7853_v51 = vld [vmem:[#allocation14 + $0x1a0] ss:$16 sps:$4 sm:$0xff]   ;;  %v7856_v8 = vld [vmem:[#allocation14 + $0x1a8] ss:$16 sps:$4 sm:$0xff]   ;;  %s8447_s22 = smov [#allocation19]  }
0x11b4   : > { %v7874_v54 = vld [vmem:[#allocation16 + $0x180] sm:$0xff]   ;;  %s8331_s16 = sshll.u32 %s8447_s22, 4  ;;  %s8332_s16 = int_to_ptr.vmem [resolvable:$false] %s8331_s16 }
0x11b5   : > { %p8334_p2 = scmp.lt.s32.totalorder %s9851_s11, %s8332_s16 }
0x11b7   : > { %7659 = vrot.lane.b32.xlu1 %v7658_v48, %s8441_s9  ;;  %v7861_v48 = vld [vmem:[#allocation14 + $0x1c4] ss:$16 sps:$4 sm:$0xff]   ;;  %s9996_s9 = sld [smem:[#allocation42_spill]] }
0x1225   : > { %v7655_v55 = vpop.permute.xlu0 %7654  ;;  %v7650_v40 = vpop.permute.xlu1 %7649 }
0x1226   : > { %v7652_v57 = vunpack.i.h.bf16 %v7650_v40  ;;  %v7651_v20 = vunpack.i.l.bf16 %v7650_v40  ;;  %v7657_v32 = vunpack.i.h.bf16 %v7655_v55  ;;  %v7656_v38 = vunpack.i.l.bf16 %v7655_v55  ;;  %v7864_v55 = vld [vmem:[#allocation14 + $0x1cc] ss:$16 sps:$4 sm:$0xff]   ;;  %v7859_v40 = vld [vmem:[#allocation14 + $0x1c0] ss:$16 sps:$4 sm:$0xff]  }
0x1228   : > { %v5580_v5 = vsel %vm1957_vm1, %v5484_v0, %v7651_v20  ;;  %v5581_v12 = vsel %vm1957_vm1, %v5552_v22, %v7652_v57  ;;  %v7835_v0 = vld [vmem:[#allocation14 + $0x140] ss:$16 sps:$4 sm:$0xff]   ;;  %v7855_v22 = vld [vmem:[#allocation14 + $0x1a4] ss:$16 sps:$4 sm:$0xff]   ;;  %v7862_v57 = vld [vmem:[#allocation14 + $0x1c8] ss:$16 sps:$4 sm:$0xff]  }
0x1229   : > { %v7660_v7 = vpop.permute.xlu1 %7659  ;;  %v5582_v17 = vsel %vm2733_vm9, %v5580_v5, %v7656_v38  ;;  %v5583_v18 = vsel %vm2733_vm9, %v5581_v12, %v7657_v32  ;;  %v7867_v20 = vld [vmem:[#allocation14 + $0x1e4] ss:$16 sps:$4 sm:$0xff]   ;;  %v7870_v32 = vld [vmem:[#allocation14 + $0x1ec] ss:$16 sps:$4 sm:$0xff]   ;;  %v7865_v38 = vld [vmem:[#allocation14 + $0x1e0] ss:$16 sps:$4 sm:$0xff]  }
0x122a   : > { %v7662_v16 = vunpack.i.h.bf16 %v7660_v7  ;;  %v7661_v52 = vunpack.i.l.bf16 %v7660_v7  ;;  %v7868_v5 = vld [vmem:[#allocation14 + $0x1e8] ss:$16 sps:$4 sm:$0xff]  }
0x122c   : > { %v5584_v44 = vsel %vm2736_vm10, %v5582_v17, %v7661_v52  ;;  %v5585_v46 = vsel %vm2736_vm10, %v5583_v18, %v7662_v16 }
0x122d   : > { %v5586_v49 = vpack.c.bf16 %v5585_v46, %v5584_v44  ;;  %v7055_v46 = vld [vmem:[%s9992_s19 + $0x1] ss:$0 sm:$0xff] }
0x122f   : > { %7478 = vmatmul.mubr.bf16.vlgmr.msra.gmra.mrb[44].mxu0 %v5586_v49 }
0x1230   : > { %6037 = vmatprep.mubr.bf16.mxu0 %v8439_v34  ;;  %6006 = vmatpush1.bf16.msra.mxu0 %v7826_v29  ;;  %v7872_v29 = vld [vmem:[#allocation16 + $0x1c0] sm:$0xff]  }
0x1231   : > { %6007 = vmatprep.subr.bf16.mxu0 %v7834_v33  ;;  %v7875_v33 = vld [vmem:[#allocation16 + $0x148] sm:$0xff]  }
0x1234   : > { %6008 = vmatpush1.bf16.msra.mxu0 %v7832_v23  ;;  %v7877_v23 = vld [vmem:[#allocation16 + $0x108] sm:$0xff]  }
0x1235   : > { %6009 = vmatprep.subr.bf16.mxu0 %v7840_v50  ;;  %v7887_v50 = vld [vmem:[#allocation16 + $0x160] sm:$0xff]  }
0x1238   : > { %6010 = vmatpush1.bf16.msra.mxu0 %v7838_v47  ;;  %v7889_v47 = vld [vmem:[#allocation16 + $0x120] sm:$0xff]  }
0x1239   : > { %6011 = vmatprep.subr.bf16.mxu0 %v7846_v25  ;;  %v7891_v25 = vld [vmem:[#allocation16 + $0x168] sm:$0xff]  }
0x123c   : > { %6012 = vmatpush1.bf16.msra.mxu0 %v7844_v2  ;;  %v7893_v2 = vld [vmem:[#allocation16 + $0x128] sm:$0xff]  }
0x123d   : > { %6013 = vmatprep.subr.bf16.mxu0 %v7852_v42  ;;  %v7895_v42 = vld [vmem:[#allocation16 + $0x170] sm:$0xff]  }
0x1240   : > { %6014 = vmatpush1.bf16.msra.mxu0 %v7850_v14  ;;  %v7897_v14 = vld [vmem:[#allocation16 + $0x130] sm:$0xff]  }
0x1241   : > { %6015 = vmatprep.subr.bf16.mxu0 %v7858_v45  ;;  %v7899_v45 = vld [vmem:[#allocation16 + $0x178] sm:$0xff]  }
0x1244   : > { %6016 = vmatpush1.bf16.msra.mxu0 %v7856_v8  ;;  %v7901_v8 = vld [vmem:[#allocation16 + $0x138] sm:$0xff]  }
0x1245   : > { %6017 = vmatprep.subr.bf16.mxu0 %v7864_v55  ;;  %v7057_v55 = vld [vmem:[%s9994_s25 + $0x4] sm:$0xf] }
0x1248   : > { %6018 = vmatpush1.bf16.msra.mxu0 %v7862_v57  ;;  %v5793_v57 = vrot.slane %v7057_v55, %v9146_v30 }
0x1249   : > { %6019 = vmatprep.subr.bf16.mxu0 %v7870_v32  ;;  %v5797_v32 = vrot.slane %v7057_v55, %v2943_v31 }
0x124c   : > { %6020 = vmatpush1.bf16.msra.mxu0 %v7868_v5 }
0x124d   : > { %7283 = vmatprep.subr.bf16.mxu0 %v7872_v29 }
0x1302   : > { %v5694_v63 = vpop.f32.mrb[44].mxu0 }
0x1303   : > { %v5695_v60 = vadd.f32 %v7044_v36, %v5694_v63  ;;  %v7479_v13 = vpop.f32.mrb[45].mxu0 }
0x1304   : > { %v5697_v53 = vpop.f32.mrb[46].mxu0  ;;  %v7056_v13 = vld [vmem:[%s9993_s4 + $0x1] ss:$0 sm:$0xff] }
0x1305   : > { %v9762_v21 = vadd.f32 %v5695_v60, %v9402_v56  ;;  %v5698_v24 = vadd.f32 %v7044_v36, %v5697_v53  ;;  %v7480_v3 = vpop.f32.mrb[47].mxu0  ;;  %v7829_v56 = vld [vmem:[#allocation14 + $0x120] ss:$16 sps:$4 sm:$0xff]  }
0x1306   : > { %5965 = vmatpush1.bf16.msra.mxu1 %v7829_v56  ;;  %v7876_v56 = vld [vmem:[#allocation16 + $0x1c8] sm:$0xff]  }
0x1307   : > { %v9765_v6 = vadd.f32 %v5698_v24, %v9406_v35  ;;  %5707 = vadd.xlane.f32.xlu1 %v9762_v21  ;;  %5966 = vmatprep.subr.bf16.mxu1 %v7837_v1  ;;  %v7886_v1 = vld [vmem:[#allocation16 + $0x198] sm:$0xff]  }
0x1309   : > { %5709 = vadd.xlane.f32.xlu0 %v9765_v6 }
0x130a   : > { %5967 = vmatpush1.bf16.msra.mxu1 %v7835_v0  ;;  %v7888_v0 = vld [vmem:[#allocation16 + $0x1e0] sm:$0xff]  }
0x130b   : > { %5968 = vmatprep.subr.bf16.mxu1 %v7843_v28  ;;  %v7890_v28 = vld [vmem:[#allocation16 + $0x1a0] sm:$0xff]  }
0x130e   : > { %5969 = vmatpush1.bf16.msra.mxu1 %v7841_v41  ;;  %v7892_v41 = vld [vmem:[#allocation16 + $0x1e8] sm:$0xff]  }
0x130f   : > { %5970 = vmatprep.subr.bf16.mxu1 %v7849_v26  ;;  %v7894_v26 = vld [vmem:[#allocation16 + $0x1a8] sm:$0xff]  }
0x1312   : > { %5971 = vmatpush1.bf16.msra.mxu1 %v7847_v43  ;;  %v7896_v43 = vld [vmem:[#allocation16 + $0x1f0] sm:$0xff]  }
0x1313   : > { %5972 = vmatprep.subr.bf16.mxu1 %v7855_v22  ;;  %v7898_v22 = vld [vmem:[#allocation16 + $0x1b0] sm:$0xff]  }
0x1316   : > { %5973 = vmatpush1.bf16.msra.mxu1 %v7853_v51  ;;  %v7900_v51 = vld [vmem:[#allocation16 + $0x1f8] sm:$0xff]  }
0x1317   : > { %5974 = vmatprep.subr.bf16.mxu1 %v7861_v48  ;;  %v7902_v48 = vld [vmem:[#allocation16 + $0x1b8] sm:$0xff]  }
0x131a   : > { %5975 = vmatpush1.bf16.msra.mxu1 %v7859_v40  ;;  %v5785_v40 = vrot.slane %v7057_v55, %v8947_v59 }
0x131b   : > { %5976 = vmatprep.subr.bf16.mxu1 %v7867_v20  ;;  %v5789_v20 = vrot.slane %v7057_v55, %v8955_v61 }
0x131e   : > { %5977 = vmatpush1.bf16.msra.mxu1 %v7865_v38 }
0x131f   : > { %7261 = vmatprep.subr.bf16.mxu1 %v7871_v27 }
0x1394   : > { %v5708_v35 = vpop.xlane.xlu1 %5707 }
0x1395   : > { %v5711_v37 = vmul.f32 0.0078125, %v5708_v35  ;;  %v7878_v35 = vld [vmem:[#allocation16 + $0x188] sm:$0xff]  }
0x1396   : > { %v5710_v19 = vpop.xlane.xlu0 %5709 }
0x1397   : > { %v9770_v15 = vsub.f32 %v9762_v21, %v5711_v37  ;;  %v5712_v39 = vmul.f32 0.0078125, %v5710_v19  ;;  %v7879_v37 = vld [vmem:[#allocation16 + $0x150] sm:$0xff]  }
0x1398   : > { %v7880_v19 = vld [vmem:[#allocation16 + $0x1d0] sm:$0xff]  }
0x1399   : > { %v9773_v62 = vsub.f32 %v9765_v6, %v5712_v39  ;;  %v5715_v4 = vmul.f32 %v9770_v15, %v9770_v15  ;;  %v7882_v39 = vld [vmem:[#allocation16 + $0x190] sm:$0xff]  }
0x139b   : > { %5717 = vadd.xlane.f32.xlu0 %v5715_v4  ;;  %v5716_v11 = vmul.f32 %v9773_v62, %v9773_v62  ;;  %v7884_v4 = vld [vmem:[#allocation16 + $0x1d8] sm:$0xff]  }
0x139d   : > { %5719 = vadd.xlane.f32.xlu1 %v5716_v11  ;;  %v7885_v11 = vld [vmem:[#allocation16 + $0x118] sm:$0xff]  }
0x1428   : > { %v5718_v12 = vpop.xlane.xlu0 %5717 }
0x1429   : > { %v5721_v7 = vmul.f32 0.0078125, %v5718_v12 }
0x142a   : > { %v5720_v16 = vpop.xlane.xlu1 %5719 }
0x142b   : > { %v5723_v52 = vadd.f32 1e-05, %v5721_v7  ;;  %v5722_v17 = vmul.f32 0.0078125, %v5720_v16 }
0x142d   : > { %8019 = vrsqrt.f32 %v5723_v52  ;;  %v5724_v18 = vadd.f32 1e-05, %v5722_v17 }
0x142f   : > { %8021 = vrsqrt.f32 %v5724_v18 }
0x1437   : > { %v8020_v44 = vpop.eup %8019 }
0x1438   : > { %v5727_v49 = vmul.f32 %v8020_v44, %v9770_v15  ;;  %v7881_v15 = vld [vmem:[#allocation16 + $0x110] sm:$0xff]  }
0x1439   : > { %v8022_v36 = vpop.eup %8021 }
0x143a   : > { %v5728_v63 = vmul.f32 %v8022_v36, %v9773_v62  ;;  %v5735_v60 = vmul.f32 %v7055_v46, %v5727_v49  ;;  %v7883_v62 = vld [vmem:[#allocation16 + $0x158] sm:$0xff]  }
0x143c   : > { %v5736_v53 = vmul.f32 %v7055_v46, %v5728_v63  ;;  %v5743_v24 = vadd.f32 %v7056_v13, %v5735_v60 }
0x143e   : > { %v5744_v3 = vadd.f32 %v7056_v13, %v5736_v53 }
0x1440   : > { %v5745_v10 = vpack.c.bf16 %v5744_v3, %v5743_v24 }
0x1442   : > { %5995 = vmatmul.mubr.bf16.vlgmr.msra.gmra.mrb[56].mxu1 %v5745_v10  ;;  %6038 = vmatmul.mubr.bf16.vlgmr.msra.gmra.mrb[48].mxu0 %v5745_v10 }
0x1443   : > { %7262 = vmatpush3.bf16.msra.mxu1 %v7873_v9  ;;  %7284 = vmatpush3.bf16.msra.mxu0 %v7874_v54 }
0x1444   : > { %7263 = vmatprep.subr.bf16.mxu1 %v7875_v33  ;;  %7285 = vmatprep.subr.bf16.mxu0 %v7876_v56 }
0x1447   : > { %7264 = vmatpush3.bf16.msra.mxu1 %v7877_v23  ;;  %7286 = vmatpush3.bf16.msra.mxu0 %v7878_v35 }
0x1448   : > { %7265 = vmatprep.subr.bf16.mxu1 %v7879_v37  ;;  %7287 = vmatprep.subr.bf16.mxu0 %v7880_v19 }
0x144b   : > { %7266 = vmatpush3.bf16.msra.mxu1 %v7881_v15  ;;  %7288 = vmatpush3.bf16.msra.mxu0 %v7882_v39 }
0x144c   : > { %7267 = vmatprep.subr.bf16.mxu1 %v7883_v62  ;;  %7289 = vmatprep.subr.bf16.mxu0 %v7884_v4 }
0x144f   : > { %7268 = vmatpush3.bf16.msra.mxu1 %v7885_v11  ;;  %7290 = vmatpush3.bf16.msra.mxu0 %v7886_v1 }
0x1450   : > { %7269 = vmatprep.subr.bf16.mxu1 %v7887_v50  ;;  %7291 = vmatprep.subr.bf16.mxu0 %v7888_v0 }
0x1453   : > { %7270 = vmatpush3.bf16.msra.mxu1 %v7889_v47  ;;  %7292 = vmatpush3.bf16.msra.mxu0 %v7890_v28 }
0x1454   : > { %7271 = vmatprep.subr.bf16.mxu1 %v7891_v25  ;;  %7293 = vmatprep.subr.bf16.mxu0 %v7892_v41 }
0x1457   : > { %7272 = vmatpush3.bf16.msra.mxu1 %v7893_v2  ;;  %7294 = vmatpush3.bf16.msra.mxu0 %v7894_v26 }
0x1458   : > { %7273 = vmatprep.subr.bf16.mxu1 %v7895_v42  ;;  %7295 = vmatprep.subr.bf16.mxu0 %v7896_v43 }
0x145b   : > { %7274 = vmatpush3.bf16.msra.mxu1 %v7897_v14  ;;  %7296 = vmatpush3.bf16.msra.mxu0 %v7898_v22 }
0x145c   : > { %7275 = vmatprep.subr.bf16.mxu1 %v7899_v45  ;;  %7297 = vmatprep.subr.bf16.mxu0 %v7900_v51 }
0x145f   : > { %7276 = vmatpush3.bf16.msra.mxu1 %v7901_v8  ;;  %7298 = vmatpush3.bf16.msra.mxu0 %v7902_v48 }
0x1515   : > { %v5996_v38 = vpop.f32.mrb[56].mxu1  ;;  %v6039_v5 = vpop.f32.mrb[48].mxu0 }
0x1516   : > { %v9795_v12 = vadd.f32 %v5996_v38, %v5785_v40  ;;  %v9797_v7 = vadd.f32 %v6039_v5, %v5793_v57  ;;  %v5998_v16 = vpop.f32.mrb[57].mxu1  ;;  %v6041_v52 = vpop.f32.mrb[49].mxu0 }
0x1517   : > { %v9799_v17 = vadd.f32 %v5998_v16, %v5789_v20  ;;  %v9801_v18 = vadd.f32 %v6041_v52, %v5797_v32  ;;  %v6000_v59 = vpop.f32.mrb[58].mxu1  ;;  %v6043_v44 = vpop.f32.mrb[50].mxu0 }
0x1518   : > { %v6056_v30 = vmul.f32 0.044715, %v9795_v12  ;;  %v6058_v61 = vmul.f32 0.044715, %v9797_v7  ;;  %v6001_v58 = vadd.f32 %v6000_v59, %v5785_v40  ;;  %v6044_v31 = vadd.f32 %v6043_v44, %v5793_v57  ;;  %v6002_v46 = vpop.f32.mrb[59].mxu1  ;;  %v6045_v49 = vpop.f32.mrb[51].mxu0 }
0x1519   : > { %v6057_v36 = vmul.f32 0.044715, %v9799_v17  ;;  %v6059_v63 = vmul.f32 0.044715, %v9801_v18  ;;  %v9807_v60 = vadd.f32 %v6002_v46, %v5789_v20  ;;  %v9809_v13 = vadd.f32 %v6045_v49, %v5797_v32 }
0x151a   : > { %v6064_v53 = vmul.f32 %v6056_v30, %v9795_v12  ;;  %v6066_v24 = vmul.f32 %v6058_v61, %v9797_v7  ;;  %v6060_v3 = vmul.f32 0.044715, %v6001_v58  ;;  %v6062_v10 = vmul.f32 0.044715, %v6044_v31 }
0x151b   : > { %v6065_v27 = vmul.f32 %v6057_v36, %v9799_v17  ;;  %v6067_v29 = vmul.f32 %v6059_v63, %v9801_v18  ;;  %v6061_v9 = vmul.f32 0.044715, %v9807_v60  ;;  %v6063_v54 = vmul.f32 0.044715, %v9809_v13 }
0x151c   : > { %v6072_v33 = vmul.f32 %v6064_v53, %v9795_v12  ;;  %v6074_v56 = vmul.f32 %v6066_v24, %v9797_v7  ;;  %v6068_v23 = vmul.f32 %v6060_v3, %v6001_v58  ;;  %v6070_v35 = vmul.f32 %v6062_v10, %v6044_v31 }
0x151d   : > { %v6073_v37 = vmul.f32 %v6065_v27, %v9799_v17  ;;  %v6075_v19 = vmul.f32 %v6067_v29, %v9801_v18  ;;  %v6069_v15 = vmul.f32 %v6061_v9, %v9807_v60  ;;  %v6071_v39 = vmul.f32 %v6063_v54, %v9809_v13 }
0x151e   : > { %v6080_v62 = vadd.f32 %v6072_v33, %v9795_v12  ;;  %v6082_v4 = vadd.f32 %v6074_v56, %v9797_v7  ;;  %v6076_v11 = vmul.f32 %v6068_v23, %v6001_v58  ;;  %v6078_v1 = vmul.f32 %v6070_v35, %v6044_v31 }
0x151f   : > { %v6077_v50 = vmul.f32 %v6069_v15, %v9807_v60  ;;  %v6079_v0 = vmul.f32 %v6071_v39, %v9809_v13  ;;  %v6081_v2 = vadd.f32 %v6073_v37, %v9799_v17  ;;  %v6083_v14 = vadd.f32 %v6075_v19, %v9801_v18 }
0x1520   : > { %v6088_v47 = vmul.f32 0.7978846, %v6080_v62  ;;  %v6090_v28 = vmul.f32 0.7978846, %v6082_v4  ;;  %v6084_v25 = vadd.f32 %v6076_v11, %v6001_v58  ;;  %v6086_v41 = vadd.f32 %v6078_v1, %v6044_v31 }
0x1521   : > { %v6085_v26 = vadd.f32 %v6077_v50, %v9807_v60  ;;  %v6089_v22 = vmul.f32 0.7978846, %v6081_v2  ;;  %v6087_v51 = vadd.f32 %v6079_v0, %v9809_v13  ;;  %v6091_v8 = vmul.f32 0.7978846, %v6083_v14  ;;  %v7905_v14 = vld [vmem:[#allocation17 + $0x4] ss:$8 sps:$4 sm:$0xff]  }
0x1522   : > { %8023 = vtanh.f32 %v6088_v47  ;;  %v6092_v42 = vmul.f32 0.7978846, %v6084_v25  ;;  %v6094_v43 = vmul.f32 0.7978846, %v6086_v41  ;;  %v6048_v5 = vmul.f32 0.5, %v9795_v12  ;;  %6610 = vmatprep.subr.bf16.mxu1 %v7905_v14 }
0x1523   : > { %8025 = vtanh.f32 %v6090_v28  ;;  %v6093_v45 = vmul.f32 0.7978846, %v6085_v26  ;;  %v6095_v48 = vmul.f32 0.7978846, %v6087_v51  ;;  %v6052_v16 = vmul.f32 0.5, %v6001_v58 }
0x1524   : > { %8027 = vtanh.f32 %v6092_v42  ;;  %v6050_v44 = vmul.f32 0.5, %v9797_v7  ;;  %v6054_v30 = vmul.f32 0.5, %v6044_v31  ;;  %v6049_v49 = vmul.f32 0.5, %v9799_v17 }
0x1525   : > { %8029 = vtanh.f32 %v6094_v43  ;;  %v6053_v3 = vmul.f32 0.5, %v9807_v60  ;;  %v6051_v58 = vmul.f32 0.5, %v9801_v18  ;;  %v6055_v9 = vmul.f32 0.5, %v9809_v13  ;;  %v7091_v18 = vld [vmem:[%s9995_s10 + $0x1] ss:$0 sm:$0xff] }
0x1526   : > { %8031 = vtanh.f32 %v6089_v22  ;;  %v7903_v43 = vld [vmem:[#allocation17] ss:$8 sps:$4 sm:$0xff]   ;;  %v7908_v22 = vld [vmem:[#allocation17 + $0x14] ss:$8 sps:$4 sm:$0xff]  }
0x1527   : > { %8033 = vtanh.f32 %v6093_v45  ;;  %v7906_v45 = vld [vmem:[#allocation17 + $0x10] ss:$8 sps:$4 sm:$0xff]  }
0x1528   : > { %8035 = vtanh.f32 %v6091_v8 }
0x1529   : > { %8037 = vtanh.f32 %v6095_v48 }
0x152c   : > { %v8024_v55 = vpop.eup %8023 }
0x152d   : > { %v8026_v40 = vpop.eup %8025  ;;  %v6104_v57 = vadd.f32 1.0, %v8024_v55 }
0x152e   : > { %v8028_v20 = vpop.eup %8027  ;;  %v6106_v32 = vadd.f32 1.0, %v8026_v40 }
0x152f   : > { %v8030_v38 = vpop.eup %8029  ;;  %v6108_v52 = vadd.f32 1.0, %v8028_v20  ;;  %v6112_v63 = vmul.f32 %v6104_v57, %v6048_v5  ;;  %v7912_v5 = vld [vmem:[#allocation17 + $0x30] ss:$8 sps:$4 sm:$0xff]  }
0x1530   : > { %v8032_v59 = vpop.eup %8031  ;;  %v6110_v61 = vadd.f32 1.0, %v8030_v38  ;;  %v6114_v27 = vmul.f32 %v6106_v32, %v6050_v44  ;;  %v7909_v32 = vld [vmem:[#allocation17 + $0x20] ss:$8 sps:$4 sm:$0xff]   ;;  %v7914_v38 = vld [vmem:[#allocation17 + $0x34] ss:$8 sps:$4 sm:$0xff]  }
0x1531   : > { %v8034_v46 = vpop.eup %8033  ;;  %v6105_v36 = vadd.f32 1.0, %v8032_v59  ;;  %v6116_v53 = vmul.f32 %v6108_v52, %v6052_v16  ;;  %v7915_v16 = vld [vmem:[#allocation17 + $0x40] ss:$8 sps:$4 sm:$0xff]   ;;  %v7917_v52 = vld [vmem:[#allocation17 + $0x44] ss:$8 sps:$4 sm:$0xff]  }
0x1532   : > { %v8036_v24 = vpop.eup %8035  ;;  %v6109_v10 = vadd.f32 1.0, %v8034_v46  ;;  %v6118_v29 = vmul.f32 %v6110_v61, %v6054_v30  ;;  %v7920_v59 = vld [vmem:[#allocation17 + $0x54] ss:$8 sps:$4 sm:$0xff]   ;;  %v7918_v44 = vld [vmem:[#allocation17 + $0x50] ss:$8 sps:$4 sm:$0xff]  }
0x1533   : > { %v8038_v12 = vpop.eup %8037  ;;  %v6107_v7 = vadd.f32 1.0, %v8036_v24  ;;  %v6120_v31 = vpack.c.bf16 %v6116_v53, %v6112_v63  ;;  %v6113_v54 = vmul.f32 %v6105_v36, %v6049_v49  ;;  %v7923_v30 = vld [vmem:[#allocation17 + $0x64] ss:$8 sps:$4 sm:$0xff]   ;;  %v7921_v61 = vld [vmem:[#allocation17 + $0x60] ss:$8 sps:$4 sm:$0xff]  }
0x1534   : > { %v6117_v33 = vmul.f32 %v6109_v10, %v6053_v3  ;;  %v6111_v56 = vadd.f32 1.0, %v8038_v12  ;;  %v6122_v17 = vpack.c.bf16 %v6118_v29, %v6114_v27  ;;  %v7926_v46 = vld [vmem:[#allocation17 + $0x74] ss:$8 sps:$4 sm:$0xff]   ;;  %v7924_v49 = vld [vmem:[#allocation17 + $0x70] ss:$8 sps:$4 sm:$0xff]  }
0x1535   : > { %v6115_v35 = vmul.f32 %v6107_v7, %v6051_v58  ;;  %v7124_v29 = vld [vmem:[%s9996_s9] ss:$0 sm:$0xff]  ;;  %s6658_s9 = scalar_lea.sflag [#allocation4], %s8874_s13 }
0x1536   : > { %v6121_v23 = vpack.c.bf16 %v6117_v33, %v6113_v54  ;;  %v6119_v37 = vmul.f32 %v6111_v56, %v6055_v9 }
0x1538   : > { %6421 = vmatprep.mubr.bf16.mxu1 %v6121_v23  ;;  %v6123_v19 = vpack.c.bf16 %v6119_v37, %v6115_v35 }
0x1539   : > { %6422 = vmatmul.mubr.bf16.vlgmr.msra.gmra.mrb[60].mxu1 %v6120_v31  ;;  %v7125_v31 = vld [vmem:[%s9997_s5] ss:$0 sm:$0xff]  ;;  %s8333_s5 = scalar_lea.vmem %s8332_s16, 1024 }
0x153a   : > { %6462 = vmatprep.mubr.bf16.mxu0 %v6123_v19  ;;  %6642 = vmatprep.mubr.bf16.mxu1 %v8439_v34  ;;  %p8335_p4 = scmp.lt.s32.totalorder %s8333_s5, %s8327_s1 }
0x153b   : > { %6463 = vmatmul.mubr.bf16.vlgmr.msra.gmra.mrb[52].mxu0 %v6122_v17  ;;  %6611 = vmatpush1.bf16.msra.mxu1 %v7903_v43 }
0x153c   : > { %6612 = vmatprep.subr.bf16.mxu1 %v7908_v22  ;;  %p8336_p7 = por %p8335_p4, %p8334_p2 }
0x153e   : > { %p8337_p10 = pnand %p8336_p7, %p8330_p8 }
0x153f   : > { %6613 = vmatpush1.bf16.msra.mxu1 %v7906_v45 }
0x160c   : > { %v7277_v60 = vpop.f32.mrb[60].mxu1 }
0x160d   : > { %v7278_v13 = vpop.f32.mrb[61].mxu1 }
0x160e   : > { %v7299_v15 = vpop.f32.mrb[52].mxu0  ;;  %v7279_v39 = vadd.f32 %v7278_v13, %v7277_v60  ;;  %v7280_v62 = vpop.f32.mrb[62].mxu1 }
0x160f   : > { %v7300_v4 = vpop.f32.mrb[53].mxu0  ;;  %v7281_v11 = vpop.f32.mrb[63].mxu1 }
0x1610   : > { %v6424_v1 = vadd.f32 %v7279_v39, %v7091_v18  ;;  %v7301_v50 = vadd.f32 %v7300_v4, %v7299_v15  ;;  %v7302_v0 = vpop.f32.mrb[54].mxu0  ;;  %v7282_v47 = vadd.f32 %v7281_v11, %v7280_v62 }
0x1611   : > { %v7303_v28 = vpop.f32.mrb[55].mxu0 }
0x1612   : > { %v6465_v25 = vadd.f32 %v7301_v50, %v6424_v1  ;;  %v6427_v41 = vadd.f32 %v7282_v47, %v7091_v18  ;;  %v7304_v34 = vadd.f32 %v7303_v28, %v7302_v0 }
0x1614   : > { %v6468_v2 = vadd.f32 %v7304_v34, %v6427_v41  ;;  %v6471_v26 = vadd.f32 %v6465_v25, %v9762_v21 }
0x1616   : > { %6475 = vadd.xlane.f32.xlu0 %v6471_v26  ;;  %v6472_v42 = vadd.f32 %v6468_v2, %v9765_v6  ;;  %v7911_v6 = vld [vmem:[#allocation17 + $0x24] ss:$8 sps:$4 sm:$0xff]  }
0x1617   : > { %6614 = vmatprep.subr.bf16.mxu1 %v7911_v6 }
0x1618   : > { %6477 = vadd.xlane.f32.xlu1 %v6472_v42  ;;  %6615 = vmatpush1.bf16.msra.mxu1 %v7909_v32 }
0x1619   : > { %6616 = vmatprep.subr.bf16.mxu1 %v7914_v38 }
0x161c   : > { %6617 = vmatpush1.bf16.msra.mxu1 %v7912_v5 }
0x161d   : > { %6618 = vmatprep.subr.bf16.mxu1 %v7917_v52 }
0x1620   : > { %6619 = vmatpush1.bf16.msra.mxu1 %v7915_v16 }
0x1621   : > { %6620 = vmatprep.subr.bf16.mxu1 %v7920_v59 }
0x1624   : > { %6621 = vmatpush1.bf16.msra.mxu1 %v7918_v44 }
0x1625   : > { %6622 = vmatprep.subr.bf16.mxu1 %v7923_v30 }
0x1628   : > { %6623 = vmatpush1.bf16.msra.mxu1 %v7921_v61 }
0x1629   : > { %6624 = vmatprep.subr.bf16.mxu1 %v7926_v46 }
0x162c   : > { %6625 = vmatpush1.bf16.msra.mxu1 %v7924_v49 }
0x16a3   : > { %v6476_v51 = vpop.xlane.xlu0 %6475 }
0x16a4   : > { %v6479_v8 = vmul.f32 0.0078125, %v6476_v51 }
0x16a5   : > { %v6478_v48 = vpop.xlane.xlu1 %6477 }
0x16a6   : > { %v6481_v55 = vsub.f32 %v6471_v26, %v6479_v8  ;;  %v6480_v40 = vmul.f32 0.0078125, %v6478_v48 }
0x16a8   : > { %v6482_v57 = vsub.f32 %v6472_v42, %v6480_v40  ;;  %v6483_v20 = vmul.f32 %v6481_v55, %v6481_v55 }
0x16aa   : > { %6485 = vadd.xlane.f32.xlu0 %v6483_v20  ;;  %v6484_v21 = vmul.f32 %v6482_v57, %v6482_v57 }
0x16ac   : > { %6487 = vadd.xlane.f32.xlu1 %v6484_v21 }
0x1737   : > { %v6486_v36 = vpop.xlane.xlu0 %6485 }
0x1738   : > { %v6489_v63 = vmul.f32 0.0078125, %v6486_v36 }
0x1739   : > { %v6488_v53 = vpop.xlane.xlu1 %6487 }
0x173a   : > { %v6491_v24 = vadd.f32 1e-05, %v6489_v63  ;;  %v6490_v3 = vmul.f32 0.0078125, %v6488_v53 }
0x173c   : > { %8039 = vrsqrt.f32 %v6491_v24  ;;  %v6492_v10 = vadd.f32 1e-05, %v6490_v3 }
0x173e   : > { %8041 = vrsqrt.f32 %v6492_v10 }
0x1746   : > { %v8040_v27 = vpop.eup %8039 }
0x1747   : > { %v6495_v12 = vmul.f32 %v8040_v27, %v6481_v55 }
0x1748   : > { %v8042_v58 = vpop.eup %8041 }
0x1749   : > { %v6496_v9 = vmul.f32 %v8042_v58, %v6482_v57  ;;  %v6503_v7 = vmul.f32 %v7124_v29, %v6495_v12 }
0x174b   : > { %v6504_v54 = vmul.f32 %v7124_v29, %v6496_v9  ;;  %v6511_v33 = vadd.f32 %v7125_v31, %v6503_v7 }
0x174d   : > { %v6512_v56 = vadd.f32 %v7125_v31, %v6504_v54 }
0x174f   : > { %v6513_v17 = vpack.c.bf16 %v6512_v56, %v6511_v33 }
0x1751   : > { %6643 = vmatmul.mubr.bf16.vlgmr.msra.gmra.mrb[64].mxu1 %v6513_v17 }
0x1824   : > { %v6644_v23 = vpop.f32.mrb[64].mxu1 }
0x1825   : > { %6653 = vst [vmem:[%s743_s15] sm:$0xff] %v6644_v23  ;;  %v6646_v35 = vpop.f32.mrb[65].mxu1 }
0x1826   : > { %6654 = vst [vmem:[%s743_s15 + $0x8] sm:$0xff] %v6646_v35  ;;  %v6648_v37 = vpop.f32.mrb[66].mxu1 }
0x1827   : > { %6655 = vst [vmem:[%s743_s15 + $0x10] sm:$0xff] %v6648_v37  ;;  %v6650_v19 = vpop.f32.mrb[67].mxu1 }
0x1828   : > { %6656 = vst [vmem:[%s743_s15 + $0x18] sm:$0xff] %v6650_v19 }
0x1829   : > { %8340 = shalt.err (!%p8337_p10)
}
0x182a   : > { %s8341_s26 = scalar_lea.hbm %s9856_s0, 512  ;;  %s8345_s18 = scalar_lea.hbm %s9998_s2, 1024 }
0x182b   : > { %p8342_p1 = scmp.ne.s32.totalorder %s9856_s0, %s8341_s26  ;;  %p8346_p13 = scmp.lt.u32.totalorder %s9856_s0, %s9998_s2 }
0x182c   : > { %p8347_p6 = scmp.lt.u32.totalorder %s8345_s18, %s8341_s26  ;;  %p8349_p0 = scmp.lt.u32.totalorder %s8341_s26, %s9856_s0 }
0x182d   : > { %p8343_p11 = pnand %p8342_p1, %p9999_p5 }
0x182e   : > { %p8348_p9 = por %p8347_p6, %p8346_p13 }
0x182f   : > { %p8344_p12 = pneg %p8343_p11 }
0x1830   : > { %p8350_p3 = por %p8349_p0, %p8348_p9 }
0x1832   : > { %p8351_p8 = pnand %p8350_p3, %p8344_p12 }
0x1834   : > { %8354 = shalt.err (!%p8351_p8)
}
0x1835   : > { %s8448_s1 = smov 256   ;;  %s8449_s16 = smov 16  }
0x1836   : > { %7517 = dma.vmem_to_hbm [thread:$0]  (%p9999_p5), %s9851_s11, 512, %s9856_s0, %s6658_s9, %s8448_s1, %s8448_s1, %s8449_s16  }
0x1837 PF: > { %s6686_s5 = sand.u32 1, %s8405_s27   ;;  %p10000_p2 = scmp.ne.s32.totalorder %s9974_s8, 0 }
0x1838   : > { %p10001_p4 = scmp.ge.s32.totalorder %s8417_s30, 2  ;;  %s6687_s26 = scalar_lea.sflag [#allocation4], %s6686_s5 }
0x183a   : > { %p7552_p7 = pnand %p10001_p4, %p10000_p2 }
0x183c   : > { %8400 = dma.done.wait (!%p7552_p7), %s6687_s26, 512  }
0x183d   : > { %8402 = vsyncadd (!%p7552_p7), %s6687_s26, 4294966784  ;;  %p38_p10 = scmp.ge.s32.totalorder %s8766_s21, 4   ;;  %s10002_s27 = smov %s8409_s28 }
0x183e   : > { %s10003_s28 = smov %s8413_s29  ;;  %s10004_s29 = smov %s8778_s14 }
0x183f   : > { %s10005_s30 = smov %s8766_s21  ;;  %40 = sbr.rel (!%p38_p10) target bundleno = 29 (0x1d), region = 194 }
0x1846   :  { %6692 = vsyncpa [#allocation3], 1 }
0x1847   :  { %6694 = vsyncpa [#allocation3 + $0x1], 1 }
0x1848   :  { %6695 = vsyncpa [#allocation6], 1 }
0x1849   :  { %6697 = vsyncpa [#allocation6 + $0x1], 1 }
0x184a   :  { %6698 = vsyncpa [#allocation9], 1 }
0x184b   :  { %6699 = vsyncpa [#allocation12], 1 }
0x184c   :  { %6700 = vsyncpa [#allocation15], 1 }
0x184d   :  { %6701 = vsyncpa [#allocation18], 1 }
0x184e   :  { %6702 = vsyncpa [#allocation4], 1 }
0x184f   :  { %6704 = vsyncpa [#allocation4 + $0x1], 1 }

</bundles_post_ra>
